<compile_context>
chip_gen: v5e
topology: v5e:2x2
jax: 0.10.0
libtpu: 0.0.40
codegen_flags: <defaults>
</compile_context>

<pallas_src>
import numpy as np
import jax
import jax.numpy as jnp
from jax import lax
from jax.experimental import pallas as pl
from jax.experimental.pallas import tpu as pltpu


# ----------------------------------------------------------------------------
# Pallas kernel: FFN matmul + pad_logits + CRF log-likelihood (one batch tile)
# ----------------------------------------------------------------------------
def structural_crf_loss_kernel(x_ref, w_ref, bcol_ref, etrans_ref, tend_ref,
                               transT_ref, lab_to_ref, lab_from_ref, lens_ref,
                               out_ref, logits_scr):
    f32 = jnp.float32
    S, D, TB = x_ref.shape            # time, bert_dim, batch tile (lanes)
    L = etrans_ref.shape[0]           # label_size (= entity_label_num + 2)
    S1 = S + 1
    start = L - 2
    end = L - 1

    w = w_ref[...]                    # (L, D) bf16
    bcol = bcol_ref[...]              # (L, 1) f32  (pad_logits bias column)
    lens_row = lens_ref[...]          # (1, TB) i32
    lens3 = lens_row.reshape(1, 1, TB)

    # --- entity_label_ffn + CRF.pad_logits ----------------------------------
    # One (L, D) @ (D, TB) MXU matmul per time step; the result is already the
    # lane-dense (L, TB) slab the recurrence reads, staged at logits_scr[t].
    for t in range(S):
        logits_scr[t] = jnp.dot(w, x_ref[t],
                                preferred_element_type=f32) + bcol

    # --- CRF.calc_norm_score: forward recurrence, alpha laid out (L, TB) ----
    etrans = etrans_ref[...]                                   # (L, L) exp(trans)
    # loop-invariant lane-broadcasts of exp(transition) columns (hoisted)
    et_cols = [jnp.broadcast_to(etrans[:, f:f + 1], (L, TB)) for f in range(L)]

    row_l = lax.broadcasted_iota(jnp.int32, (L, TB), 0)
    alpha = jnp.where(row_l == start, f32(0.0), f32(-100.0))

    # statically unrolled over S; every step is masked with lens > t.
    for t in range(S):
        logit_t = logits_scr[t]                                # (L, TB)
        m = jnp.max(alpha, axis=0, keepdims=True)              # (1, TB)
        ea = jnp.exp(alpha - m)                                # (L, TB)
        # sum_f exp(trans[l, f]) * exp(alpha[f] - m)  -- short VPU chain.
        # (on v5e this could be a (L,L)x(L,TB) MXU dot instead; VPU kept here)
        ssum = et_cols[0] * ea[0:1, :]
        for f in range(1, L):
            ssum = ssum + et_cols[f] * ea[f:f + 1, :]
        ssum = jnp.maximum(ssum, f32(1e-30))                   # FTZ / -inf guard
        alpha_nxt = logit_t + m + jnp.log(ssum)
        alpha = jnp.where(lens_row > t, alpha_nxt, alpha)

    af = alpha + tend_ref[...]                                 # + transition[end, :]
    m2 = jnp.max(af, axis=0, keepdims=True)
    norm = m2 + jnp.log(jnp.sum(jnp.exp(af - m2), axis=0, keepdims=True))  # (1, TB)

    # --- gold score ----------------------------------------------------------
    lab_to_raw = lab_to_ref[...]                               # (S1, 1, TB) int32
    lab_from_raw = lab_from_ref[...]                           # (S1, 1, TB) int32
    labels3 = lab_to_raw[:S]                                   # (S, 1, TB) raw labels

    # CRF.calc_unary_score: sum_t logits[t, labels[t], b] for t < lens
    logits_all = logits_scr[...]                               # (S, L, TB)
    oh_lab = (lax.broadcasted_iota(jnp.int32, (S, L, TB), 1)
              == labels3).astype(f32)
    u3 = jnp.sum(logits_all * oh_lab, axis=1, keepdims=True)   # (S, 1, TB)
    pos_s = lax.broadcasted_iota(jnp.int32, (S, 1, TB), 0)
    unary = jnp.sum(jnp.where(pos_s < lens3, u3, f32(0.0)), axis=0)   # (1, TB)

    # CRF.calc_binary_score: sum_t trans[to_t, from_t] for t <= lens, with
    #   to_t   = labels[t] if t < lens else end
    #   from_t = start if t == 0 else labels[t-1] (end once past lens)
    pos1 = lax.broadcasted_iota(jnp.int32, (S1, 1, TB), 0)
    mask_t1 = pos1 < (lens3 + 1)
    lab_to = jnp.where(pos1 < lens3, lab_to_raw, end)
    lab_from = jnp.where(mask_t1, lab_from_raw, end)

    transT = transT_ref[...]                                   # (L_from, L_to) = trans.T
    # stage 1: rows[t, f, b] = trans[lab_to[t, b], f]   (one-hot over "to")
    rows = jnp.zeros((S1, L, TB), f32)
    for to_l in range(L):
        rows = rows + jnp.where(lab_to == to_l,
                                transT[:, to_l:to_l + 1], f32(0.0))
    # stage 2: reduce against the "from" one-hot
    oh_from = (lax.broadcasted_iota(jnp.int32, (S1, L, TB), 1)
               == lab_from).astype(f32)
    score3 = jnp.sum(rows * oh_from, axis=1, keepdims=True)    # (S1, 1, TB)
    binary = jnp.sum(jnp.where(mask_t1, score3, f32(0.0)), axis=0)    # (1, TB)

    # --- negative log-likelihood per sequence (lane-dense store) -------------
    out_ref[...] = norm - (unary + binary)                     # (1, TB)


# ----------------------------------------------------------------------------
# Wrapper: batch padding / tiling, layout plumbing, pallas_call
# ----------------------------------------------------------------------------
def structural_model_loss(x, W, trans, labels, lens, *, tile_b=128):
    B, S, D = x.shape
    Lnum = W.shape[0]
    L = trans.shape[0]
    assert L == Lnum + 2
    TB = int(tile_b)
    assert TB % 128 == 0, "batch tile must fill the 128-lane axis"
    B_pad = ((B + TB - 1) // TB) * TB
    nb = B_pad // TB
    pad_b = B_pad - B

    f32, i32, bf16 = jnp.float32, jnp.int32, jnp.bfloat16
    start, end = L - 2, L - 1

    # bert_outputs (B, S, D) -> (S, D, B_pad) bf16: each time step is a
    # lane-dense (D, TB) operand of the per-step (L, D) @ (D, TB) matmul.
    x_t = jnp.transpose(x, (1, 2, 0)).astype(bf16)
    x_t = jnp.pad(x_t, ((0, 0), (0, 0), (0, pad_b)))

    # entity_label_ffn weight (bias=False), padded with 2 zero rows for the
    # virtual <SOS>/<EOS> labels; pad_logits fused as a -100 bias column.
    w_pad = jnp.concatenate([W.astype(f32), jnp.zeros((2, D), f32)],
                            axis=0).astype(bf16)                        # (L, D)
    bias_col = jnp.concatenate([jnp.zeros((Lnum, 1), f32),
                                jnp.full((2, 1), -100.0, f32)], axis=0)  # (L, 1)

    trans_f = trans.astype(f32)
    exp_trans = jnp.exp(trans_f)                       # hoisted out of kernel
    trans_end = trans_f[end, :].reshape(L, 1)          # transition[end, :]
    trans_T = trans_f.T                                # (from, to)

    labels_i = labels.astype(i32)                      # (B, S)
    # extended gold label sequences, batch on the 128-lane axis
    lab_to = jnp.concatenate(
        [labels_i, jnp.full((B, 1), end, i32)], axis=1)                 # (B, S+1)
    lab_from = jnp.concatenate(
        [jnp.full((B, 1), start, i32), labels_i], axis=1)               # (B, S+1)
    lab_to_t = jnp.pad(lab_to.T, ((0, 0), (0, pad_b)))[:, None, :]      # (S+1, 1, B_pad)
    lab_from_t = jnp.pad(lab_from.T, ((0, 0), (0, pad_b)))[:, None, :]  # (S+1, 1, B_pad)
    lens_row = jnp.pad(jnp.reshape(lens.astype(i32), (1, B)),
                       ((0, 0), (0, pad_b)))                            # (1, B_pad)

    out = pl.pallas_call(
        structural_crf_loss_kernel,
        out_shape=jax.ShapeDtypeStruct((1, B_pad), f32),
        grid=(nb,),
        in_specs=[
            pl.BlockSpec((S, D, TB), lambda i: (0, 0, i)),        # x (bf16)
            pl.BlockSpec((L, D), lambda i: (0, 0)),               # ffn weight
            pl.BlockSpec((L, 1), lambda i: (0, 0)),               # pad-logits bias
            pl.BlockSpec((L, L), lambda i: (0, 0)),               # exp(transition)
            pl.BlockSpec((L, 1), lambda i: (0, 0)),               # transition[end, :]
            pl.BlockSpec((L, L), lambda i: (0, 0)),               # transition.T
            pl.BlockSpec((S + 1, 1, TB), lambda i: (0, 0, i)),    # gold "to" labels
            pl.BlockSpec((S + 1, 1, TB), lambda i: (0, 0, i)),    # gold "from" labels
            pl.BlockSpec((1, TB), lambda i: (0, i)),              # token_nums
        ],
        out_specs=pl.BlockSpec((1, TB), lambda i: (0, i)),        # lane-dense nll
        scratch_shapes=[pltpu.VMEM((S, L, TB), jnp.float32)],     # staged logits
        compiler_params=pltpu.CompilerParams(
            dimension_semantics=("parallel",),
            vmem_limit_bytes=32 * 1024 * 1024),
    )(x_t, w_pad, bias_col, exp_trans, trans_end, trans_T,
      lab_to_t, lab_from_t, lens_row)

    # drop padded batch columns; divisor stays the true batch size
    return jnp.sum(out[0, :B]) / jnp.float32(B)


# ----------------------------------------------------------------------------
# Deterministic parameter construction (mirrors CRF.__init__/initialize)
# ----------------------------------------------------------------------------
def build_transition(label_vocab, seed=0, bioes=False):
    label_size = len(label_vocab) + 2
    start, end = label_size - 2, label_size - 1
    rng = np.random.RandomState(seed)
    trans = rng.randn(label_size, label_size).astype(np.float32)
    trans[:, end] = -100.0
    trans[start, :] = -100.0
    for label, idx in label_vocab.items():
        if label.startswith('I-') or label.startswith('E-'):
            trans[idx, start] = -100.0
        if label.startswith('B-') or label.startswith('I-'):
            trans[end, idx] = -100.0
    for lf, fi in label_vocab.items():
        fp, ft = ('O', 'O') if lf == 'O' else lf.split('-', 1)
        for lt, ti in label_vocab.items():
            tp, tt = ('O', 'O') if lt == 'O' else lt.split('-', 1)
            if bioes:
                allowed = ((fp in ['O', 'E', 'S'] and tp in ['O', 'B', 'S']) or
                           (fp in ['B', 'I'] and tp in ['I', 'E'] and ft == tt))
            else:
                allowed = (tp in ['B', 'O']) or \
                          (fp in ['B', 'I'] and tp == 'I' and ft == tt)
            if not allowed:
                trans[ti, fi] = -100.0
    return trans


# ----------------------------------------------------------------------------
# Pure numpy reference (mirrors the PyTorch math), used for a sanity check.
# ----------------------------------------------------------------------------
def reference_loss(x, W, trans, labels, lens):
    x = np.asarray(x, np.float64)
    W = np.asarray(W, np.float64)
    trans = np.asarray(trans, np.float64)
    labels = np.asarray(labels)
    lens = np.asarray(lens).reshape(-1)
    B, S, D = x.shape
    L = trans.shape[0]
    start, end = L - 2, L - 1
    scores = np.einsum('bsd,ld->bsl', x, W)
    logits = np.concatenate([scores, np.full((B, S, 2), -100.0)], axis=2)
    # norm score (forward algorithm)
    alpha = np.full((B, L), -100.0)
    alpha[:, start] = 0.0
    for t in range(S):
        logit = logits[:, t, :]
        mat = logit[:, :, None] + alpha[:, None, :] + trans[None, :, :]
        m = mat.max(2)
        a_nxt = m + np.log(np.exp(mat - m[:, :, None]).sum(2))
        msk = (lens - t > 0).astype(np.float64)[:, None]
        alpha = msk * a_nxt + (1 - msk) * alpha
    alpha = alpha + trans[end][None, :]
    m = alpha.max(1)
    norm = m + np.log(np.exp(alpha - m[:, None]).sum(1))
    # gold score (unary + binary)
    gold = np.zeros(B)
    for b in range(B):
        for t in range(int(lens[b])):
            gold[b] += logits[b, t, labels[b, t]]
        lab_ext = [start] + list(labels[b]) + [end]
        lab_ext = [lab_ext[t] if t < lens[b] + 1 else end for t in range(S + 2)]
        for t in range(int(lens[b]) + 1):
            gold[b] += trans[lab_ext[t + 1], lab_ext[t]]
    return float(-(gold - norm).mean())


if __name__ == "__main__":
    # Small synthetic setup consistent with the module's shapes.
    # B=150 with TB=128 -> padded to 256 -> a 2-step batch grid (keeps both
    # v7x TensorCores busy) with 106 padded (lens=0) lanes exercising the
    # tiling + padding-mask path.
    B, S, D = 150, 12, 32                    # batch, tokens, bert_dim
    entity_label_vocab = {'O': 0, 'B-PER': 1, 'I-PER': 2, 'B-ORG': 3, 'I-ORG': 4}
    Lnum = len(entity_label_vocab)           # entity_label_num
    L = Lnum + 2                             # CRF label_size

    key = jax.random.PRNGKey(0)
    kx, kw, kl, kn = jax.random.split(key, 4)
    x = jax.random.normal(kx, (B, S, D), jnp.float32)              # bert_outputs
    W = 0.1 * jax.random.normal(kw, (Lnum, D), jnp.float32)        # entity_label_ffn (bias=False)
    labels = jax.random.randint(kl, (B, S), 0, Lnum, jnp.int32)    # entity_label_idxs
    lens = jax.random.randint(kn, (B,), 1, S + 1, jnp.int32)       # token_nums in [1, S]
    trans = jnp.asarray(build_transition(entity_label_vocab, seed=0))

    loss = structural_model_loss(x, W, trans, labels, lens, tile_b=128)
    loss = jax.block_until_ready(loss)

    # reference on bf16-rounded inputs (kernel runs the FFN matmul in bf16)
    x_r = np.asarray(x.astype(jnp.bfloat16).astype(jnp.float32))
    W_r = np.asarray(W.astype(jnp.bfloat16).astype(jnp.float32))
    ref = reference_loss(x_r, W_r, np.asarray(trans), np.asarray(labels),
                         np.asarray(lens))
    assert np.allclose(float(loss), ref, rtol=2e-3, atol=1e-2), \
        f"kernel={float(loss)} ref={ref}"
    print("KERNEL_OK")
</pallas_src>

<mosaic_0001>
module attributes {stable_mosaic.version = 11 : i64} {
  func.func @structural_crf_loss_kernel(%arg0: i32, %arg1: memref<12x32x128xbf16, #tpu.memory_space<vmem>>, %arg2: memref<7x32xbf16, #tpu.memory_space<vmem>>, %arg3: memref<7x1xf32, #tpu.memory_space<vmem>>, %arg4: memref<7x7xf32, #tpu.memory_space<vmem>>, %arg5: memref<7x1xf32, #tpu.memory_space<vmem>>, %arg6: memref<7x7xf32, #tpu.memory_space<vmem>>, %arg7: memref<13x1x128xi32, #tpu.memory_space<vmem>>, %arg8: memref<13x1x128xi32, #tpu.memory_space<vmem>>, %arg9: memref<1x128xi32, #tpu.memory_space<vmem>>, %arg10: memref<1x128xf32, #tpu.memory_space<vmem>>, %arg11: memref<12x7x128xf32, #tpu.memory_space<vmem>>) attributes {dimension_semantics = [#tpu.dimension_semantics<parallel>], iteration_bounds = array<i64: 2>, scalar_prefetch = 0 : i64, scratch_operands = 1 : i64, tpu.core_type = #tpu.core_type<tc>, window_params = [{transform_indices = @transform_0, window_bounds = array<i64: 12, 32, 128>}, {pipeline_mode = #tpu.pipeline_mode<synchronous>, transform_indices = @transform_1, window_bounds = array<i64: 7, 32>}, {pipeline_mode = #tpu.pipeline_mode<synchronous>, transform_indices = @transform_2, window_bounds = array<i64: 7, 1>}, {pipeline_mode = #tpu.pipeline_mode<synchronous>, transform_indices = @transform_3, window_bounds = array<i64: 7, 7>}, {pipeline_mode = #tpu.pipeline_mode<synchronous>, transform_indices = @transform_4, window_bounds = array<i64: 7, 1>}, {pipeline_mode = #tpu.pipeline_mode<synchronous>, transform_indices = @transform_5, window_bounds = array<i64: 7, 7>}, {transform_indices = @transform_6, window_bounds = array<i64: 13, 1, 128>}, {transform_indices = @transform_7, window_bounds = array<i64: 13, 1, 128>}, {transform_indices = @transform_8, window_bounds = array<i64: 1, 128>}, {transform_indices = @transform_9, window_bounds = array<i64: 1, 128>}]} {
    %c0 = arith.constant 0 : index
    %c0_0 = arith.constant 0 : index
    %0 = vector.load %arg2[%c0, %c0_0] : memref<7x32xbf16, #tpu.memory_space<vmem>>, vector<7x32xbf16>
    %c0_1 = arith.constant 0 : index
    %c0_2 = arith.constant 0 : index
    %1 = vector.load %arg3[%c0_1, %c0_2] : memref<7x1xf32, #tpu.memory_space<vmem>>, vector<7x1xf32>
    %c0_3 = arith.constant 0 : index
    %c0_4 = arith.constant 0 : index
    %2 = vector.load %arg9[%c0_3, %c0_4] : memref<1x128xi32, #tpu.memory_space<vmem>>, vector<1x128xi32>
    %3 = vector.shape_cast %2 : vector<1x128xi32> to vector<1x1x128xi32>
    %c0_5 = arith.constant 0 : index
    %c0_6 = arith.constant 0 : index
    %c0_7 = arith.constant 0 : index
    %4 = vector.load %arg1[%c0_5, %c0_6, %c0_7] : memref<12x32x128xbf16, #tpu.memory_space<vmem>>, vector<1x32x128xbf16>
    %5 = vector.shape_cast %4 : vector<1x32x128xbf16> to vector<32x128xbf16>
    %cst = arith.constant dense<0.000000e+00> : vector<7x128xf32>
    %6 = tpu.matmul %0, %5, %cst {dimension_numbers = #tpu.dot_dimension_numbers<[1], [0], [0], [1], [0, 0, 1, 1], [], []>} : vector<7x32xbf16>, vector<32x128xbf16>, vector<7x128xf32> -> vector<7x128xf32>
    %7 = vector.broadcast %1 : vector<7x1xf32> to vector<7x128xf32>
    %8 = arith.addf %6, %7 : vector<7x128xf32>
    %c0_8 = arith.constant 0 : index
    %c0_9 = arith.constant 0 : index
    %c0_10 = arith.constant 0 : index
    %9 = vector.load %arg11[%c0_8, %c0_9, %c0_10] : memref<12x7x128xf32, #tpu.memory_space<vmem>>, vector<1x7x128xf32>
    %10 = vector.shape_cast %9 : vector<1x7x128xf32> to vector<7x128xf32>
    %11 = vector.shape_cast %8 : vector<7x128xf32> to vector<1x7x128xf32>
    tpu.vector_store %arg11[%c0_8, %c0_9, %c0_10], %11 {strides = array<i32>} : memref<12x7x128xf32, #tpu.memory_space<vmem>>, vector<1x7x128xf32>,
    %c1 = arith.constant 1 : index
    %c0_11 = arith.constant 0 : index
    %c0_12 = arith.constant 0 : index
    %12 = vector.load %arg1[%c1, %c0_11, %c0_12] : memref<12x32x128xbf16, #tpu.memory_space<vmem>>, vector<1x32x128xbf16>
    %13 = vector.shape_cast %12 : vector<1x32x128xbf16> to vector<32x128xbf16>
    %cst_13 = arith.constant dense<0.000000e+00> : vector<7x128xf32>
    %14 = tpu.matmul %0, %13, %cst_13 {dimension_numbers = #tpu.dot_dimension_numbers<[1], [0], [0], [1], [0, 0, 1, 1], [], []>} : vector<7x32xbf16>, vector<32x128xbf16>, vector<7x128xf32> -> vector<7x128xf32>
    %15 = vector.broadcast %1 : vector<7x1xf32> to vector<7x128xf32>
    %16 = arith.addf %14, %15 : vector<7x128xf32>
    %c1_14 = arith.constant 1 : index
    %c0_15 = arith.constant 0 : index
    %c0_16 = arith.constant 0 : index
    %17 = vector.load %arg11[%c1_14, %c0_15, %c0_16] : memref<12x7x128xf32, #tpu.memory_space<vmem>>, vector<1x7x128xf32>
    %18 = vector.shape_cast %17 : vector<1x7x128xf32> to vector<7x128xf32>
    %19 = vector.shape_cast %16 : vector<7x128xf32> to vector<1x7x128xf32>
    tpu.vector_store %arg11[%c1_14, %c0_15, %c0_16], %19 {strides = array<i32>} : memref<12x7x128xf32, #tpu.memory_space<vmem>>, vector<1x7x128xf32>,
    %c2 = arith.constant 2 : index
    %c0_17 = arith.constant 0 : index
    %c0_18 = arith.constant 0 : index
    %20 = vector.load %arg1[%c2, %c0_17, %c0_18] : memref<12x32x128xbf16, #tpu.memory_space<vmem>>, vector<1x32x128xbf16>
    %21 = vector.shape_cast %20 : vector<1x32x128xbf16> to vector<32x128xbf16>
    %cst_19 = arith.constant dense<0.000000e+00> : vector<7x128xf32>
    %22 = tpu.matmul %0, %21, %cst_19 {dimension_numbers = #tpu.dot_dimension_numbers<[1], [0], [0], [1], [0, 0, 1, 1], [], []>} : vector<7x32xbf16>, vector<32x128xbf16>, vector<7x128xf32> -> vector<7x128xf32>
    %23 = vector.broadcast %1 : vector<7x1xf32> to vector<7x128xf32>
    %24 = arith.addf %22, %23 : vector<7x128xf32>
    %c2_20 = arith.constant 2 : index
    %c0_21 = arith.constant 0 : index
    %c0_22 = arith.constant 0 : index
    %25 = vector.load %arg11[%c2_20, %c0_21, %c0_22] : memref<12x7x128xf32, #tpu.memory_space<vmem>>, vector<1x7x128xf32>
    %26 = vector.shape_cast %25 : vector<1x7x128xf32> to vector<7x128xf32>
    %27 = vector.shape_cast %24 : vector<7x128xf32> to vector<1x7x128xf32>
    tpu.vector_store %arg11[%c2_20, %c0_21, %c0_22], %27 {strides = array<i32>} : memref<12x7x128xf32, #tpu.memory_space<vmem>>, vector<1x7x128xf32>,
    %c3 = arith.constant 3 : index
    %c0_23 = arith.constant 0 : index
    %c0_24 = arith.constant 0 : index
    %28 = vector.load %arg1[%c3, %c0_23, %c0_24] : memref<12x32x128xbf16, #tpu.memory_space<vmem>>, vector<1x32x128xbf16>
    %29 = vector.shape_cast %28 : vector<1x32x128xbf16> to vector<32x128xbf16>
    %cst_25 = arith.constant dense<0.000000e+00> : vector<7x128xf32>
    %30 = tpu.matmul %0, %29, %cst_25 {dimension_numbers = #tpu.dot_dimension_numbers<[1], [0], [0], [1], [0, 0, 1, 1], [], []>} : vector<7x32xbf16>, vector<32x128xbf16>, vector<7x128xf32> -> vector<7x128xf32>
    %31 = vector.broadcast %1 : vector<7x1xf32> to vector<7x128xf32>
    %32 = arith.addf %30, %31 : vector<7x128xf32>
    %c3_26 = arith.constant 3 : index
    %c0_27 = arith.constant 0 : index
    %c0_28 = arith.constant 0 : index
    %33 = vector.load %arg11[%c3_26, %c0_27, %c0_28] : memref<12x7x128xf32, #tpu.memory_space<vmem>>, vector<1x7x128xf32>
    %34 = vector.shape_cast %33 : vector<1x7x128xf32> to vector<7x128xf32>
    %35 = vector.shape_cast %32 : vector<7x128xf32> to vector<1x7x128xf32>
    tpu.vector_store %arg11[%c3_26, %c0_27, %c0_28], %35 {strides = array<i32>} : memref<12x7x128xf32, #tpu.memory_space<vmem>>, vector<1x7x128xf32>,
    %c4 = arith.constant 4 : index
    %c0_29 = arith.constant 0 : index
    %c0_30 = arith.constant 0 : index
    %36 = vector.load %arg1[%c4, %c0_29, %c0_30] : memref<12x32x128xbf16, #tpu.memory_space<vmem>>, vector<1x32x128xbf16>
    %37 = vector.shape_cast %36 : vector<1x32x128xbf16> to vector<32x128xbf16>
    %cst_31 = arith.constant dense<0.000000e+00> : vector<7x128xf32>
    %38 = tpu.matmul %0, %37, %cst_31 {dimension_numbers = #tpu.dot_dimension_numbers<[1], [0], [0], [1], [0, 0, 1, 1], [], []>} : vector<7x32xbf16>, vector<32x128xbf16>, vector<7x128xf32> -> vector<7x128xf32>
    %39 = vector.broadcast %1 : vector<7x1xf32> to vector<7x128xf32>
    %40 = arith.addf %38, %39 : vector<7x128xf32>
    %c4_32 = arith.constant 4 : index
    %c0_33 = arith.constant 0 : index
    %c0_34 = arith.constant 0 : index
    %41 = vector.load %arg11[%c4_32, %c0_33, %c0_34] : memref<12x7x128xf32, #tpu.memory_space<vmem>>, vector<1x7x128xf32>
    %42 = vector.shape_cast %41 : vector<1x7x128xf32> to vector<7x128xf32>
    %43 = vector.shape_cast %40 : vector<7x128xf32> to vector<1x7x128xf32>
    tpu.vector_store %arg11[%c4_32, %c0_33, %c0_34], %43 {strides = array<i32>} : memref<12x7x128xf32, #tpu.memory_space<vmem>>, vector<1x7x128xf32>,
    %c5 = arith.constant 5 : index
    %c0_35 = arith.constant 0 : index
    %c0_36 = arith.constant 0 : index
    %44 = vector.load %arg1[%c5, %c0_35, %c0_36] : memref<12x32x128xbf16, #tpu.memory_space<vmem>>, vector<1x32x128xbf16>
    %45 = vector.shape_cast %44 : vector<1x32x128xbf16> to vector<32x128xbf16>
    %cst_37 = arith.constant dense<0.000000e+00> : vector<7x128xf32>
    %46 = tpu.matmul %0, %45, %cst_37 {dimension_numbers = #tpu.dot_dimension_numbers<[1], [0], [0], [1], [0, 0, 1, 1], [], []>} : vector<7x32xbf16>, vector<32x128xbf16>, vector<7x128xf32> -> vector<7x128xf32>
    %47 = vector.broadcast %1 : vector<7x1xf32> to vector<7x128xf32>
    %48 = arith.addf %46, %47 : vector<7x128xf32>
    %c5_38 = arith.constant 5 : index
    %c0_39 = arith.constant 0 : index
    %c0_40 = arith.constant 0 : index
    %49 = vector.load %arg11[%c5_38, %c0_39, %c0_40] : memref<12x7x128xf32, #tpu.memory_space<vmem>>, vector<1x7x128xf32>
    %50 = vector.shape_cast %49 : vector<1x7x128xf32> to vector<7x128xf32>
    %51 = vector.shape_cast %48 : vector<7x128xf32> to vector<1x7x128xf32>
    tpu.vector_store %arg11[%c5_38, %c0_39, %c0_40], %51 {strides = array<i32>} : memref<12x7x128xf32, #tpu.memory_space<vmem>>, vector<1x7x128xf32>,
    %c6 = arith.constant 6 : index
    %c0_41 = arith.constant 0 : index
    %c0_42 = arith.constant 0 : index
    %52 = vector.load %arg1[%c6, %c0_41, %c0_42] : memref<12x32x128xbf16, #tpu.memory_space<vmem>>, vector<1x32x128xbf16>
    %53 = vector.shape_cast %52 : vector<1x32x128xbf16> to vector<32x128xbf16>
    %cst_43 = arith.constant dense<0.000000e+00> : vector<7x128xf32>
    %54 = tpu.matmul %0, %53, %cst_43 {dimension_numbers = #tpu.dot_dimension_numbers<[1], [0], [0], [1], [0, 0, 1, 1], [], []>} : vector<7x32xbf16>, vector<32x128xbf16>, vector<7x128xf32> -> vector<7x128xf32>
    %55 = vector.broadcast %1 : vector<7x1xf32> to vector<7x128xf32>
    %56 = arith.addf %54, %55 : vector<7x128xf32>
    %c6_44 = arith.constant 6 : index
    %c0_45 = arith.constant 0 : index
    %c0_46 = arith.constant 0 : index
    %57 = vector.load %arg11[%c6_44, %c0_45, %c0_46] : memref<12x7x128xf32, #tpu.memory_space<vmem>>, vector<1x7x128xf32>
    %58 = vector.shape_cast %57 : vector<1x7x128xf32> to vector<7x128xf32>
    %59 = vector.shape_cast %56 : vector<7x128xf32> to vector<1x7x128xf32>
    tpu.vector_store %arg11[%c6_44, %c0_45, %c0_46], %59 {strides = array<i32>} : memref<12x7x128xf32, #tpu.memory_space<vmem>>, vector<1x7x128xf32>,
    %c7 = arith.constant 7 : index
    %c0_47 = arith.constant 0 : index
    %c0_48 = arith.constant 0 : index
    %60 = vector.load %arg1[%c7, %c0_47, %c0_48] : memref<12x32x128xbf16, #tpu.memory_space<vmem>>, vector<1x32x128xbf16>
    %61 = vector.shape_cast %60 : vector<1x32x128xbf16> to vector<32x128xbf16>
    %cst_49 = arith.constant dense<0.000000e+00> : vector<7x128xf32>
    %62 = tpu.matmul %0, %61, %cst_49 {dimension_numbers = #tpu.dot_dimension_numbers<[1], [0], [0], [1], [0, 0, 1, 1], [], []>} : vector<7x32xbf16>, vector<32x128xbf16>, vector<7x128xf32> -> vector<7x128xf32>
    %63 = vector.broadcast %1 : vector<7x1xf32> to vector<7x128xf32>
    %64 = arith.addf %62, %63 : vector<7x128xf32>
    %c7_50 = arith.constant 7 : index
    %c0_51 = arith.constant 0 : index
    %c0_52 = arith.constant 0 : index
    %65 = vector.load %arg11[%c7_50, %c0_51, %c0_52] : memref<12x7x128xf32, #tpu.memory_space<vmem>>, vector<1x7x128xf32>
    %66 = vector.shape_cast %65 : vector<1x7x128xf32> to vector<7x128xf32>
    %67 = vector.shape_cast %64 : vector<7x128xf32> to vector<1x7x128xf32>
    tpu.vector_store %arg11[%c7_50, %c0_51, %c0_52], %67 {strides = array<i32>} : memref<12x7x128xf32, #tpu.memory_space<vmem>>, vector<1x7x128xf32>,
    %c8 = arith.constant 8 : index
    %c0_53 = arith.constant 0 : index
    %c0_54 = arith.constant 0 : index
    %68 = vector.load %arg1[%c8, %c0_53, %c0_54] : memref<12x32x128xbf16, #tpu.memory_space<vmem>>, vector<1x32x128xbf16>
    %69 = vector.shape_cast %68 : vector<1x32x128xbf16> to vector<32x128xbf16>
    %cst_55 = arith.constant dense<0.000000e+00> : vector<7x128xf32>
    %70 = tpu.matmul %0, %69, %cst_55 {dimension_numbers = #tpu.dot_dimension_numbers<[1], [0], [0], [1], [0, 0, 1, 1], [], []>} : vector<7x32xbf16>, vector<32x128xbf16>, vector<7x128xf32> -> vector<7x128xf32>
    %71 = vector.broadcast %1 : vector<7x1xf32> to vector<7x128xf32>
    %72 = arith.addf %70, %71 : vector<7x128xf32>
    %c8_56 = arith.constant 8 : index
    %c0_57 = arith.constant 0 : index
    %c0_58 = arith.constant 0 : index
    %73 = vector.load %arg11[%c8_56, %c0_57, %c0_58] : memref<12x7x128xf32, #tpu.memory_space<vmem>>, vector<1x7x128xf32>
    %74 = vector.shape_cast %73 : vector<1x7x128xf32> to vector<7x128xf32>
    %75 = vector.shape_cast %72 : vector<7x128xf32> to vector<1x7x128xf32>
    tpu.vector_store %arg11[%c8_56, %c0_57, %c0_58], %75 {strides = array<i32>} : memref<12x7x128xf32, #tpu.memory_space<vmem>>, vector<1x7x128xf32>,
    %c9 = arith.constant 9 : index
    %c0_59 = arith.constant 0 : index
    %c0_60 = arith.constant 0 : index
    %76 = vector.load %arg1[%c9, %c0_59, %c0_60] : memref<12x32x128xbf16, #tpu.memory_space<vmem>>, vector<1x32x128xbf16>
    %77 = vector.shape_cast %76 : vector<1x32x128xbf16> to vector<32x128xbf16>
    %cst_61 = arith.constant dense<0.000000e+00> : vector<7x128xf32>
    %78 = tpu.matmul %0, %77, %cst_61 {dimension_numbers = #tpu.dot_dimension_numbers<[1], [0], [0], [1], [0, 0, 1, 1], [], []>} : vector<7x32xbf16>, vector<32x128xbf16>, vector<7x128xf32> -> vector<7x128xf32>
    %79 = vector.broadcast %1 : vector<7x1xf32> to vector<7x128xf32>
    %80 = arith.addf %78, %79 : vector<7x128xf32>
    %c9_62 = arith.constant 9 : index
    %c0_63 = arith.constant 0 : index
    %c0_64 = arith.constant 0 : index
    %81 = vector.load %arg11[%c9_62, %c0_63, %c0_64] : memref<12x7x128xf32, #tpu.memory_space<vmem>>, vector<1x7x128xf32>
    %82 = vector.shape_cast %81 : vector<1x7x128xf32> to vector<7x128xf32>
    %83 = vector.shape_cast %80 : vector<7x128xf32> to vector<1x7x128xf32>
    tpu.vector_store %arg11[%c9_62, %c0_63, %c0_64], %83 {strides = array<i32>} : memref<12x7x128xf32, #tpu.memory_space<vmem>>, vector<1x7x128xf32>,
    %c10 = arith.constant 10 : index
    %c0_65 = arith.constant 0 : index
    %c0_66 = arith.constant 0 : index
    %84 = vector.load %arg1[%c10, %c0_65, %c0_66] : memref<12x32x128xbf16, #tpu.memory_space<vmem>>, vector<1x32x128xbf16>
    %85 = vector.shape_cast %84 : vector<1x32x128xbf16> to vector<32x128xbf16>
    %cst_67 = arith.constant dense<0.000000e+00> : vector<7x128xf32>
    %86 = tpu.matmul %0, %85, %cst_67 {dimension_numbers = #tpu.dot_dimension_numbers<[1], [0], [0], [1], [0, 0, 1, 1], [], []>} : vector<7x32xbf16>, vector<32x128xbf16>, vector<7x128xf32> -> vector<7x128xf32>
    %87 = vector.broadcast %1 : vector<7x1xf32> to vector<7x128xf32>
    %88 = arith.addf %86, %87 : vector<7x128xf32>
    %c10_68 = arith.constant 10 : index
    %c0_69 = arith.constant 0 : index
    %c0_70 = arith.constant 0 : index
    %89 = vector.load %arg11[%c10_68, %c0_69, %c0_70] : memref<12x7x128xf32, #tpu.memory_space<vmem>>, vector<1x7x128xf32>
    %90 = vector.shape_cast %89 : vector<1x7x128xf32> to vector<7x128xf32>
    %91 = vector.shape_cast %88 : vector<7x128xf32> to vector<1x7x128xf32>
    tpu.vector_store %arg11[%c10_68, %c0_69, %c0_70], %91 {strides = array<i32>} : memref<12x7x128xf32, #tpu.memory_space<vmem>>, vector<1x7x128xf32>,
    %c11 = arith.constant 11 : index
    %c0_71 = arith.constant 0 : index
    %c0_72 = arith.constant 0 : index
    %92 = vector.load %arg1[%c11, %c0_71, %c0_72] : memref<12x32x128xbf16, #tpu.memory_space<vmem>>, vector<1x32x128xbf16>
    %93 = vector.shape_cast %92 : vector<1x32x128xbf16> to vector<32x128xbf16>
    %cst_73 = arith.constant dense<0.000000e+00> : vector<7x128xf32>
    %94 = tpu.matmul %0, %93, %cst_73 {dimension_numbers = #tpu.dot_dimension_numbers<[1], [0], [0], [1], [0, 0, 1, 1], [], []>} : vector<7x32xbf16>, vector<32x128xbf16>, vector<7x128xf32> -> vector<7x128xf32>
    %95 = vector.broadcast %1 : vector<7x1xf32> to vector<7x128xf32>
    %96 = arith.addf %94, %95 : vector<7x128xf32>
    %c11_74 = arith.constant 11 : index
    %c0_75 = arith.constant 0 : index
    %c0_76 = arith.constant 0 : index
    %97 = vector.load %arg11[%c11_74, %c0_75, %c0_76] : memref<12x7x128xf32, #tpu.memory_space<vmem>>, vector<1x7x128xf32>
    %98 = vector.shape_cast %97 : vector<1x7x128xf32> to vector<7x128xf32>
    %99 = vector.shape_cast %96 : vector<7x128xf32> to vector<1x7x128xf32>
    tpu.vector_store %arg11[%c11_74, %c0_75, %c0_76], %99 {strides = array<i32>} : memref<12x7x128xf32, #tpu.memory_space<vmem>>, vector<1x7x128xf32>,
    %c0_77 = arith.constant 0 : index
    %c0_78 = arith.constant 0 : index
    %100 = vector.load %arg4[%c0_77, %c0_78] : memref<7x7xf32, #tpu.memory_space<vmem>>, vector<7x7xf32>
    %101 = vector.extract_strided_slice %100 {offsets = [0, 0], sizes = [7, 1], strides = [1, 1]} : vector<7x7xf32> to vector<7x1xf32>
    %102 = vector.shape_cast %101 : vector<7x1xf32> to vector<7x1xf32>
    %103 = vector.broadcast %102 : vector<7x1xf32> to vector<7x128xf32>
    %104 = vector.extract_strided_slice %100 {offsets = [0, 1], sizes = [7, 1], strides = [1, 1]} : vector<7x7xf32> to vector<7x1xf32>
    %105 = vector.shape_cast %104 : vector<7x1xf32> to vector<7x1xf32>
    %106 = vector.broadcast %105 : vector<7x1xf32> to vector<7x128xf32>
    %107 = vector.extract_strided_slice %100 {offsets = [0, 2], sizes = [7, 1], strides = [1, 1]} : vector<7x7xf32> to vector<7x1xf32>
    %108 = vector.shape_cast %107 : vector<7x1xf32> to vector<7x1xf32>
    %109 = vector.broadcast %108 : vector<7x1xf32> to vector<7x128xf32>
    %110 = vector.extract_strided_slice %100 {offsets = [0, 3], sizes = [7, 1], strides = [1, 1]} : vector<7x7xf32> to vector<7x1xf32>
    %111 = vector.shape_cast %110 : vector<7x1xf32> to vector<7x1xf32>
    %112 = vector.broadcast %111 : vector<7x1xf32> to vector<7x128xf32>
    %113 = vector.extract_strided_slice %100 {offsets = [0, 4], sizes = [7, 1], strides = [1, 1]} : vector<7x7xf32> to vector<7x1xf32>
    %114 = vector.shape_cast %113 : vector<7x1xf32> to vector<7x1xf32>
    %115 = vector.broadcast %114 : vector<7x1xf32> to vector<7x128xf32>
    %116 = vector.extract_strided_slice %100 {offsets = [0, 5], sizes = [7, 1], strides = [1, 1]} : vector<7x7xf32> to vector<7x1xf32>
    %117 = vector.shape_cast %116 : vector<7x1xf32> to vector<7x1xf32>
    %118 = vector.broadcast %117 : vector<7x1xf32> to vector<7x128xf32>
    %119 = vector.extract_strided_slice %100 {offsets = [0, 6], sizes = [7, 1], strides = [1, 1]} : vector<7x7xf32> to vector<7x1xf32>
    %120 = vector.shape_cast %119 : vector<7x1xf32> to vector<7x1xf32>
    %121 = vector.broadcast %120 : vector<7x1xf32> to vector<7x128xf32>
    %122 = tpu.iota {dimensions = array<i32: 0>} : vector<7x128xi32>
    %c5_i32 = arith.constant 5 : i32
    %123 = vector.broadcast %c5_i32 : i32 to vector<7x128xi32>
    %124 = arith.cmpi eq, %122, %123 : vector<7x128xi32>
    %cst_79 = arith.constant 0.000000e+00 : f32
    %cst_80 = arith.constant -1.000000e+02 : f32
    %125 = vector.broadcast %cst_79 : f32 to vector<7x128xf32>
    %126 = vector.broadcast %cst_80 : f32 to vector<7x128xf32>
    %127 = arith.select %124, %125, %126 : vector<7x128xi1>, vector<7x128xf32>
    %c0_81 = arith.constant 0 : index
    %c0_82 = arith.constant 0 : index
    %c0_83 = arith.constant 0 : index
    %128 = vector.load %arg11[%c0_81, %c0_82, %c0_83] : memref<12x7x128xf32, #tpu.memory_space<vmem>>, vector<1x7x128xf32>
    %129 = vector.shape_cast %128 : vector<1x7x128xf32> to vector<7x128xf32>
    %cst_84 = arith.constant dense<0xFF800000> : vector<128xf32>
    %130 = vector.multi_reduction <maximumf>, %127, %cst_84 [0] : vector<7x128xf32> to vector<128xf32>
    %131 = vector.shape_cast %130 : vector<128xf32> to vector<1x128xf32>
    %132 = vector.broadcast %131 : vector<1x128xf32> to vector<7x128xf32>
    %133 = arith.subf %127, %132 : vector<7x128xf32>
    %134 = math.exp %133 : vector<7x128xf32>
    %135 = vector.extract_strided_slice %134 {offsets = [0, 0], sizes = [1, 128], strides = [1, 1]} : vector<7x128xf32> to vector<1x128xf32>
    %136 = vector.broadcast %135 : vector<1x128xf32> to vector<7x128xf32>
    %137 = arith.mulf %103, %136 : vector<7x128xf32>
    %138 = vector.extract_strided_slice %134 {offsets = [1, 0], sizes = [1, 128], strides = [1, 1]} : vector<7x128xf32> to vector<1x128xf32>
    %139 = vector.broadcast %138 : vector<1x128xf32> to vector<7x128xf32>
    %140 = arith.mulf %106, %139 : vector<7x128xf32>
    %141 = arith.addf %137, %140 : vector<7x128xf32>
    %142 = vector.extract_strided_slice %134 {offsets = [2, 0], sizes = [1, 128], strides = [1, 1]} : vector<7x128xf32> to vector<1x128xf32>
    %143 = vector.broadcast %142 : vector<1x128xf32> to vector<7x128xf32>
    %144 = arith.mulf %109, %143 : vector<7x128xf32>
    %145 = arith.addf %141, %144 : vector<7x128xf32>
    %146 = vector.extract_strided_slice %134 {offsets = [3, 0], sizes = [1, 128], strides = [1, 1]} : vector<7x128xf32> to vector<1x128xf32>
    %147 = vector.broadcast %146 : vector<1x128xf32> to vector<7x128xf32>
    %148 = arith.mulf %112, %147 : vector<7x128xf32>
    %149 = arith.addf %145, %148 : vector<7x128xf32>
    %150 = vector.extract_strided_slice %134 {offsets = [4, 0], sizes = [1, 128], strides = [1, 1]} : vector<7x128xf32> to vector<1x128xf32>
    %151 = vector.broadcast %150 : vector<1x128xf32> to vector<7x128xf32>
    %152 = arith.mulf %115, %151 : vector<7x128xf32>
    %153 = arith.addf %149, %152 : vector<7x128xf32>
    %154 = vector.extract_strided_slice %134 {offsets = [5, 0], sizes = [1, 128], strides = [1, 1]} : vector<7x128xf32> to vector<1x128xf32>
    %155 = vector.broadcast %154 : vector<1x128xf32> to vector<7x128xf32>
    %156 = arith.mulf %118, %155 : vector<7x128xf32>
    %157 = arith.addf %153, %156 : vector<7x128xf32>
    %158 = vector.extract_strided_slice %134 {offsets = [6, 0], sizes = [1, 128], strides = [1, 1]} : vector<7x128xf32> to vector<1x128xf32>
    %159 = vector.broadcast %158 : vector<1x128xf32> to vector<7x128xf32>
    %160 = arith.mulf %121, %159 : vector<7x128xf32>
    %161 = arith.addf %157, %160 : vector<7x128xf32>
    %cst_85 = arith.constant 1.000000e-30 : f32
    %162 = vector.broadcast %cst_85 : f32 to vector<7x128xf32>
    %163 = arith.maximumf %161, %162 : vector<7x128xf32>
    %164 = vector.broadcast %131 : vector<1x128xf32> to vector<7x128xf32>
    %165 = arith.addf %129, %164 : vector<7x128xf32>
    %166 = math.log %163 : vector<7x128xf32>
    %167 = arith.addf %165, %166 : vector<7x128xf32>
    %c0_i32 = arith.constant 0 : i32
    %168 = vector.broadcast %c0_i32 : i32 to vector<1x128xi32>
    %169 = arith.cmpi sgt, %2, %168 : vector<1x128xi32>
    %170 = vector.shape_cast %169 : vector<1x128xi1> to vector<1x128xi1>
    %171 = vector.broadcast %170 : vector<1x128xi1> to vector<7x128xi1>
    %172 = arith.select %171, %167, %127 : vector<7x128xi1>, vector<7x128xf32>
    %c1_86 = arith.constant 1 : index
    %c0_87 = arith.constant 0 : index
    %c0_88 = arith.constant 0 : index
    %173 = vector.load %arg11[%c1_86, %c0_87, %c0_88] : memref<12x7x128xf32, #tpu.memory_space<vmem>>, vector<1x7x128xf32>
    %174 = vector.shape_cast %173 : vector<1x7x128xf32> to vector<7x128xf32>
    %cst_89 = arith.constant dense<0xFF800000> : vector<128xf32>
    %175 = vector.multi_reduction <maximumf>, %172, %cst_89 [0] : vector<7x128xf32> to vector<128xf32>
    %176 = vector.shape_cast %175 : vector<128xf32> to vector<1x128xf32>
    %177 = vector.broadcast %176 : vector<1x128xf32> to vector<7x128xf32>
    %178 = arith.subf %172, %177 : vector<7x128xf32>
    %179 = math.exp %178 : vector<7x128xf32>
    %180 = vector.extract_strided_slice %179 {offsets = [0, 0], sizes = [1, 128], strides = [1, 1]} : vector<7x128xf32> to vector<1x128xf32>
    %181 = vector.broadcast %180 : vector<1x128xf32> to vector<7x128xf32>
    %182 = arith.mulf %103, %181 : vector<7x128xf32>
    %183 = vector.extract_strided_slice %179 {offsets = [1, 0], sizes = [1, 128], strides = [1, 1]} : vector<7x128xf32> to vector<1x128xf32>
    %184 = vector.broadcast %183 : vector<1x128xf32> to vector<7x128xf32>
    %185 = arith.mulf %106, %184 : vector<7x128xf32>
    %186 = arith.addf %182, %185 : vector<7x128xf32>
    %187 = vector.extract_strided_slice %179 {offsets = [2, 0], sizes = [1, 128], strides = [1, 1]} : vector<7x128xf32> to vector<1x128xf32>
    %188 = vector.broadcast %187 : vector<1x128xf32> to vector<7x128xf32>
    %189 = arith.mulf %109, %188 : vector<7x128xf32>
    %190 = arith.addf %186, %189 : vector<7x128xf32>
    %191 = vector.extract_strided_slice %179 {offsets = [3, 0], sizes = [1, 128], strides = [1, 1]} : vector<7x128xf32> to vector<1x128xf32>
    %192 = vector.broadcast %191 : vector<1x128xf32> to vector<7x128xf32>
    %193 = arith.mulf %112, %192 : vector<7x128xf32>
    %194 = arith.addf %190, %193 : vector<7x128xf32>
    %195 = vector.extract_strided_slice %179 {offsets = [4, 0], sizes = [1, 128], strides = [1, 1]} : vector<7x128xf32> to vector<1x128xf32>
    %196 = vector.broadcast %195 : vector<1x128xf32> to vector<7x128xf32>
    %197 = arith.mulf %115, %196 : vector<7x128xf32>
    %198 = arith.addf %194, %197 : vector<7x128xf32>
    %199 = vector.extract_strided_slice %179 {offsets = [5, 0], sizes = [1, 128], strides = [1, 1]} : vector<7x128xf32> to vector<1x128xf32>
    %200 = vector.broadcast %199 : vector<1x128xf32> to vector<7x128xf32>
    %201 = arith.mulf %118, %200 : vector<7x128xf32>
    %202 = arith.addf %198, %201 : vector<7x128xf32>
    %203 = vector.extract_strided_slice %179 {offsets = [6, 0], sizes = [1, 128], strides = [1, 1]} : vector<7x128xf32> to vector<1x128xf32>
    %204 = vector.broadcast %203 : vector<1x128xf32> to vector<7x128xf32>
    %205 = arith.mulf %121, %204 : vector<7x128xf32>
    %206 = arith.addf %202, %205 : vector<7x128xf32>
    %cst_90 = arith.constant 1.000000e-30 : f32
    %207 = vector.broadcast %cst_90 : f32 to vector<7x128xf32>
    %208 = arith.maximumf %206, %207 : vector<7x128xf32>
    %209 = vector.broadcast %176 : vector<1x128xf32> to vector<7x128xf32>
    %210 = arith.addf %174, %209 : vector<7x128xf32>
    %211 = math.log %208 : vector<7x128xf32>
    %212 = arith.addf %210, %211 : vector<7x128xf32>
    %c1_i32 = arith.constant 1 : i32
    %213 = vector.broadcast %c1_i32 : i32 to vector<1x128xi32>
    %214 = arith.cmpi sgt, %2, %213 : vector<1x128xi32>
    %215 = vector.shape_cast %214 : vector<1x128xi1> to vector<1x128xi1>
    %216 = vector.broadcast %215 : vector<1x128xi1> to vector<7x128xi1>
    %217 = arith.select %216, %212, %172 : vector<7x128xi1>, vector<7x128xf32>
    %c2_91 = arith.constant 2 : index
    %c0_92 = arith.constant 0 : index
    %c0_93 = arith.constant 0 : index
    %218 = vector.load %arg11[%c2_91, %c0_92, %c0_93] : memref<12x7x128xf32, #tpu.memory_space<vmem>>, vector<1x7x128xf32>
    %219 = vector.shape_cast %218 : vector<1x7x128xf32> to vector<7x128xf32>
    %cst_94 = arith.constant dense<0xFF800000> : vector<128xf32>
    %220 = vector.multi_reduction <maximumf>, %217, %cst_94 [0] : vector<7x128xf32> to vector<128xf32>
    %221 = vector.shape_cast %220 : vector<128xf32> to vector<1x128xf32>
    %222 = vector.broadcast %221 : vector<1x128xf32> to vector<7x128xf32>
    %223 = arith.subf %217, %222 : vector<7x128xf32>
    %224 = math.exp %223 : vector<7x128xf32>
    %225 = vector.extract_strided_slice %224 {offsets = [0, 0], sizes = [1, 128], strides = [1, 1]} : vector<7x128xf32> to vector<1x128xf32>
    %226 = vector.broadcast %225 : vector<1x128xf32> to vector<7x128xf32>
    %227 = arith.mulf %103, %226 : vector<7x128xf32>
    %228 = vector.extract_strided_slice %224 {offsets = [1, 0], sizes = [1, 128], strides = [1, 1]} : vector<7x128xf32> to vector<1x128xf32>
    %229 = vector.broadcast %228 : vector<1x128xf32> to vector<7x128xf32>
    %230 = arith.mulf %106, %229 : vector<7x128xf32>
    %231 = arith.addf %227, %230 : vector<7x128xf32>
    %232 = vector.extract_strided_slice %224 {offsets = [2, 0], sizes = [1, 128], strides = [1, 1]} : vector<7x128xf32> to vector<1x128xf32>
    %233 = vector.broadcast %232 : vector<1x128xf32> to vector<7x128xf32>
    %234 = arith.mulf %109, %233 : vector<7x128xf32>
    %235 = arith.addf %231, %234 : vector<7x128xf32>
    %236 = vector.extract_strided_slice %224 {offsets = [3, 0], sizes = [1, 128], strides = [1, 1]} : vector<7x128xf32> to vector<1x128xf32>
    %237 = vector.broadcast %236 : vector<1x128xf32> to vector<7x128xf32>
    %238 = arith.mulf %112, %237 : vector<7x128xf32>
    %239 = arith.addf %235, %238 : vector<7x128xf32>
    %240 = vector.extract_strided_slice %224 {offsets = [4, 0], sizes = [1, 128], strides = [1, 1]} : vector<7x128xf32> to vector<1x128xf32>
    %241 = vector.broadcast %240 : vector<1x128xf32> to vector<7x128xf32>
    %242 = arith.mulf %115, %241 : vector<7x128xf32>
    %243 = arith.addf %239, %242 : vector<7x128xf32>
    %244 = vector.extract_strided_slice %224 {offsets = [5, 0], sizes = [1, 128], strides = [1, 1]} : vector<7x128xf32> to vector<1x128xf32>
    %245 = vector.broadcast %244 : vector<1x128xf32> to vector<7x128xf32>
    %246 = arith.mulf %118, %245 : vector<7x128xf32>
    %247 = arith.addf %243, %246 : vector<7x128xf32>
    %248 = vector.extract_strided_slice %224 {offsets = [6, 0], sizes = [1, 128], strides = [1, 1]} : vector<7x128xf32> to vector<1x128xf32>
    %249 = vector.broadcast %248 : vector<1x128xf32> to vector<7x128xf32>
    %250 = arith.mulf %121, %249 : vector<7x128xf32>
    %251 = arith.addf %247, %250 : vector<7x128xf32>
    %cst_95 = arith.constant 1.000000e-30 : f32
    %252 = vector.broadcast %cst_95 : f32 to vector<7x128xf32>
    %253 = arith.maximumf %251, %252 : vector<7x128xf32>
    %254 = vector.broadcast %221 : vector<1x128xf32> to vector<7x128xf32>
    %255 = arith.addf %219, %254 : vector<7x128xf32>
    %256 = math.log %253 : vector<7x128xf32>
    %257 = arith.addf %255, %256 : vector<7x128xf32>
    %c2_i32 = arith.constant 2 : i32
    %258 = vector.broadcast %c2_i32 : i32 to vector<1x128xi32>
    %259 = arith.cmpi sgt, %2, %258 : vector<1x128xi32>
    %260 = vector.shape_cast %259 : vector<1x128xi1> to vector<1x128xi1>
    %261 = vector.broadcast %260 : vector<1x128xi1> to vector<7x128xi1>
    %262 = arith.select %261, %257, %217 : vector<7x128xi1>, vector<7x128xf32>
    %c3_96 = arith.constant 3 : index
    %c0_97 = arith.constant 0 : index
    %c0_98 = arith.constant 0 : index
    %263 = vector.load %arg11[%c3_96, %c0_97, %c0_98] : memref<12x7x128xf32, #tpu.memory_space<vmem>>, vector<1x7x128xf32>
    %264 = vector.shape_cast %263 : vector<1x7x128xf32> to vector<7x128xf32>
    %cst_99 = arith.constant dense<0xFF800000> : vector<128xf32>
    %265 = vector.multi_reduction <maximumf>, %262, %cst_99 [0] : vector<7x128xf32> to vector<128xf32>
    %266 = vector.shape_cast %265 : vector<128xf32> to vector<1x128xf32>
    %267 = vector.broadcast %266 : vector<1x128xf32> to vector<7x128xf32>
    %268 = arith.subf %262, %267 : vector<7x128xf32>
    %269 = math.exp %268 : vector<7x128xf32>
    %270 = vector.extract_strided_slice %269 {offsets = [0, 0], sizes = [1, 128], strides = [1, 1]} : vector<7x128xf32> to vector<1x128xf32>
    %271 = vector.broadcast %270 : vector<1x128xf32> to vector<7x128xf32>
    %272 = arith.mulf %103, %271 : vector<7x128xf32>
    %273 = vector.extract_strided_slice %269 {offsets = [1, 0], sizes = [1, 128], strides = [1, 1]} : vector<7x128xf32> to vector<1x128xf32>
    %274 = vector.broadcast %273 : vector<1x128xf32> to vector<7x128xf32>
    %275 = arith.mulf %106, %274 : vector<7x128xf32>
    %276 = arith.addf %272, %275 : vector<7x128xf32>
    %277 = vector.extract_strided_slice %269 {offsets = [2, 0], sizes = [1, 128], strides = [1, 1]} : vector<7x128xf32> to vector<1x128xf32>
    %278 = vector.broadcast %277 : vector<1x128xf32> to vector<7x128xf32>
    %279 = arith.mulf %109, %278 : vector<7x128xf32>
    %280 = arith.addf %276, %279 : vector<7x128xf32>
    %281 = vector.extract_strided_slice %269 {offsets = [3, 0], sizes = [1, 128], strides = [1, 1]} : vector<7x128xf32> to vector<1x128xf32>
    %282 = vector.broadcast %281 : vector<1x128xf32> to vector<7x128xf32>
    %283 = arith.mulf %112, %282 : vector<7x128xf32>
    %284 = arith.addf %280, %283 : vector<7x128xf32>
    %285 = vector.extract_strided_slice %269 {offsets = [4, 0], sizes = [1, 128], strides = [1, 1]} : vector<7x128xf32> to vector<1x128xf32>
    %286 = vector.broadcast %285 : vector<1x128xf32> to vector<7x128xf32>
    %287 = arith.mulf %115, %286 : vector<7x128xf32>
    %288 = arith.addf %284, %287 : vector<7x128xf32>
    %289 = vector.extract_strided_slice %269 {offsets = [5, 0], sizes = [1, 128], strides = [1, 1]} : vector<7x128xf32> to vector<1x128xf32>
    %290 = vector.broadcast %289 : vector<1x128xf32> to vector<7x128xf32>
    %291 = arith.mulf %118, %290 : vector<7x128xf32>
    %292 = arith.addf %288, %291 : vector<7x128xf32>
    %293 = vector.extract_strided_slice %269 {offsets = [6, 0], sizes = [1, 128], strides = [1, 1]} : vector<7x128xf32> to vector<1x128xf32>
    %294 = vector.broadcast %293 : vector<1x128xf32> to vector<7x128xf32>
    %295 = arith.mulf %121, %294 : vector<7x128xf32>
    %296 = arith.addf %292, %295 : vector<7x128xf32>
    %cst_100 = arith.constant 1.000000e-30 : f32
    %297 = vector.broadcast %cst_100 : f32 to vector<7x128xf32>
    %298 = arith.maximumf %296, %297 : vector<7x128xf32>
    %299 = vector.broadcast %266 : vector<1x128xf32> to vector<7x128xf32>
    %300 = arith.addf %264, %299 : vector<7x128xf32>
    %301 = math.log %298 : vector<7x128xf32>
    %302 = arith.addf %300, %301 : vector<7x128xf32>
    %c3_i32 = arith.constant 3 : i32
    %303 = vector.broadcast %c3_i32 : i32 to vector<1x128xi32>
    %304 = arith.cmpi sgt, %2, %303 : vector<1x128xi32>
    %305 = vector.shape_cast %304 : vector<1x128xi1> to vector<1x128xi1>
    %306 = vector.broadcast %305 : vector<1x128xi1> to vector<7x128xi1>
    %307 = arith.select %306, %302, %262 : vector<7x128xi1>, vector<7x128xf32>
    %c4_101 = arith.constant 4 : index
    %c0_102 = arith.constant 0 : index
    %c0_103 = arith.constant 0 : index
    %308 = vector.load %arg11[%c4_101, %c0_102, %c0_103] : memref<12x7x128xf32, #tpu.memory_space<vmem>>, vector<1x7x128xf32>
    %309 = vector.shape_cast %308 : vector<1x7x128xf32> to vector<7x128xf32>
    %cst_104 = arith.constant dense<0xFF800000> : vector<128xf32>
    %310 = vector.multi_reduction <maximumf>, %307, %cst_104 [0] : vector<7x128xf32> to vector<128xf32>
    %311 = vector.shape_cast %310 : vector<128xf32> to vector<1x128xf32>
    %312 = vector.broadcast %311 : vector<1x128xf32> to vector<7x128xf32>
    %313 = arith.subf %307, %312 : vector<7x128xf32>
    %314 = math.exp %313 : vector<7x128xf32>
    %315 = vector.extract_strided_slice %314 {offsets = [0, 0], sizes = [1, 128], strides = [1, 1]} : vector<7x128xf32> to vector<1x128xf32>
    %316 = vector.broadcast %315 : vector<1x128xf32> to vector<7x128xf32>
    %317 = arith.mulf %103, %316 : vector<7x128xf32>
    %318 = vector.extract_strided_slice %314 {offsets = [1, 0], sizes = [1, 128], strides = [1, 1]} : vector<7x128xf32> to vector<1x128xf32>
    %319 = vector.broadcast %318 : vector<1x128xf32> to vector<7x128xf32>
    %320 = arith.mulf %106, %319 : vector<7x128xf32>
    %321 = arith.addf %317, %320 : vector<7x128xf32>
    %322 = vector.extract_strided_slice %314 {offsets = [2, 0], sizes = [1, 128], strides = [1, 1]} : vector<7x128xf32> to vector<1x128xf32>
    %323 = vector.broadcast %322 : vector<1x128xf32> to vector<7x128xf32>
    %324 = arith.mulf %109, %323 : vector<7x128xf32>
    %325 = arith.addf %321, %324 : vector<7x128xf32>
    %326 = vector.extract_strided_slice %314 {offsets = [3, 0], sizes = [1, 128], strides = [1, 1]} : vector<7x128xf32> to vector<1x128xf32>
    %327 = vector.broadcast %326 : vector<1x128xf32> to vector<7x128xf32>
    %328 = arith.mulf %112, %327 : vector<7x128xf32>
    %329 = arith.addf %325, %328 : vector<7x128xf32>
    %330 = vector.extract_strided_slice %314 {offsets = [4, 0], sizes = [1, 128], strides = [1, 1]} : vector<7x128xf32> to vector<1x128xf32>
    %331 = vector.broadcast %330 : vector<1x128xf32> to vector<7x128xf32>
    %332 = arith.mulf %115, %331 : vector<7x128xf32>
    %333 = arith.addf %329, %332 : vector<7x128xf32>
    %334 = vector.extract_strided_slice %314 {offsets = [5, 0], sizes = [1, 128], strides = [1, 1]} : vector<7x128xf32> to vector<1x128xf32>
    %335 = vector.broadcast %334 : vector<1x128xf32> to vector<7x128xf32>
    %336 = arith.mulf %118, %335 : vector<7x128xf32>
    %337 = arith.addf %333, %336 : vector<7x128xf32>
    %338 = vector.extract_strided_slice %314 {offsets = [6, 0], sizes = [1, 128], strides = [1, 1]} : vector<7x128xf32> to vector<1x128xf32>
    %339 = vector.broadcast %338 : vector<1x128xf32> to vector<7x128xf32>
    %340 = arith.mulf %121, %339 : vector<7x128xf32>
    %341 = arith.addf %337, %340 : vector<7x128xf32>
    %cst_105 = arith.constant 1.000000e-30 : f32
    %342 = vector.broadcast %cst_105 : f32 to vector<7x128xf32>
    %343 = arith.maximumf %341, %342 : vector<7x128xf32>
    %344 = vector.broadcast %311 : vector<1x128xf32> to vector<7x128xf32>
    %345 = arith.addf %309, %344 : vector<7x128xf32>
    %346 = math.log %343 : vector<7x128xf32>
    %347 = arith.addf %345, %346 : vector<7x128xf32>
    %c4_i32 = arith.constant 4 : i32
    %348 = vector.broadcast %c4_i32 : i32 to vector<1x128xi32>
    %349 = arith.cmpi sgt, %2, %348 : vector<1x128xi32>
    %350 = vector.shape_cast %349 : vector<1x128xi1> to vector<1x128xi1>
    %351 = vector.broadcast %350 : vector<1x128xi1> to vector<7x128xi1>
    %352 = arith.select %351, %347, %307 : vector<7x128xi1>, vector<7x128xf32>
    %c5_106 = arith.constant 5 : index
    %c0_107 = arith.constant 0 : index
    %c0_108 = arith.constant 0 : index
    %353 = vector.load %arg11[%c5_106, %c0_107, %c0_108] : memref<12x7x128xf32, #tpu.memory_space<vmem>>, vector<1x7x128xf32>
    %354 = vector.shape_cast %353 : vector<1x7x128xf32> to vector<7x128xf32>
    %cst_109 = arith.constant dense<0xFF800000> : vector<128xf32>
    %355 = vector.multi_reduction <maximumf>, %352, %cst_109 [0] : vector<7x128xf32> to vector<128xf32>
    %356 = vector.shape_cast %355 : vector<128xf32> to vector<1x128xf32>
    %357 = vector.broadcast %356 : vector<1x128xf32> to vector<7x128xf32>
    %358 = arith.subf %352, %357 : vector<7x128xf32>
    %359 = math.exp %358 : vector<7x128xf32>
    %360 = vector.extract_strided_slice %359 {offsets = [0, 0], sizes = [1, 128], strides = [1, 1]} : vector<7x128xf32> to vector<1x128xf32>
    %361 = vector.broadcast %360 : vector<1x128xf32> to vector<7x128xf32>
    %362 = arith.mulf %103, %361 : vector<7x128xf32>
    %363 = vector.extract_strided_slice %359 {offsets = [1, 0], sizes = [1, 128], strides = [1, 1]} : vector<7x128xf32> to vector<1x128xf32>
    %364 = vector.broadcast %363 : vector<1x128xf32> to vector<7x128xf32>
    %365 = arith.mulf %106, %364 : vector<7x128xf32>
    %366 = arith.addf %362, %365 : vector<7x128xf32>
    %367 = vector.extract_strided_slice %359 {offsets = [2, 0], sizes = [1, 128], strides = [1, 1]} : vector<7x128xf32> to vector<1x128xf32>
    %368 = vector.broadcast %367 : vector<1x128xf32> to vector<7x128xf32>
    %369 = arith.mulf %109, %368 : vector<7x128xf32>
    %370 = arith.addf %366, %369 : vector<7x128xf32>
    %371 = vector.extract_strided_slice %359 {offsets = [3, 0], sizes = [1, 128], strides = [1, 1]} : vector<7x128xf32> to vector<1x128xf32>
    %372 = vector.broadcast %371 : vector<1x128xf32> to vector<7x128xf32>
    %373 = arith.mulf %112, %372 : vector<7x128xf32>
    %374 = arith.addf %370, %373 : vector<7x128xf32>
    %375 = vector.extract_strided_slice %359 {offsets = [4, 0], sizes = [1, 128], strides = [1, 1]} : vector<7x128xf32> to vector<1x128xf32>
    %376 = vector.broadcast %375 : vector<1x128xf32> to vector<7x128xf32>
    %377 = arith.mulf %115, %376 : vector<7x128xf32>
    %378 = arith.addf %374, %377 : vector<7x128xf32>
    %379 = vector.extract_strided_slice %359 {offsets = [5, 0], sizes = [1, 128], strides = [1, 1]} : vector<7x128xf32> to vector<1x128xf32>
    %380 = vector.broadcast %379 : vector<1x128xf32> to vector<7x128xf32>
    %381 = arith.mulf %118, %380 : vector<7x128xf32>
    %382 = arith.addf %378, %381 : vector<7x128xf32>
    %383 = vector.extract_strided_slice %359 {offsets = [6, 0], sizes = [1, 128], strides = [1, 1]} : vector<7x128xf32> to vector<1x128xf32>
    %384 = vector.broadcast %383 : vector<1x128xf32> to vector<7x128xf32>
    %385 = arith.mulf %121, %384 : vector<7x128xf32>
    %386 = arith.addf %382, %385 : vector<7x128xf32>
    %cst_110 = arith.constant 1.000000e-30 : f32
    %387 = vector.broadcast %cst_110 : f32 to vector<7x128xf32>
    %388 = arith.maximumf %386, %387 : vector<7x128xf32>
    %389 = vector.broadcast %356 : vector<1x128xf32> to vector<7x128xf32>
    %390 = arith.addf %354, %389 : vector<7x128xf32>
    %391 = math.log %388 : vector<7x128xf32>
    %392 = arith.addf %390, %391 : vector<7x128xf32>
    %c5_i32_111 = arith.constant 5 : i32
    %393 = vector.broadcast %c5_i32_111 : i32 to vector<1x128xi32>
    %394 = arith.cmpi sgt, %2, %393 : vector<1x128xi32>
    %395 = vector.shape_cast %394 : vector<1x128xi1> to vector<1x128xi1>
    %396 = vector.broadcast %395 : vector<1x128xi1> to vector<7x128xi1>
    %397 = arith.select %396, %392, %352 : vector<7x128xi1>, vector<7x128xf32>
    %c6_112 = arith.constant 6 : index
    %c0_113 = arith.constant 0 : index
    %c0_114 = arith.constant 0 : index
    %398 = vector.load %arg11[%c6_112, %c0_113, %c0_114] : memref<12x7x128xf32, #tpu.memory_space<vmem>>, vector<1x7x128xf32>
    %399 = vector.shape_cast %398 : vector<1x7x128xf32> to vector<7x128xf32>
    %cst_115 = arith.constant dense<0xFF800000> : vector<128xf32>
    %400 = vector.multi_reduction <maximumf>, %397, %cst_115 [0] : vector<7x128xf32> to vector<128xf32>
    %401 = vector.shape_cast %400 : vector<128xf32> to vector<1x128xf32>
    %402 = vector.broadcast %401 : vector<1x128xf32> to vector<7x128xf32>
    %403 = arith.subf %397, %402 : vector<7x128xf32>
    %404 = math.exp %403 : vector<7x128xf32>
    %405 = vector.extract_strided_slice %404 {offsets = [0, 0], sizes = [1, 128], strides = [1, 1]} : vector<7x128xf32> to vector<1x128xf32>
    %406 = vector.broadcast %405 : vector<1x128xf32> to vector<7x128xf32>
    %407 = arith.mulf %103, %406 : vector<7x128xf32>
    %408 = vector.extract_strided_slice %404 {offsets = [1, 0], sizes = [1, 128], strides = [1, 1]} : vector<7x128xf32> to vector<1x128xf32>
    %409 = vector.broadcast %408 : vector<1x128xf32> to vector<7x128xf32>
    %410 = arith.mulf %106, %409 : vector<7x128xf32>
    %411 = arith.addf %407, %410 : vector<7x128xf32>
    %412 = vector.extract_strided_slice %404 {offsets = [2, 0], sizes = [1, 128], strides = [1, 1]} : vector<7x128xf32> to vector<1x128xf32>
    %413 = vector.broadcast %412 : vector<1x128xf32> to vector<7x128xf32>
    %414 = arith.mulf %109, %413 : vector<7x128xf32>
    %415 = arith.addf %411, %414 : vector<7x128xf32>
    %416 = vector.extract_strided_slice %404 {offsets = [3, 0], sizes = [1, 128], strides = [1, 1]} : vector<7x128xf32> to vector<1x128xf32>
    %417 = vector.broadcast %416 : vector<1x128xf32> to vector<7x128xf32>
    %418 = arith.mulf %112, %417 : vector<7x128xf32>
    %419 = arith.addf %415, %418 : vector<7x128xf32>
    %420 = vector.extract_strided_slice %404 {offsets = [4, 0], sizes = [1, 128], strides = [1, 1]} : vector<7x128xf32> to vector<1x128xf32>
    %421 = vector.broadcast %420 : vector<1x128xf32> to vector<7x128xf32>
    %422 = arith.mulf %115, %421 : vector<7x128xf32>
    %423 = arith.addf %419, %422 : vector<7x128xf32>
    %424 = vector.extract_strided_slice %404 {offsets = [5, 0], sizes = [1, 128], strides = [1, 1]} : vector<7x128xf32> to vector<1x128xf32>
    %425 = vector.broadcast %424 : vector<1x128xf32> to vector<7x128xf32>
    %426 = arith.mulf %118, %425 : vector<7x128xf32>
    %427 = arith.addf %423, %426 : vector<7x128xf32>
    %428 = vector.extract_strided_slice %404 {offsets = [6, 0], sizes = [1, 128], strides = [1, 1]} : vector<7x128xf32> to vector<1x128xf32>
    %429 = vector.broadcast %428 : vector<1x128xf32> to vector<7x128xf32>
    %430 = arith.mulf %121, %429 : vector<7x128xf32>
    %431 = arith.addf %427, %430 : vector<7x128xf32>
    %cst_116 = arith.constant 1.000000e-30 : f32
    %432 = vector.broadcast %cst_116 : f32 to vector<7x128xf32>
    %433 = arith.maximumf %431, %432 : vector<7x128xf32>
    %434 = vector.broadcast %401 : vector<1x128xf32> to vector<7x128xf32>
    %435 = arith.addf %399, %434 : vector<7x128xf32>
    %436 = math.log %433 : vector<7x128xf32>
    %437 = arith.addf %435, %436 : vector<7x128xf32>
    %c6_i32 = arith.constant 6 : i32
    %438 = vector.broadcast %c6_i32 : i32 to vector<1x128xi32>
    %439 = arith.cmpi sgt, %2, %438 : vector<1x128xi32>
    %440 = vector.shape_cast %439 : vector<1x128xi1> to vector<1x128xi1>
    %441 = vector.broadcast %440 : vector<1x128xi1> to vector<7x128xi1>
    %442 = arith.select %441, %437, %397 : vector<7x128xi1>, vector<7x128xf32>
    %c7_117 = arith.constant 7 : index
    %c0_118 = arith.constant 0 : index
    %c0_119 = arith.constant 0 : index
    %443 = vector.load %arg11[%c7_117, %c0_118, %c0_119] : memref<12x7x128xf32, #tpu.memory_space<vmem>>, vector<1x7x128xf32>
    %444 = vector.shape_cast %443 : vector<1x7x128xf32> to vector<7x128xf32>
    %cst_120 = arith.constant dense<0xFF800000> : vector<128xf32>
    %445 = vector.multi_reduction <maximumf>, %442, %cst_120 [0] : vector<7x128xf32> to vector<128xf32>
    %446 = vector.shape_cast %445 : vector<128xf32> to vector<1x128xf32>
    %447 = vector.broadcast %446 : vector<1x128xf32> to vector<7x128xf32>
    %448 = arith.subf %442, %447 : vector<7x128xf32>
    %449 = math.exp %448 : vector<7x128xf32>
    %450 = vector.extract_strided_slice %449 {offsets = [0, 0], sizes = [1, 128], strides = [1, 1]} : vector<7x128xf32> to vector<1x128xf32>
    %451 = vector.broadcast %450 : vector<1x128xf32> to vector<7x128xf32>
    %452 = arith.mulf %103, %451 : vector<7x128xf32>
    %453 = vector.extract_strided_slice %449 {offsets = [1, 0], sizes = [1, 128], strides = [1, 1]} : vector<7x128xf32> to vector<1x128xf32>
    %454 = vector.broadcast %453 : vector<1x128xf32> to vector<7x128xf32>
    %455 = arith.mulf %106, %454 : vector<7x128xf32>
    %456 = arith.addf %452, %455 : vector<7x128xf32>
    %457 = vector.extract_strided_slice %449 {offsets = [2, 0], sizes = [1, 128], strides = [1, 1]} : vector<7x128xf32> to vector<1x128xf32>
    %458 = vector.broadcast %457 : vector<1x128xf32> to vector<7x128xf32>
    %459 = arith.mulf %109, %458 : vector<7x128xf32>
    %460 = arith.addf %456, %459 : vector<7x128xf32>
    %461 = vector.extract_strided_slice %449 {offsets = [3, 0], sizes = [1, 128], strides = [1, 1]} : vector<7x128xf32> to vector<1x128xf32>
    %462 = vector.broadcast %461 : vector<1x128xf32> to vector<7x128xf32>
    %463 = arith.mulf %112, %462 : vector<7x128xf32>
    %464 = arith.addf %460, %463 : vector<7x128xf32>
    %465 = vector.extract_strided_slice %449 {offsets = [4, 0], sizes = [1, 128], strides = [1, 1]} : vector<7x128xf32> to vector<1x128xf32>
    %466 = vector.broadcast %465 : vector<1x128xf32> to vector<7x128xf32>
    %467 = arith.mulf %115, %466 : vector<7x128xf32>
    %468 = arith.addf %464, %467 : vector<7x128xf32>
    %469 = vector.extract_strided_slice %449 {offsets = [5, 0], sizes = [1, 128], strides = [1, 1]} : vector<7x128xf32> to vector<1x128xf32>
    %470 = vector.broadcast %469 : vector<1x128xf32> to vector<7x128xf32>
    %471 = arith.mulf %118, %470 : vector<7x128xf32>
    %472 = arith.addf %468, %471 : vector<7x128xf32>
    %473 = vector.extract_strided_slice %449 {offsets = [6, 0], sizes = [1, 128], strides = [1, 1]} : vector<7x128xf32> to vector<1x128xf32>
    %474 = vector.broadcast %473 : vector<1x128xf32> to vector<7x128xf32>
    %475 = arith.mulf %121, %474 : vector<7x128xf32>
    %476 = arith.addf %472, %475 : vector<7x128xf32>
    %cst_121 = arith.constant 1.000000e-30 : f32
    %477 = vector.broadcast %cst_121 : f32 to vector<7x128xf32>
    %478 = arith.maximumf %476, %477 : vector<7x128xf32>
    %479 = vector.broadcast %446 : vector<1x128xf32> to vector<7x128xf32>
    %480 = arith.addf %444, %479 : vector<7x128xf32>
    %481 = math.log %478 : vector<7x128xf32>
    %482 = arith.addf %480, %481 : vector<7x128xf32>
    %c7_i32 = arith.constant 7 : i32
    %483 = vector.broadcast %c7_i32 : i32 to vector<1x128xi32>
    %484 = arith.cmpi sgt, %2, %483 : vector<1x128xi32>
    %485 = vector.shape_cast %484 : vector<1x128xi1> to vector<1x128xi1>
    %486 = vector.broadcast %485 : vector<1x128xi1> to vector<7x128xi1>
    %487 = arith.select %486, %482, %442 : vector<7x128xi1>, vector<7x128xf32>
    %c8_122 = arith.constant 8 : index
    %c0_123 = arith.constant 0 : index
    %c0_124 = arith.constant 0 : index
    %488 = vector.load %arg11[%c8_122, %c0_123, %c0_124] : memref<12x7x128xf32, #tpu.memory_space<vmem>>, vector<1x7x128xf32>
    %489 = vector.shape_cast %488 : vector<1x7x128xf32> to vector<7x128xf32>
    %cst_125 = arith.constant dense<0xFF800000> : vector<128xf32>
    %490 = vector.multi_reduction <maximumf>, %487, %cst_125 [0] : vector<7x128xf32> to vector<128xf32>
    %491 = vector.shape_cast %490 : vector<128xf32> to vector<1x128xf32>
    %492 = vector.broadcast %491 : vector<1x128xf32> to vector<7x128xf32>
    %493 = arith.subf %487, %492 : vector<7x128xf32>
    %494 = math.exp %493 : vector<7x128xf32>
    %495 = vector.extract_strided_slice %494 {offsets = [0, 0], sizes = [1, 128], strides = [1, 1]} : vector<7x128xf32> to vector<1x128xf32>
    %496 = vector.broadcast %495 : vector<1x128xf32> to vector<7x128xf32>
    %497 = arith.mulf %103, %496 : vector<7x128xf32>
    %498 = vector.extract_strided_slice %494 {offsets = [1, 0], sizes = [1, 128], strides = [1, 1]} : vector<7x128xf32> to vector<1x128xf32>
    %499 = vector.broadcast %498 : vector<1x128xf32> to vector<7x128xf32>
    %500 = arith.mulf %106, %499 : vector<7x128xf32>
    %501 = arith.addf %497, %500 : vector<7x128xf32>
    %502 = vector.extract_strided_slice %494 {offsets = [2, 0], sizes = [1, 128], strides = [1, 1]} : vector<7x128xf32> to vector<1x128xf32>
    %503 = vector.broadcast %502 : vector<1x128xf32> to vector<7x128xf32>
    %504 = arith.mulf %109, %503 : vector<7x128xf32>
    %505 = arith.addf %501, %504 : vector<7x128xf32>
    %506 = vector.extract_strided_slice %494 {offsets = [3, 0], sizes = [1, 128], strides = [1, 1]} : vector<7x128xf32> to vector<1x128xf32>
    %507 = vector.broadcast %506 : vector<1x128xf32> to vector<7x128xf32>
    %508 = arith.mulf %112, %507 : vector<7x128xf32>
    %509 = arith.addf %505, %508 : vector<7x128xf32>
    %510 = vector.extract_strided_slice %494 {offsets = [4, 0], sizes = [1, 128], strides = [1, 1]} : vector<7x128xf32> to vector<1x128xf32>
    %511 = vector.broadcast %510 : vector<1x128xf32> to vector<7x128xf32>
    %512 = arith.mulf %115, %511 : vector<7x128xf32>
    %513 = arith.addf %509, %512 : vector<7x128xf32>
    %514 = vector.extract_strided_slice %494 {offsets = [5, 0], sizes = [1, 128], strides = [1, 1]} : vector<7x128xf32> to vector<1x128xf32>
    %515 = vector.broadcast %514 : vector<1x128xf32> to vector<7x128xf32>
    %516 = arith.mulf %118, %515 : vector<7x128xf32>
    %517 = arith.addf %513, %516 : vector<7x128xf32>
    %518 = vector.extract_strided_slice %494 {offsets = [6, 0], sizes = [1, 128], strides = [1, 1]} : vector<7x128xf32> to vector<1x128xf32>
    %519 = vector.broadcast %518 : vector<1x128xf32> to vector<7x128xf32>
    %520 = arith.mulf %121, %519 : vector<7x128xf32>
    %521 = arith.addf %517, %520 : vector<7x128xf32>
    %cst_126 = arith.constant 1.000000e-30 : f32
    %522 = vector.broadcast %cst_126 : f32 to vector<7x128xf32>
    %523 = arith.maximumf %521, %522 : vector<7x128xf32>
    %524 = vector.broadcast %491 : vector<1x128xf32> to vector<7x128xf32>
    %525 = arith.addf %489, %524 : vector<7x128xf32>
    %526 = math.log %523 : vector<7x128xf32>
    %527 = arith.addf %525, %526 : vector<7x128xf32>
    %c8_i32 = arith.constant 8 : i32
    %528 = vector.broadcast %c8_i32 : i32 to vector<1x128xi32>
    %529 = arith.cmpi sgt, %2, %528 : vector<1x128xi32>
    %530 = vector.shape_cast %529 : vector<1x128xi1> to vector<1x128xi1>
    %531 = vector.broadcast %530 : vector<1x128xi1> to vector<7x128xi1>
    %532 = arith.select %531, %527, %487 : vector<7x128xi1>, vector<7x128xf32>
    %c9_127 = arith.constant 9 : index
    %c0_128 = arith.constant 0 : index
    %c0_129 = arith.constant 0 : index
    %533 = vector.load %arg11[%c9_127, %c0_128, %c0_129] : memref<12x7x128xf32, #tpu.memory_space<vmem>>, vector<1x7x128xf32>
    %534 = vector.shape_cast %533 : vector<1x7x128xf32> to vector<7x128xf32>
    %cst_130 = arith.constant dense<0xFF800000> : vector<128xf32>
    %535 = vector.multi_reduction <maximumf>, %532, %cst_130 [0] : vector<7x128xf32> to vector<128xf32>
    %536 = vector.shape_cast %535 : vector<128xf32> to vector<1x128xf32>
    %537 = vector.broadcast %536 : vector<1x128xf32> to vector<7x128xf32>
    %538 = arith.subf %532, %537 : vector<7x128xf32>
    %539 = math.exp %538 : vector<7x128xf32>
    %540 = vector.extract_strided_slice %539 {offsets = [0, 0], sizes = [1, 128], strides = [1, 1]} : vector<7x128xf32> to vector<1x128xf32>
    %541 = vector.broadcast %540 : vector<1x128xf32> to vector<7x128xf32>
    %542 = arith.mulf %103, %541 : vector<7x128xf32>
    %543 = vector.extract_strided_slice %539 {offsets = [1, 0], sizes = [1, 128], strides = [1, 1]} : vector<7x128xf32> to vector<1x128xf32>
    %544 = vector.broadcast %543 : vector<1x128xf32> to vector<7x128xf32>
    %545 = arith.mulf %106, %544 : vector<7x128xf32>
    %546 = arith.addf %542, %545 : vector<7x128xf32>
    %547 = vector.extract_strided_slice %539 {offsets = [2, 0], sizes = [1, 128], strides = [1, 1]} : vector<7x128xf32> to vector<1x128xf32>
    %548 = vector.broadcast %547 : vector<1x128xf32> to vector<7x128xf32>
    %549 = arith.mulf %109, %548 : vector<7x128xf32>
    %550 = arith.addf %546, %549 : vector<7x128xf32>
    %551 = vector.extract_strided_slice %539 {offsets = [3, 0], sizes = [1, 128], strides = [1, 1]} : vector<7x128xf32> to vector<1x128xf32>
    %552 = vector.broadcast %551 : vector<1x128xf32> to vector<7x128xf32>
    %553 = arith.mulf %112, %552 : vector<7x128xf32>
    %554 = arith.addf %550, %553 : vector<7x128xf32>
    %555 = vector.extract_strided_slice %539 {offsets = [4, 0], sizes = [1, 128], strides = [1, 1]} : vector<7x128xf32> to vector<1x128xf32>
    %556 = vector.broadcast %555 : vector<1x128xf32> to vector<7x128xf32>
    %557 = arith.mulf %115, %556 : vector<7x128xf32>
    %558 = arith.addf %554, %557 : vector<7x128xf32>
    %559 = vector.extract_strided_slice %539 {offsets = [5, 0], sizes = [1, 128], strides = [1, 1]} : vector<7x128xf32> to vector<1x128xf32>
    %560 = vector.broadcast %559 : vector<1x128xf32> to vector<7x128xf32>
    %561 = arith.mulf %118, %560 : vector<7x128xf32>
    %562 = arith.addf %558, %561 : vector<7x128xf32>
    %563 = vector.extract_strided_slice %539 {offsets = [6, 0], sizes = [1, 128], strides = [1, 1]} : vector<7x128xf32> to vector<1x128xf32>
    %564 = vector.broadcast %563 : vector<1x128xf32> to vector<7x128xf32>
    %565 = arith.mulf %121, %564 : vector<7x128xf32>
    %566 = arith.addf %562, %565 : vector<7x128xf32>
    %cst_131 = arith.constant 1.000000e-30 : f32
    %567 = vector.broadcast %cst_131 : f32 to vector<7x128xf32>
    %568 = arith.maximumf %566, %567 : vector<7x128xf32>
    %569 = vector.broadcast %536 : vector<1x128xf32> to vector<7x128xf32>
    %570 = arith.addf %534, %569 : vector<7x128xf32>
    %571 = math.log %568 : vector<7x128xf32>
    %572 = arith.addf %570, %571 : vector<7x128xf32>
    %c9_i32 = arith.constant 9 : i32
    %573 = vector.broadcast %c9_i32 : i32 to vector<1x128xi32>
    %574 = arith.cmpi sgt, %2, %573 : vector<1x128xi32>
    %575 = vector.shape_cast %574 : vector<1x128xi1> to vector<1x128xi1>
    %576 = vector.broadcast %575 : vector<1x128xi1> to vector<7x128xi1>
    %577 = arith.select %576, %572, %532 : vector<7x128xi1>, vector<7x128xf32>
    %c10_132 = arith.constant 10 : index
    %c0_133 = arith.constant 0 : index
    %c0_134 = arith.constant 0 : index
    %578 = vector.load %arg11[%c10_132, %c0_133, %c0_134] : memref<12x7x128xf32, #tpu.memory_space<vmem>>, vector<1x7x128xf32>
    %579 = vector.shape_cast %578 : vector<1x7x128xf32> to vector<7x128xf32>
    %cst_135 = arith.constant dense<0xFF800000> : vector<128xf32>
    %580 = vector.multi_reduction <maximumf>, %577, %cst_135 [0] : vector<7x128xf32> to vector<128xf32>
    %581 = vector.shape_cast %580 : vector<128xf32> to vector<1x128xf32>
    %582 = vector.broadcast %581 : vector<1x128xf32> to vector<7x128xf32>
    %583 = arith.subf %577, %582 : vector<7x128xf32>
    %584 = math.exp %583 : vector<7x128xf32>
    %585 = vector.extract_strided_slice %584 {offsets = [0, 0], sizes = [1, 128], strides = [1, 1]} : vector<7x128xf32> to vector<1x128xf32>
    %586 = vector.broadcast %585 : vector<1x128xf32> to vector<7x128xf32>
    %587 = arith.mulf %103, %586 : vector<7x128xf32>
    %588 = vector.extract_strided_slice %584 {offsets = [1, 0], sizes = [1, 128], strides = [1, 1]} : vector<7x128xf32> to vector<1x128xf32>
    %589 = vector.broadcast %588 : vector<1x128xf32> to vector<7x128xf32>
    %590 = arith.mulf %106, %589 : vector<7x128xf32>
    %591 = arith.addf %587, %590 : vector<7x128xf32>
    %592 = vector.extract_strided_slice %584 {offsets = [2, 0], sizes = [1, 128], strides = [1, 1]} : vector<7x128xf32> to vector<1x128xf32>
    %593 = vector.broadcast %592 : vector<1x128xf32> to vector<7x128xf32>
    %594 = arith.mulf %109, %593 : vector<7x128xf32>
    %595 = arith.addf %591, %594 : vector<7x128xf32>
    %596 = vector.extract_strided_slice %584 {offsets = [3, 0], sizes = [1, 128], strides = [1, 1]} : vector<7x128xf32> to vector<1x128xf32>
    %597 = vector.broadcast %596 : vector<1x128xf32> to vector<7x128xf32>
    %598 = arith.mulf %112, %597 : vector<7x128xf32>
    %599 = arith.addf %595, %598 : vector<7x128xf32>
    %600 = vector.extract_strided_slice %584 {offsets = [4, 0], sizes = [1, 128], strides = [1, 1]} : vector<7x128xf32> to vector<1x128xf32>
    %601 = vector.broadcast %600 : vector<1x128xf32> to vector<7x128xf32>
    %602 = arith.mulf %115, %601 : vector<7x128xf32>
    %603 = arith.addf %599, %602 : vector<7x128xf32>
    %604 = vector.extract_strided_slice %584 {offsets = [5, 0], sizes = [1, 128], strides = [1, 1]} : vector<7x128xf32> to vector<1x128xf32>
    %605 = vector.broadcast %604 : vector<1x128xf32> to vector<7x128xf32>
    %606 = arith.mulf %118, %605 : vector<7x128xf32>
    %607 = arith.addf %603, %606 : vector<7x128xf32>
    %608 = vector.extract_strided_slice %584 {offsets = [6, 0], sizes = [1, 128], strides = [1, 1]} : vector<7x128xf32> to vector<1x128xf32>
    %609 = vector.broadcast %608 : vector<1x128xf32> to vector<7x128xf32>
    %610 = arith.mulf %121, %609 : vector<7x128xf32>
    %611 = arith.addf %607, %610 : vector<7x128xf32>
    %cst_136 = arith.constant 1.000000e-30 : f32
    %612 = vector.broadcast %cst_136 : f32 to vector<7x128xf32>
    %613 = arith.maximumf %611, %612 : vector<7x128xf32>
    %614 = vector.broadcast %581 : vector<1x128xf32> to vector<7x128xf32>
    %615 = arith.addf %579, %614 : vector<7x128xf32>
    %616 = math.log %613 : vector<7x128xf32>
    %617 = arith.addf %615, %616 : vector<7x128xf32>
    %c10_i32 = arith.constant 10 : i32
    %618 = vector.broadcast %c10_i32 : i32 to vector<1x128xi32>
    %619 = arith.cmpi sgt, %2, %618 : vector<1x128xi32>
    %620 = vector.shape_cast %619 : vector<1x128xi1> to vector<1x128xi1>
    %621 = vector.broadcast %620 : vector<1x128xi1> to vector<7x128xi1>
    %622 = arith.select %621, %617, %577 : vector<7x128xi1>, vector<7x128xf32>
    %c11_137 = arith.constant 11 : index
    %c0_138 = arith.constant 0 : index
    %c0_139 = arith.constant 0 : index
    %623 = vector.load %arg11[%c11_137, %c0_138, %c0_139] : memref<12x7x128xf32, #tpu.memory_space<vmem>>, vector<1x7x128xf32>
    %624 = vector.shape_cast %623 : vector<1x7x128xf32> to vector<7x128xf32>
    %cst_140 = arith.constant dense<0xFF800000> : vector<128xf32>
    %625 = vector.multi_reduction <maximumf>, %622, %cst_140 [0] : vector<7x128xf32> to vector<128xf32>
    %626 = vector.shape_cast %625 : vector<128xf32> to vector<1x128xf32>
    %627 = vector.broadcast %626 : vector<1x128xf32> to vector<7x128xf32>
    %628 = arith.subf %622, %627 : vector<7x128xf32>
    %629 = math.exp %628 : vector<7x128xf32>
    %630 = vector.extract_strided_slice %629 {offsets = [0, 0], sizes = [1, 128], strides = [1, 1]} : vector<7x128xf32> to vector<1x128xf32>
    %631 = vector.broadcast %630 : vector<1x128xf32> to vector<7x128xf32>
    %632 = arith.mulf %103, %631 : vector<7x128xf32>
    %633 = vector.extract_strided_slice %629 {offsets = [1, 0], sizes = [1, 128], strides = [1, 1]} : vector<7x128xf32> to vector<1x128xf32>
    %634 = vector.broadcast %633 : vector<1x128xf32> to vector<7x128xf32>
    %635 = arith.mulf %106, %634 : vector<7x128xf32>
    %636 = arith.addf %632, %635 : vector<7x128xf32>
    %637 = vector.extract_strided_slice %629 {offsets = [2, 0], sizes = [1, 128], strides = [1, 1]} : vector<7x128xf32> to vector<1x128xf32>
    %638 = vector.broadcast %637 : vector<1x128xf32> to vector<7x128xf32>
    %639 = arith.mulf %109, %638 : vector<7x128xf32>
    %640 = arith.addf %636, %639 : vector<7x128xf32>
    %641 = vector.extract_strided_slice %629 {offsets = [3, 0], sizes = [1, 128], strides = [1, 1]} : vector<7x128xf32> to vector<1x128xf32>
    %642 = vector.broadcast %641 : vector<1x128xf32> to vector<7x128xf32>
    %643 = arith.mulf %112, %642 : vector<7x128xf32>
    %644 = arith.addf %640, %643 : vector<7x128xf32>
    %645 = vector.extract_strided_slice %629 {offsets = [4, 0], sizes = [1, 128], strides = [1, 1]} : vector<7x128xf32> to vector<1x128xf32>
    %646 = vector.broadcast %645 : vector<1x128xf32> to vector<7x128xf32>
    %647 = arith.mulf %115, %646 : vector<7x128xf32>
    %648 = arith.addf %644, %647 : vector<7x128xf32>
    %649 = vector.extract_strided_slice %629 {offsets = [5, 0], sizes = [1, 128], strides = [1, 1]} : vector<7x128xf32> to vector<1x128xf32>
    %650 = vector.broadcast %649 : vector<1x128xf32> to vector<7x128xf32>
    %651 = arith.mulf %118, %650 : vector<7x128xf32>
    %652 = arith.addf %648, %651 : vector<7x128xf32>
    %653 = vector.extract_strided_slice %629 {offsets = [6, 0], sizes = [1, 128], strides = [1, 1]} : vector<7x128xf32> to vector<1x128xf32>
    %654 = vector.broadcast %653 : vector<1x128xf32> to vector<7x128xf32>
    %655 = arith.mulf %121, %654 : vector<7x128xf32>
    %656 = arith.addf %652, %655 : vector<7x128xf32>
    %cst_141 = arith.constant 1.000000e-30 : f32
    %657 = vector.broadcast %cst_141 : f32 to vector<7x128xf32>
    %658 = arith.maximumf %656, %657 : vector<7x128xf32>
    %659 = vector.broadcast %626 : vector<1x128xf32> to vector<7x128xf32>
    %660 = arith.addf %624, %659 : vector<7x128xf32>
    %661 = math.log %658 : vector<7x128xf32>
    %662 = arith.addf %660, %661 : vector<7x128xf32>
    %c11_i32 = arith.constant 11 : i32
    %663 = vector.broadcast %c11_i32 : i32 to vector<1x128xi32>
    %664 = arith.cmpi sgt, %2, %663 : vector<1x128xi32>
    %665 = vector.shape_cast %664 : vector<1x128xi1> to vector<1x128xi1>
    %666 = vector.broadcast %665 : vector<1x128xi1> to vector<7x128xi1>
    %667 = arith.select %666, %662, %622 : vector<7x128xi1>, vector<7x128xf32>
    %c0_142 = arith.constant 0 : index
    %c0_143 = arith.constant 0 : index
    %668 = vector.load %arg5[%c0_142, %c0_143] : memref<7x1xf32, #tpu.memory_space<vmem>>, vector<7x1xf32>
    %669 = vector.broadcast %668 : vector<7x1xf32> to vector<7x128xf32>
    %670 = arith.addf %667, %669 : vector<7x128xf32>
    %cst_144 = arith.constant dense<0xFF800000> : vector<128xf32>
    %671 = vector.multi_reduction <maximumf>, %670, %cst_144 [0] : vector<7x128xf32> to vector<128xf32>
    %672 = vector.shape_cast %671 : vector<128xf32> to vector<1x128xf32>
    %673 = vector.broadcast %672 : vector<1x128xf32> to vector<7x128xf32>
    %674 = arith.subf %670, %673 : vector<7x128xf32>
    %675 = math.exp %674 : vector<7x128xf32>
    %cst_145 = arith.constant dense<0.000000e+00> : vector<128xf32>
    %676 = vector.multi_reduction <add>, %675, %cst_145 [0] : vector<7x128xf32> to vector<128xf32>
    %677 = vector.shape_cast %676 : vector<128xf32> to vector<1x128xf32>
    %678 = math.log %677 : vector<1x128xf32>
    %679 = arith.addf %672, %678 : vector<1x128xf32>
    %c0_146 = arith.constant 0 : index
    %c0_147 = arith.constant 0 : index
    %c0_148 = arith.constant 0 : index
    %680 = vector.load %arg7[%c0_146, %c0_147, %c0_148] : memref<13x1x128xi32, #tpu.memory_space<vmem>>, vector<13x1x128xi32>
    %c0_149 = arith.constant 0 : index
    %c0_150 = arith.constant 0 : index
    %c0_151 = arith.constant 0 : index
    %681 = vector.load %arg8[%c0_149, %c0_150, %c0_151] : memref<13x1x128xi32, #tpu.memory_space<vmem>>, vector<13x1x128xi32>
    %682 = vector.extract_strided_slice %680 {offsets = [0, 0, 0], sizes = [12, 1, 128], strides = [1, 1, 1]} : vector<13x1x128xi32> to vector<12x1x128xi32>
    %c0_152 = arith.constant 0 : index
    %c0_153 = arith.constant 0 : index
    %c0_154 = arith.constant 0 : index
    %683 = vector.load %arg11[%c0_152, %c0_153, %c0_154] : memref<12x7x128xf32, #tpu.memory_space<vmem>>, vector<12x7x128xf32>
    %684 = tpu.iota {dimensions = array<i32: 1>} : vector<12x7x128xi32>
    %685 = vector.broadcast %682 : vector<12x1x128xi32> to vector<12x7x128xi32>
    %686 = arith.cmpi eq, %684, %685 : vector<12x7x128xi32>
    %687 = arith.extui %686 : vector<12x7x128xi1> to vector<12x7x128xi32>
    %688 = arith.sitofp %687 : vector<12x7x128xi32> to vector<12x7x128xf32>
    %689 = arith.mulf %683, %688 : vector<12x7x128xf32>
    %cst_155 = arith.constant dense<0.000000e+00> : vector<12x128xf32>
    %690 = vector.multi_reduction <add>, %689, %cst_155 [1] : vector<12x7x128xf32> to vector<12x128xf32>
    %691 = vector.shape_cast %690 : vector<12x128xf32> to vector<12x1x128xf32>
    %692 = tpu.iota {dimensions = array<i32: 0>} : vector<12x1x128xi32>
    %693 = vector.broadcast %3 : vector<1x1x128xi32> to vector<12x1x128xi32>
    %694 = arith.cmpi slt, %692, %693 : vector<12x1x128xi32>
    %cst_156 = arith.constant 0.000000e+00 : f32
    %695 = vector.broadcast %cst_156 : f32 to vector<12x1x128xf32>
    %696 = arith.select %694, %691, %695 : vector<12x1x128xi1>, vector<12x1x128xf32>
    %cst_157 = arith.constant dense<0.000000e+00> : vector<1x128xf32>
    %697 = vector.multi_reduction <add>, %696, %cst_157 [0] : vector<12x1x128xf32> to vector<1x128xf32>
    %698 = tpu.iota {dimensions = array<i32: 0>} : vector<13x1x128xi32>
    %c1_i32_158 = arith.constant 1 : i32
    %699 = vector.broadcast %c1_i32_158 : i32 to vector<1x1x128xi32>
    %700 = arith.addi %3, %699 : vector<1x1x128xi32>
    %701 = vector.broadcast %700 : vector<1x1x128xi32> to vector<13x1x128xi32>
    %702 = arith.cmpi slt, %698, %701 : vector<13x1x128xi32>
    %703 = vector.broadcast %3 : vector<1x1x128xi32> to vector<13x1x128xi32>
    %704 = arith.cmpi slt, %698, %703 : vector<13x1x128xi32>
    %c6_i32_159 = arith.constant 6 : i32
    %705 = vector.broadcast %c6_i32_159 : i32 to vector<13x1x128xi32>
    %706 = arith.select %704, %680, %705 : vector<13x1x128xi1>, vector<13x1x128xi32>
    %c6_i32_160 = arith.constant 6 : i32
    %707 = vector.broadcast %c6_i32_160 : i32 to vector<13x1x128xi32>
    %708 = arith.select %702, %681, %707 : vector<13x1x128xi1>, vector<13x1x128xi32>
    %c0_161 = arith.constant 0 : index
    %c0_162 = arith.constant 0 : index
    %709 = vector.load %arg6[%c0_161, %c0_162] : memref<7x7xf32, #tpu.memory_space<vmem>>, vector<7x7xf32>
    %cst_163 = arith.constant 0.000000e+00 : f32
    %710 = vector.broadcast %cst_163 : f32 to vector<13x7x128xf32>
    %c0_i32_164 = arith.constant 0 : i32
    %711 = vector.broadcast %c0_i32_164 : i32 to vector<13x1x128xi32>
    %712 = arith.cmpi eq, %706, %711 : vector<13x1x128xi32>
    %713 = vector.extract_strided_slice %709 {offsets = [0, 0], sizes = [7, 1], strides = [1, 1]} : vector<7x7xf32> to vector<7x1xf32>
    %cst_165 = arith.constant 0.000000e+00 : f32
    %714 = vector.shape_cast %712 : vector<13x1x128xi1> to vector<13x1x128xi1>
    %715 = vector.broadcast %714 : vector<13x1x128xi1> to vector<13x7x128xi1>
    %716 = vector.shape_cast %713 : vector<7x1xf32> to vector<1x7x1xf32>
    %717 = vector.broadcast %716 : vector<1x7x1xf32> to vector<13x7x128xf32>
    %718 = vector.broadcast %cst_165 : f32 to vector<13x7x128xf32>
    %719 = arith.select %715, %717, %718 : vector<13x7x128xi1>, vector<13x7x128xf32>
    %720 = arith.addf %710, %719 : vector<13x7x128xf32>
    %c1_i32_166 = arith.constant 1 : i32
    %721 = vector.broadcast %c1_i32_166 : i32 to vector<13x1x128xi32>
    %722 = arith.cmpi eq, %706, %721 : vector<13x1x128xi32>
    %723 = vector.extract_strided_slice %709 {offsets = [0, 1], sizes = [7, 1], strides = [1, 1]} : vector<7x7xf32> to vector<7x1xf32>
    %cst_167 = arith.constant 0.000000e+00 : f32
    %724 = vector.shape_cast %722 : vector<13x1x128xi1> to vector<13x1x128xi1>
    %725 = vector.broadcast %724 : vector<13x1x128xi1> to vector<13x7x128xi1>
    %726 = vector.shape_cast %723 : vector<7x1xf32> to vector<1x7x1xf32>
    %727 = vector.broadcast %726 : vector<1x7x1xf32> to vector<13x7x128xf32>
    %728 = vector.broadcast %cst_167 : f32 to vector<13x7x128xf32>
    %729 = arith.select %725, %727, %728 : vector<13x7x128xi1>, vector<13x7x128xf32>
    %730 = arith.addf %720, %729 : vector<13x7x128xf32>
    %c2_i32_168 = arith.constant 2 : i32
    %731 = vector.broadcast %c2_i32_168 : i32 to vector<13x1x128xi32>
    %732 = arith.cmpi eq, %706, %731 : vector<13x1x128xi32>
    %733 = vector.extract_strided_slice %709 {offsets = [0, 2], sizes = [7, 1], strides = [1, 1]} : vector<7x7xf32> to vector<7x1xf32>
    %cst_169 = arith.constant 0.000000e+00 : f32
    %734 = vector.shape_cast %732 : vector<13x1x128xi1> to vector<13x1x128xi1>
    %735 = vector.broadcast %734 : vector<13x1x128xi1> to vector<13x7x128xi1>
    %736 = vector.shape_cast %733 : vector<7x1xf32> to vector<1x7x1xf32>
    %737 = vector.broadcast %736 : vector<1x7x1xf32> to vector<13x7x128xf32>
    %738 = vector.broadcast %cst_169 : f32 to vector<13x7x128xf32>
    %739 = arith.select %735, %737, %738 : vector<13x7x128xi1>, vector<13x7x128xf32>
    %740 = arith.addf %730, %739 : vector<13x7x128xf32>
    %c3_i32_170 = arith.constant 3 : i32
    %741 = vector.broadcast %c3_i32_170 : i32 to vector<13x1x128xi32>
    %742 = arith.cmpi eq, %706, %741 : vector<13x1x128xi32>
    %743 = vector.extract_strided_slice %709 {offsets = [0, 3], sizes = [7, 1], strides = [1, 1]} : vector<7x7xf32> to vector<7x1xf32>
    %cst_171 = arith.constant 0.000000e+00 : f32
    %744 = vector.shape_cast %742 : vector<13x1x128xi1> to vector<13x1x128xi1>
    %745 = vector.broadcast %744 : vector<13x1x128xi1> to vector<13x7x128xi1>
    %746 = vector.shape_cast %743 : vector<7x1xf32> to vector<1x7x1xf32>
    %747 = vector.broadcast %746 : vector<1x7x1xf32> to vector<13x7x128xf32>
    %748 = vector.broadcast %cst_171 : f32 to vector<13x7x128xf32>
    %749 = arith.select %745, %747, %748 : vector<13x7x128xi1>, vector<13x7x128xf32>
    %750 = arith.addf %740, %749 : vector<13x7x128xf32>
    %c4_i32_172 = arith.constant 4 : i32
    %751 = vector.broadcast %c4_i32_172 : i32 to vector<13x1x128xi32>
    %752 = arith.cmpi eq, %706, %751 : vector<13x1x128xi32>
    %753 = vector.extract_strided_slice %709 {offsets = [0, 4], sizes = [7, 1], strides = [1, 1]} : vector<7x7xf32> to vector<7x1xf32>
    %cst_173 = arith.constant 0.000000e+00 : f32
    %754 = vector.shape_cast %752 : vector<13x1x128xi1> to vector<13x1x128xi1>
    %755 = vector.broadcast %754 : vector<13x1x128xi1> to vector<13x7x128xi1>
    %756 = vector.shape_cast %753 : vector<7x1xf32> to vector<1x7x1xf32>
    %757 = vector.broadcast %756 : vector<1x7x1xf32> to vector<13x7x128xf32>
    %758 = vector.broadcast %cst_173 : f32 to vector<13x7x128xf32>
    %759 = arith.select %755, %757, %758 : vector<13x7x128xi1>, vector<13x7x128xf32>
    %760 = arith.addf %750, %759 : vector<13x7x128xf32>
    %c5_i32_174 = arith.constant 5 : i32
    %761 = vector.broadcast %c5_i32_174 : i32 to vector<13x1x128xi32>
    %762 = arith.cmpi eq, %706, %761 : vector<13x1x128xi32>
    %763 = vector.extract_strided_slice %709 {offsets = [0, 5], sizes = [7, 1], strides = [1, 1]} : vector<7x7xf32> to vector<7x1xf32>
    %cst_175 = arith.constant 0.000000e+00 : f32
    %764 = vector.shape_cast %762 : vector<13x1x128xi1> to vector<13x1x128xi1>
    %765 = vector.broadcast %764 : vector<13x1x128xi1> to vector<13x7x128xi1>
    %766 = vector.shape_cast %763 : vector<7x1xf32> to vector<1x7x1xf32>
    %767 = vector.broadcast %766 : vector<1x7x1xf32> to vector<13x7x128xf32>
    %768 = vector.broadcast %cst_175 : f32 to vector<13x7x128xf32>
    %769 = arith.select %765, %767, %768 : vector<13x7x128xi1>, vector<13x7x128xf32>
    %770 = arith.addf %760, %769 : vector<13x7x128xf32>
    %c6_i32_176 = arith.constant 6 : i32
    %771 = vector.broadcast %c6_i32_176 : i32 to vector<13x1x128xi32>
    %772 = arith.cmpi eq, %706, %771 : vector<13x1x128xi32>
    %773 = vector.extract_strided_slice %709 {offsets = [0, 6], sizes = [7, 1], strides = [1, 1]} : vector<7x7xf32> to vector<7x1xf32>
    %cst_177 = arith.constant 0.000000e+00 : f32
    %774 = vector.shape_cast %772 : vector<13x1x128xi1> to vector<13x1x128xi1>
    %775 = vector.broadcast %774 : vector<13x1x128xi1> to vector<13x7x128xi1>
    %776 = vector.shape_cast %773 : vector<7x1xf32> to vector<1x7x1xf32>
    %777 = vector.broadcast %776 : vector<1x7x1xf32> to vector<13x7x128xf32>
    %778 = vector.broadcast %cst_177 : f32 to vector<13x7x128xf32>
    %779 = arith.select %775, %777, %778 : vector<13x7x128xi1>, vector<13x7x128xf32>
    %780 = arith.addf %770, %779 : vector<13x7x128xf32>
    %781 = tpu.iota {dimensions = array<i32: 1>} : vector<13x7x128xi32>
    %782 = vector.broadcast %708 : vector<13x1x128xi32> to vector<13x7x128xi32>
    %783 = arith.cmpi eq, %781, %782 : vector<13x7x128xi32>
    %784 = arith.extui %783 : vector<13x7x128xi1> to vector<13x7x128xi32>
    %785 = arith.sitofp %784 : vector<13x7x128xi32> to vector<13x7x128xf32>
    %786 = arith.mulf %780, %785 : vector<13x7x128xf32>
    %cst_178 = arith.constant dense<0.000000e+00> : vector<13x128xf32>
    %787 = vector.multi_reduction <add>, %786, %cst_178 [1] : vector<13x7x128xf32> to vector<13x128xf32>
    %788 = vector.shape_cast %787 : vector<13x128xf32> to vector<13x1x128xf32>
    %cst_179 = arith.constant 0.000000e+00 : f32
    %789 = vector.broadcast %cst_179 : f32 to vector<13x1x128xf32>
    %790 = arith.select %702, %788, %789 : vector<13x1x128xi1>, vector<13x1x128xf32>
    %cst_180 = arith.constant dense<0.000000e+00> : vector<1x128xf32>
    %791 = vector.multi_reduction <add>, %790, %cst_180 [0] : vector<13x1x128xf32> to vector<1x128xf32>
    %792 = arith.addf %697, %791 : vector<1x128xf32>
    %793 = arith.subf %679, %792 : vector<1x128xf32>
    %c0_181 = arith.constant 0 : index
    %c0_182 = arith.constant 0 : index
    %794 = vector.load %arg10[%c0_181, %c0_182] : memref<1x128xf32, #tpu.memory_space<vmem>>, vector<1x128xf32>
    tpu.vector_store %arg10[%c0_181, %c0_182], %793 {strides = array<i32>} : memref<1x128xf32, #tpu.memory_space<vmem>>, vector<1x128xf32>,
    return
  }
  func.func @transform_0(%arg0: i32) -> (i32, i32, i32) {
    %c0_i32 = arith.constant 0 : i32
    %c0_i32_0 = arith.constant 0 : i32
    %c0_i32_1 = arith.constant 0 : i32
    return %c0_i32, %c0_i32_0, %arg0 : i32, i32, i32
  }
  func.func @transform_1(%arg0: i32) -> (i32, i32) {
    %c0_i32 = arith.constant 0 : i32
    %c0_i32_0 = arith.constant 0 : i32
    %c0_i32_1 = arith.constant 0 : i32
    return %c0_i32, %c0_i32_0 : i32, i32
  }
  func.func @transform_2(%arg0: i32) -> (i32, i32) {
    %c0_i32 = arith.constant 0 : i32
    %c0_i32_0 = arith.constant 0 : i32
    %c0_i32_1 = arith.constant 0 : i32
    return %c0_i32, %c0_i32_0 : i32, i32
  }
  func.func @transform_3(%arg0: i32) -> (i32, i32) {
    %c0_i32 = arith.constant 0 : i32
    %c0_i32_0 = arith.constant 0 : i32
    %c0_i32_1 = arith.constant 0 : i32
    return %c0_i32, %c0_i32_0 : i32, i32
  }
  func.func @transform_4(%arg0: i32) -> (i32, i32) {
    %c0_i32 = arith.constant 0 : i32
    %c0_i32_0 = arith.constant 0 : i32
    %c0_i32_1 = arith.constant 0 : i32
    return %c0_i32, %c0_i32_0 : i32, i32
  }
  func.func @transform_5(%arg0: i32) -> (i32, i32) {
    %c0_i32 = arith.constant 0 : i32
    %c0_i32_0 = arith.constant 0 : i32
    %c0_i32_1 = arith.constant 0 : i32
    return %c0_i32, %c0_i32_0 : i32, i32
  }
  func.func @transform_6(%arg0: i32) -> (i32, i32, i32) {
    %c0_i32 = arith.constant 0 : i32
    %c0_i32_0 = arith.constant 0 : i32
    %c0_i32_1 = arith.constant 0 : i32
    return %c0_i32, %c0_i32_0, %arg0 : i32, i32, i32
  }
  func.func @transform_7(%arg0: i32) -> (i32, i32, i32) {
    %c0_i32 = arith.constant 0 : i32
    %c0_i32_0 = arith.constant 0 : i32
    %c0_i32_1 = arith.constant 0 : i32
    return %c0_i32, %c0_i32_0, %arg0 : i32, i32, i32
  }
  func.func @transform_8(%arg0: i32) -> (i32, i32) {
    %c0_i32 = arith.constant 0 : i32
    %c0_i32_0 = arith.constant 0 : i32
    return %c0_i32, %arg0 : i32, i32
  }
  func.func @transform_9(%arg0: i32) -> (i32, i32) {
    %c0_i32 = arith.constant 0 : i32
    %c0_i32_0 = arith.constant 0 : i32
    return %c0_i32, %arg0 : i32, i32
  }
}

</mosaic_0001>

<bundles_post_ra>
// kernel: tpu_custom_call.1
= control target key start
LH: loop header
LB: loop body
LE: loop exit
PB: predicated region body
PF: predicated region fallthrough
CT: control target
= control target key end

     0   :  { %s5243_s0 = inlined_call_operand.hbm [shape: bf16[12,32,256], index: 0, kind: input, shape index: {}]   ;;  %s5244_s1 = inlined_call_operand.hbm [shape: bf16[7,32], index: 1, kind: input, shape index: {}]   ;;  %s5245_s2 = inlined_call_operand.vmem [shape: f32[7,1], index: 2, kind: input, shape index: {}]   ;;  %s5246_s3 = inlined_call_operand.vmem [shape: f32[7,7], index: 3, kind: input, shape index: {}]   ;;  %s5247_s4 = inlined_call_operand.vmem [shape: f32[7,1], index: 4, kind: input, shape index: {}]   ;;  %s5248_s5 = inlined_call_operand.vmem [shape: f32[7,7], index: 5, kind: input, shape index: {}]   ;;  %s5249_s6 = inlined_call_operand.hbm [shape: s32[13,1,256], index: 6, kind: input, shape index: {}]   ;;  %s5250_s7 = inlined_call_operand.hbm [shape: s32[13,1,256], index: 7, kind: input, shape index: {}]   ;;  %s5251_s8 = inlined_call_operand.vmem [shape: s32[1,256], index: 8, kind: input, shape index: {}]   ;;  %s5252_s9 = inlined_call_operand.hbm [shape: f32[1,256], index: 9, kind: output, shape index: {}]  }
   0x1   :  { %5314 = sst [smem:[#allocation54_spill]] %s5243_s0 }
   0x2   :  { %5315 = sst [smem:[#allocation55_spill]] %s5244_s1 }
   0x3   :  { %5316 = sst [smem:[#allocation56_spill]] %s5249_s6 }
   0x4   :  { %14 = vsyncpa [#allocation4], 0 }
   0x5   :  { %16 = vsyncpa [#allocation4 + $0x1], 0 }
   0x6   :  { %17 = vsyncpa [#allocation7], 0 }
   0x7   :  { %18 = vsyncpa [#allocation5], 0 }
   0x8   :  { %20 = vsyncpa [#allocation5 + $0x1], 0  ;;  %s3212_s30 = smov 0   ;;  %s3214_s10 = smov 0  }
   0x9   :  { %s3216_s11 = smov 0   ;;  %s3218_s12 = smov 0  }
   0xa LB: > { %5317 = sst [smem:[#allocation15_spill]] %s3140_s11  ;;  %s3233_s13 = sadd.s32 1, %s3144_s12   ;;  %s3144_s12 = sphi %s3218_s12, %s5675_s12   ;;  %s3140_s11 = sphi %s3216_s11, %s5677_s11   ;;  %s3136_s10 = sphi %s3214_s10, %s5679_s10   ;;  %s3132_s30 = sphi %s3212_s30, %s5678_s30  }
   0xb   : > { %5318 = sst [smem:[#allocation16_spill]] %s3233_s13  ;;  %s33_s14 = sadd.s32 1, %s3140_s11 }
   0xc   : > { %s30_s15 = ssub.s32 %s3144_s12, %s3233_s13  ;;  %p40_p0 = scmp.ne.s32.totalorder %s3140_s11, %s3136_s10 }
   0xd   : > { %p31_p1 = scmp.eq.s32.totalorder %s30_s15, 0  ;;  %p41_p2 = scmp.eq.s32.totalorder %s3144_s12, 0 }
   0xe   : > { %p2817_p4 = scmp.lt.s32.totalorder %s3144_s12, 2  ;;  %s303_s17 = sand.u32 1, %s3144_s12  }
   0xf   : > { %s3244_s16 = scalar_select %p31_p1, %s3140_s11, %s33_s14  }
  0x10   : > { %p42_p5 = por %p41_p2, %p40_p0  ;;  %s305_s18 = sand.u32 1, %s3140_s11  }
  0x11   : > { %5319 = sst [smem:[#allocation17_spill]] %s3244_s16  ;;  %s2781_s19 = smul.u32 192, %s305_s18 }
  0x12   : > { %s2575_s20 = sshll.u32 %s3144_s12, 2  ;;  %s5320_s0 = sld [smem:[#allocation54_spill]] }
  0x13   : > { %p3255_p6 = pnand %p2817_p4, %p42_p5  ;;  %s307_s26 = scalar_lea.vmem [#allocation3], %s2781_s19 }
  0x14   : > { %s314_s27 = sshll.u32 %s307_s26, 4  ;;  %s3259_s28 = smul.u32 13, %s305_s18  ;;  %s315_s27 = int_to_ptr.vmem [resolvable:$true] %s314_s27 }
  0x15   : > { %s3261_s29 = scalar_lea.sflag [#allocation4], %s303_s17  ;;  %p2954_p8 = pneg %p3255_p6 }
  0x18   : > { %s311_s23 = scalar_lea.hbm %s5320_s0, %s2575_s20  ;;  %s2957_s19 = scalar_lea.hbm %s5320_s0, 384 }
  0x19   : > { %s312_s25 = sshll.u32 %s311_s23, 4  ;;  %s313_s25 = int_to_ptr.hbm [resolvable:$true] %s312_s25 }
  0x1a   : > { %s2950_s14 = sshra.s32 %s313_s25, 4  ;;  %s2951_s14 = int_to_ptr.hbm [resolvable:$true] %s2950_s14 }
  0x1b   : > { %s2952_s15 = scalar_lea.hbm %s2951_s14, 192  ;;  %p2958_p11 = scmp.lt.s32.totalorder %s2951_s14, %s5320_s0 }
  0x1c   : > { %p2953_p7 = scmp.ne.s32.totalorder %s2951_s14, %s2952_s15  ;;  %p2959_p12 = scmp.lt.s32.totalorder %s2957_s19, %s2952_s15 }
  0x1e   : > { %p2955_p9 = pnand %p2954_p8, %p2953_p7  ;;  %p2960_p13 = por %p2959_p12, %p2958_p11 }
  0x20   : > { %p2956_p10 = pneg %p2955_p9 }
  0x22   : > { %p2961_p1 = pnand %p2960_p13, %p2956_p10 }
  0x24   : > { %2964 = shalt.err (!%p2961_p1)
}
  0x25   : > { %s3146_s17 = smov 128   ;;  %s3147_s18 = smov 64  }
  0x26   : > { %s3148_s26 = smov 4   ;;  %s5322_s6 = sld [smem:[#allocation56_spill]] }
  0x27   : > { %2805 = dma.hbm_to_vmem [thread:$0]  (!%p3255_p6), %s313_s25, 3072, %s315_s27, %s3261_s29, %s3146_s17, %s3147_s18, %s3148_s26  }
  0x28   : > { %s328_s14 = scalar_lea.vmem [#allocation8], %s3259_s28 }
  0x29   : > { %s334_s15 = sshll.u32 %s328_s14, 4  ;;  %s335_s15 = int_to_ptr.vmem [resolvable:$true] %s334_s15 }
  0x2c   : > { %s331_s16 = scalar_lea.hbm %s5322_s6, %s3144_s12  ;;  %s2987_s25 = scalar_lea.hbm %s5322_s6, 26 }
  0x2d   : > { %s332_s22 = sshll.u32 %s331_s16, 4  ;;  %s333_s22 = int_to_ptr.hbm [resolvable:$true] %s332_s22 }
  0x2e   : > { %s2980_s19 = sshra.s32 %s333_s22, 4  ;;  %s2981_s19 = int_to_ptr.hbm [resolvable:$true] %s2980_s19 }
  0x2f   : > { %s2982_s23 = scalar_lea.hbm %s2981_s19, 13  ;;  %p2988_p7 = scmp.lt.s32.totalorder %s2981_s19, %s5322_s6 }
  0x30   : > { %p2983_p2 = scmp.ne.s32.totalorder %s2981_s19, %s2982_s23  ;;  %p2989_p9 = scmp.lt.s32.totalorder %s2987_s25, %s2982_s23 }
  0x32   : > { %p2985_p4 = pnand %p2983_p2, %p2954_p8  ;;  %p2990_p10 = por %p2989_p9, %p2988_p7 }
  0x34   : > { %p2986_p5 = pneg %p2985_p4 }
  0x36   : > { %p2991_p11 = pnand %p2990_p10, %p2986_p5 }
  0x38   : > { %2994 = shalt.err (!%p2991_p11)
}
  0x39   : > { %s5255_s16 = smov 32   ;;  %s5256_s0 = smov 16  }
  0x3a   : > { %s5257_s13 = smov 1   ;;  %s3298_s18 = sadd.s32 4294967295, %s3144_s12  }
  0x3b   : > { %2808 = dma.hbm_to_vmem [thread:$0]  (!%p3255_p6), %s333_s22, 208, %s335_s15, %s3261_s29, %s5255_s16, %s5256_s0, %s5257_s13  }
  0x3c   : > { %s2571_s26 = sadd.s32 4294967294, %s3144_s12   ;;  %p46_p12 = scmp.ne.s32.totalorder %s3136_s10, %s3132_s30 }
  0x3d   : > { %p5259_p13 = scmp.eq.s32.totalorder %s3298_s18, 0  ;;  %p253_p1 = scmp.eq.s32.totalorder %s3298_s18, 1 }
  0x3e   : > { %p259_p2 = scmp.eq.s32.totalorder %s2571_s26, 1  ;;  %p2572_p4 = scmp.ge.s32.totalorder %s3144_s12, 1 }
  0x3f   : > { %p3308_p5 = por %p5259_p13, %p46_p12  ;;  %p3315_p7 = por %p253_p1, %p40_p0 }
  0x40   : > { %p3319_p9 = por %p259_p2, %p46_p12  ;;  %p266_p10 = scmp.lt.s32.totalorder %s3144_s12, 3 }
  0x41   : > { %s5326_s1 = sld [smem:[#allocation55_spill]]  ;;  %s3152_s25 = smov [#allocation6]  }
  0x42   : > { %p3327_p11 = pnand %p2572_p4, %p266_p10  ;;  %s280_s27 = sshll.u32 %s3152_s25, 4  ;;  %s281_s27 = int_to_ptr.vmem [resolvable:$true] %s280_s27 }
  0x43   : > { %s351_s16 = scalar_lea.hbm %s5250_s7, %s3144_s12  ;;  %s348_s15 = scalar_lea.vmem [#allocation9], %s3259_s28 }
  0x44   : > { %p2798_p0 = pneg %p3327_p11  ;;  %s352_s14 = sshll.u32 %s351_s16, 4  ;;  %s353_s14 = int_to_ptr.hbm [resolvable:$true] %s352_s14 }
  0x45   : > { %s354_s0 = sshll.u32 %s348_s15, 4  ;;  %s3040_s13 = sshra.s32 %s353_s14, 4  ;;  %s355_s0 = int_to_ptr.vmem [resolvable:$true] %s354_s0  ;;  %s3041_s13 = int_to_ptr.hbm [resolvable:$true] %s3040_s13 }
  0x46   : > { %p2799_p12 = pnand %p2798_p0, %p5259_p13  ;;  %s3047_s17 = scalar_lea.hbm %s5250_s7, 26 }
  0x47   : > { %s278_s19 = sshll.u32 %s5326_s1, 4  ;;  %s3042_s1 = scalar_lea.hbm %s3041_s13, 13  ;;  %s279_s19 = int_to_ptr.hbm [resolvable:$true] %s278_s19 }
  0x48   : > { %2801 = dma.hbm_to_vmem [thread:$0]  (!%p2799_p12), %s279_s19, 64, %s281_s27, [#allocation7]  }
  0x49   : > { %p3043_p1 = scmp.ne.s32.totalorder %s3041_s13, %s3042_s1  ;;  %p3048_p10 = scmp.lt.s32.totalorder %s3041_s13, %s5250_s7 }
  0x4a   : > { %p3049_p0 = scmp.lt.s32.totalorder %s3047_s17, %s3042_s1 }
  0x4b   : > { %p3045_p2 = pnand %p3043_p1, %p2954_p8 }
  0x4c   : > { %p3050_p3 = por %p3049_p0, %p3048_p10 }
  0x4d   : > { %p3046_p4 = pneg %p3045_p2 }
  0x4f   : > { %p3051_p13 = pnand %p3050_p3, %p3046_p4 }
  0x51   : > { %3054 = shalt.err (!%p3051_p13)
}
  0x52   : > { %s5328_s28 = smov 1   ;;  %s5329_s16 = smov 16  }
  0x53   : > { %s5330_s19 = smov 32   ;;  %372 = sbr.rel (%p3327_p11) target bundleno = 910 (0x38e), region = 56 }
  0x54   : > { %2811 = dma.hbm_to_vmem [thread:$0]  (!%p3255_p6), %s353_s14, 208, %s355_s0, %s3261_s29, %s5330_s19, %s5329_s16, %s5328_s28  }
  0x58   : > { %s374_s6 = sand.u32 1, %s3298_s18   ;;  %s3359_s11 = sand.u32 1, %s3136_s10  }
  0x59   : > { %s2784_s1 = smul.u32 192, %s3359_s11  ;;  %s375_s13 = scalar_lea.sflag [#allocation4], %s374_s6 }
  0x5b   : > { %s3362_s27 = scalar_lea.vmem [#allocation3], %s2784_s1 }
  0x5c   : > { %3115 = dma.done.wait (%p3308_p5), %s375_s13, 3072  }
  0x5d   : > { %3117 = vsyncadd (%p3308_p5), %s375_s13, 4294964224  ;;  %p5331_p3 = scmp.eq.s32.totalorder %s3298_s18, 0 }
  0x5f   : > { %3119 = dma.done.wait (%p5331_p3), [#allocation7], 64   ;;  %p5332_p6 = pmov %p5331_p3 }
  0x60   : > { %s2785_s24 = smul.u32 13, %s3359_s11 }
  0x61   : > { %3121 = vsyncadd (%p5332_p6), [#allocation7], 4294967232 }
  0x62   : > { %s3375_s29 = scalar_lea.vmem [#allocation8], %s2785_s24 }
  0x63   : > { %3123 = dma.done.wait (%p3308_p5), %s375_s13, 416  }
  0x64   : > { %3125 = vsyncadd (%p3308_p5), %s375_s13, 4294966880  ;;  %v3153_v0 = vmov 2   ;;  %v5312_v1 = vmov 0   ;;  %v3155_v2 = vmov 4   ;;  %v849_v3 = vld [vmem:[%s5246_s3] sm:$0x7f]  ;;  %v879_v36 = vlaneseq }
  0x65   : > { %2870 = vset.pattern.permute.xlu1 %v3153_v0  ;;  %2868 = vset.pattern.permute.xlu0 %v5312_v1  ;;  %v2758_v4 = vld [vmem:[%s3362_s27 + $0x8] sm:$0xff]  ;;  %v2760_v5 = vld [vmem:[%s3362_s27 + $0x18] sm:$0xff]  ;;  %v2757_v8 = vld [vmem:[%s3362_s27] sm:$0xff]  ;;  %vm479_vm0 = vcmask 261120   ;;  %v3156_v15 = vmov 3   ;;  %v3157_v16 = vmov 1  }
  0x66   : > { %2872 = vset.pattern.permute.xlu2 %v3155_v2  ;;  %860 = vperm.xlu1 %2870, %v849_v3   ;;  %v2762_v6 = vld [vmem:[%s3362_s27 + $0x28] sm:$0xff]  ;;  %v2764_v7 = vld [vmem:[%s3362_s27 + $0x38] sm:$0xff]  ;;  %v2759_v9 = vld [vmem:[%s3362_s27 + $0x10] sm:$0xff]  ;;  %v3158_v25 = vmov 5   ;;  %v3159_v30 = vmov 6   ;;  %v3451_v37 = vshrl.u32 %v879_v36, 7 }
  0x67   : > { %852 = vperm.xlu0 %2868, %v849_v3   ;;  %489 = vmatpush.bf16.msra.mxu0 %v2758_v4  ;;  %v2761_v10 = vld [vmem:[%s3362_s27 + $0x20] sm:$0xff]  ;;  %v2763_v11 = vld [vmem:[%s3362_s27 + $0x30] sm:$0xff]  ;;  %v2766_v12 = vld [vmem:[%s3362_s27 + $0x48] sm:$0xff]  ;;  %v3160_v38 = vmov -100.0   ;;  %vm5275_vm2 = vcmask 1046528   ;;  %p451_p8 = scmp.lt.s32.totalorder %s3298_s18, 1 }
  0x68   : > { %520 = vmatpush.bf16.msra.mxu1 %v2760_v5  ;;  %552 = vmatpush.bf16.msra.mxu2 %v2762_v6  ;;  %v2768_v13 = vld [vmem:[%s3362_s27 + $0x58] sm:$0xff]  ;;  %v3397_v14 = vld [vmem:[#allocation6] sm:$0xf]  ;;  %v2770_v17 = vld [vmem:[%s3362_s27 + $0x68] sm:$0xff]  ;;  %5333 = vst [vmem:[#allocation18_spill] sm:$0xff] %v3451_v37  ;;  %vm881_vm1 = vcmp.eq.s32.totalorder %v3451_v37, 5 }
  0x69   : > { %584 = vmatpush.bf16.msra.mxu3 %v2764_v7  ;;  %868 = vperm.xlu2 %2872, %v849_v3   ;;  %v2772_v18 = vld [vmem:[%s3362_s27 + $0x78] sm:$0xff]  ;;  %v2765_v19 = vld [vmem:[%s3362_s27 + $0x40] sm:$0xff]  ;;  %v2767_v20 = vld [vmem:[%s3362_s27 + $0x50] sm:$0xff]  ;;  %v3454_v39 = vsel %vm881_vm1, 0.0, %v3160_v38  ;;  %s452_s28 = scalar_select %p451_p8, %s3298_s18, 1 }
  0x6a   : > { %v2774_v21 = vld [vmem:[%s3362_s27 + $0x88] sm:$0xff]  ;;  %v2776_v22 = vld [vmem:[%s3362_s27 + $0x98] sm:$0xff]  ;;  %v2769_v23 = vld [vmem:[%s3362_s27 + $0x60] sm:$0xff]  ;;  %v885_v40 = vsel %vm5275_vm2, %v3454_v39, -inf  ;;  %s4029_s1 = scalar_lea.vmem [#allocation9], %s2785_s24  ;;  %s2444_s24 = scalar_lea.hbm %s5252_s9, %s3298_s18 }
  0x6b   : > { %490 = vmatpush.bf16.msra.mxu0 %v2757_v8  ;;  %v2771_v24 = vld [vmem:[%s3362_s27 + $0x70] sm:$0xff]  ;;  %v2778_v26 = vld [vmem:[%s3362_s27 + $0xa8] sm:$0xff]  ;;  %v2780_v27 = vld [vmem:[%s3362_s27 + $0xb8] sm:$0xff]  ;;  %v886_v41 = vrot.slane %v885_v40, 4  ;;  %s3484_s6 = scalar_lea.vmem %s5251_s8, %s452_s28  ;;  %s2448_s20 = sshll.u32 %s2444_s24, 4  ;;  %s2449_s20 = int_to_ptr.hbm [resolvable:$true] %s2448_s20 }
  0x6c   : > { %521 = vmatpush.bf16.msra.mxu1 %v2759_v9  ;;  %553 = vmatpush.bf16.msra.mxu2 %v2761_v10  ;;  %v2773_v28 = vld [vmem:[%s3362_s27 + $0x80] sm:$0xff]  ;;  %v2775_v29 = vld [vmem:[%s3362_s27 + $0x90] sm:$0xff]  ;;  %s2436_s23 = scalar_lea.sflag [#allocation5], %s3359_s11  ;;  %s3084_s14 = sshra.s32 %s2449_s20, 4  ;;  %s3085_s14 = int_to_ptr.hbm [resolvable:$true] %s3084_s14 }
  0x6d   : > { %585 = vmatpush.bf16.msra.mxu3 %v2763_v11  ;;  %v1662_v31 = vld [vmem:[%s5248_s5] sm:$0x7f]  ;;  %v2779_v33 = vld [vmem:[%s3362_s27 + $0xb0] sm:$0xff]  ;;  %v887_v42 = vmax.f32 %v885_v40, %v886_v41  ;;  %s3086_s18 = scalar_lea.hbm %s3085_s14, 1  ;;  %s3090_s17 = scalar_lea.hbm %s5252_s9, 2 }
  0x6e   : > { %2871 = vset.pattern.permute.xlu1 %v3156_v15  ;;  %2586 = vmatmul.msk.bf16.vlgmr.msra.gmra.mxu0 %vm479_vm0, %v3397_v14  ;;  %v2777_v32 = vld [vmem:[%s3362_s27 + $0xa0] sm:$0xff]  ;;  %p3087_p13 = scmp.ne.s32.totalorder %s3085_s14, %s3086_s18  ;;  %p3091_p12 = scmp.lt.s32.totalorder %s3085_s14, %s5252_s9 }
  0x6f   : > { %616 = vmatpush.bf16.msrb.mxu0 %v2766_v12  ;;  %2869 = vset.pattern.permute.xlu0 %v3157_v16  ;;  %v456_v34 = vld [vmem:[%s5245_s2] sm:$0x7f]  ;;  %v888_v43 = vrot.slane %v887_v42, 2  ;;  %p3092_p1 = scmp.lt.s32.totalorder %s3090_s17, %s3086_s18 }
  0x70   : > { %648 = vmatpush.bf16.msrb.mxu1 %v2768_v13  ;;  %864 = vperm.xlu1 %2871, %v849_v3   ;;  %v1376_v35 = vld [vmem:[%s5247_s4] sm:$0x7f]  ;;  %p3088_p5 = pnand %p3087_p13, %p3315_p7 }
  0x71   : > { %856 = vperm.xlu0 %2869, %v849_v3   ;;  %2599 = vmatmul.msk.bf16.vlgmr.msra.gmra.mxu1 %vm479_vm0, %v3397_v14  ;;  %v889_v44 = vmax.f32 %v887_v42, %v888_v43  ;;  %p3093_p2 = por %p3092_p1, %p3091_p12 }
  0x72   : > { %2612 = vmatmul.msk.bf16.vlgmr.msra.gmra.mxu2 %vm479_vm0, %v3397_v14  ;;  %2625 = vmatmul.msk.bf16.vlgmr.msra.gmra.mxu3 %vm479_vm0, %v3397_v14  ;;  %p3089_p11 = pneg %p3088_p5 }
  0x73   : > { %680 = vmatpush.bf16.msrb.mxu2 %v2770_v17  ;;  %712 = vmatpush.bf16.msrb.mxu3 %v2772_v18  ;;  %v890_v45 = vrot.slane %v889_v44, 1 }
  0x74   : > { %617 = vmatpush.bf16.msrb.mxu0 %v2765_v19  ;;  %649 = vmatpush.bf16.msrb.mxu1 %v2767_v20  ;;  %p3094_p4 = pnand %p3093_p2, %p3089_p11 }
  0x75   : > { %2873 = vset.pattern.permute.xlu2 %v3158_v25  ;;  %v891_v46 = vmax.f32 %v889_v44, %v890_v45 }
  0x76   : > { %872 = vperm.xlu2 %2873, %v849_v3  }
  0x77   : > { %681 = vmatpush.bf16.msrb.mxu2 %v2769_v23  ;;  %713 = vmatpush.bf16.msrb.mxu3 %v2771_v24  ;;  %v892_v47 = vsub.f32 %v3454_v39, %v891_v46 }
  0x78   : > { %744 = vmatpush.bf16.msra.mxu0 %v2774_v21  ;;  %776 = vmatpush.bf16.msra.mxu1 %v2776_v22 }
  0x79   : > { %2874 = vset.pattern.permute.xlu1 %v3159_v30  ;;  %2876 = vset.pattern.permute.xlu0 %v5312_v1  ;;  %v893_v48 = vmul.f32 1.442695, %v892_v47 }
  0x7a   : > { %876 = vperm.xlu1 %2874, %v849_v3   ;;  %1717 = vperm.xlu0 %2876, %v1662_v31  }
  0x7b   : > { %808 = vmatpush.bf16.msra.mxu2 %v2778_v26  ;;  %840 = vmatpush.bf16.msra.mxu3 %v2780_v27  ;;  %2897 = vpow2.f32 %v893_v48 }
  0x7c   : > { %745 = vmatpush.bf16.msra.mxu0 %v2773_v28  ;;  %777 = vmatpush.bf16.msra.mxu1 %v2775_v29 }
  0x7e   : > { %2875 = vset.pattern.permute.xlu2 %v5312_v1  ;;  %2638 = vmatmul.msk.bf16.vlgmr.msrb.gmra.mxu0 %vm479_vm0, %v3397_v14 }
  0x7f   : > { %809 = vmatpush.bf16.msra.mxu2 %v2777_v32  ;;  %841 = vmatpush.bf16.msra.mxu3 %v2779_v33 }
  0x80   : > { %464 = vperm.xlu2 %2875, %v456_v34  }
  0x81   : > { %2651 = vmatmul.msk.bf16.vlgmr.msrb.gmra.mxu1 %vm479_vm0, %v3397_v14  ;;  %v2898_v52 = vpop.eup %2897 }
  0x82   : > { %2664 = vmatmul.msk.bf16.vlgmr.msrb.gmra.mxu2 %vm479_vm0, %v3397_v14  ;;  %2677 = vmatmul.msk.bf16.vlgmr.msrb.gmra.mxu3 %vm479_vm0, %v3397_v14  ;;  %v895_v53 = vperm.slane %v2898_v52, 0  ;;  %v897_v54 = vperm.slane %v2898_v52, 1  ;;  %v900_v55 = vperm.slane %v2898_v52, 2  ;;  %v903_v61 = vperm.slane %v2898_v52, 3 }
  0x83   : > { %2877 = vset.pattern.permute.xlu1 %v3157_v16  ;;  %2881 = vset.pattern.permute.xlu0 %v3155_v2  ;;  %v906_v63 = vperm.slane %v2898_v52, 4  ;;  %v909_v4 = vperm.slane %v2898_v52, 5  ;;  %v912_v5 = vperm.slane %v2898_v52, 6 }
  0x84   : > { %1799 = vperm.xlu1 %2877, %v1662_v31   ;;  %2045 = vperm.xlu0 %2881, %v1662_v31  }
  0x88   : > { %2878 = vset.pattern.permute.xlu2 %v3153_v0 }
  0x89   : > { %1881 = vperm.xlu2 %2878, %v1662_v31  }
  0x8c   : > { %2879 = vset.pattern.permute.xlu1 %v3156_v15  ;;  %2884 = vset.pattern.permute.xlu0 %v3159_v30  ;;  %v3490_v15 = vld [vmem:[%s3484_s6] sm:$0x1] }
  0x8d   : > { %1963 = vperm.xlu1 %2879, %v1662_v31   ;;  %5334 = vst [vmem:[#allocation19_spill] sm:$0xff] %v3490_v15  ;;  %vm5262_vm3 = vcmp.gt.s32.totalorder %v3490_v15, 0  ;;  %vm5261_vm5 = vcmp.gt.s32.totalorder %v3490_v15, 1  ;;  %vm5260_vm7 = vcmp.gt.s32.totalorder %v3490_v15, 2  ;;  %vm5266_vm9 = vcmp.gt.s32.totalorder %v3490_v15, 3 }
  0x8e   : > { %2690 = vmatmul.msk.bf16.vlgmr.msra.gmra.mxu0 %vm479_vm0, %v3397_v14  ;;  %v921_v21 = vsel %vm5262_vm3, 1, %v5312_v1  ;;  %vm5268_vm11 = vcmp.gt.s32.totalorder %v3490_v15, 4  ;;  %vm5265_vm13 = vcmp.gt.s32.totalorder %v3490_v15, 5  ;;  %vm5263_vm15 = vcmp.gt.s32.totalorder %v3490_v15, 6 }
  0x8f   : > { %v922_v28 = vperm.slane %v921_v21, 0 }
  0x91   : > { %2703 = vmatmul.msk.bf16.vlgmr.msra.gmra.mxu1 %vm479_vm0, %v3397_v14  ;;  %2880 = vset.pattern.permute.xlu2 %v5312_v1  ;;  %vm923_vm4 = vcmp.eq.s32.totalorder %v922_v28, 1 }
  0x92   : > { %2716 = vmatmul.msk.bf16.vlgmr.msra.gmra.mxu2 %vm479_vm0, %v3397_v14  ;;  %2729 = vmatmul.msk.bf16.vlgmr.msra.gmra.mxu3 %vm479_vm0, %v3397_v14 }
  0x93   : > { %1379 = vperm.xlu2 %2880, %v1376_v35  }
  0x95   : > { %2882 = vset.pattern.permute.xlu1 %v3158_v25 }
  0x96   : > { %2127 = vperm.xlu1 %2882, %v1662_v31  }
  0x9b   : > { %2883 = vset.pattern.permute.xlu2 %v3159_v30 }
  0x9c   : > { %2209 = vperm.xlu2 %2883, %v1662_v31  }
  0xc3   : > { %v3459_v49 = vpop.permute.xlu2 %868 }
  0xc4   : > { %v907_v6 = vmul.f32 %v906_v63, %v3459_v49 }
  0xd0   : > { %v3465_v56 = vpop.permute.xlu2 %872 }
  0xd1   : > { %v910_v9 = vmul.f32 %v909_v4, %v3465_v56 }
  0xd8   : > { %v3463_v51 = vpop.permute.xlu1 %860 }
  0xd9   : > { %v3461_v50 = vpop.permute.xlu0 %852  ;;  %v901_v62 = vmul.f32 %v900_v55, %v3463_v51 }
  0xda   : > { %v896_v59 = vmul.f32 %v895_v53, %v3461_v50  ;;  %v3487_v12 = vpop.permute.xlu2 %464 }
  0xe2   : > { %v3469_v58 = vpop.permute.xlu1 %864 }
  0xe3   : > { %v3467_v57 = vpop.permute.xlu0 %856  ;;  %v904_v3 = vmul.f32 %v903_v61, %v3469_v58 }
  0xe4   : > { %v898_v60 = vmul.f32 %v897_v54, %v3467_v57 }
  0xe6   : > { %v899_v0 = vadd.f32 %v898_v60, %v896_v59 }
  0xe8   : > { %v902_v2 = vadd.f32 %v901_v62, %v899_v0 }
  0xea   : > { %v905_v7 = vadd.f32 %v904_v3, %v902_v2 }
  0xeb   : > { %v492_v14 = vpop.f32.mrf.mxu0 }
  0xec   : > { %v908_v8 = vadd.f32 %v907_v6, %v905_v7  ;;  %v3479_v10 = vpop.permute.xlu1 %876  ;;  %v493_v17 = vadd.f32 %v492_v14, %v3487_v12 }
  0xed   : > { %v913_v11 = vmul.f32 %v912_v5, %v3479_v10 }
  0xee   : > { %v911_v13 = vadd.f32 %v910_v9, %v908_v8  ;;  %v523_v16 = vpop.f32.mrf.mxu1  ;;  %496 = vst [vmem:[#allocation2 + $0x30] sm:$0x7f] %v493_v17 }
  0xef   : > { %v524_v19 = vadd.f32 %v523_v16, %v3487_v12 }
  0xf0   : > { %v914_v18 = vadd.f32 %v913_v11, %v911_v13 }
  0xf1   : > { %528 = vst [vmem:[#allocation2] sm:$0x7f] %v524_v19 }
  0xf2   : > { %v915_v20 = vmax.f32 %v914_v18, 1e-30 }
  0xf3   : > { %v494_v26 = vpop.f32.mrf.mxu0 }
  0xf4   : > { %2899 = vlog2.f32 %v915_v20 }
  0xf5   : > { %v555_v22 = vpop.f32.mrf.mxu2  ;;  %v587_v23 = vpop.f32.mrf.mxu3  ;;  %v883_v29 = vld [vmem:[#allocation2 + $0x30] sm:$0x7f] }
  0xf6   : > { %v556_v24 = vadd.f32 %v555_v22, %v3487_v12  ;;  %v588_v25 = vadd.f32 %v587_v23, %v3487_v12  ;;  %v525_v27 = vpop.f32.mrf.mxu1  ;;  %v916_v31 = vadd.f32 %v891_v46, %v883_v29 }
  0xf8   : > { %560 = vst [vmem:[#allocation2 + $0x58] sm:$0x7f] %v556_v24 }
  0xf9   : > { %592 = vst [vmem:[#allocation2 + $0x18] sm:$0x7f] %v588_v25 }
  0xfa   : > { %v2900_v30 = vpop.eup %2899 }
  0xfb   : > { %v918_v32 = vmul.f32 0.6931472, %v2900_v30  ;;  %v619_v38 = vpop.f32.mrf.mxu0 }
  0xfc   : > { %v620_v42 = vadd.f32 %v619_v38, %v3487_v12 }
  0xfd   : > { %v919_v33 = vadd.f32 %v918_v32, %v916_v31  ;;  %v557_v34 = vpop.f32.mrf.mxu2  ;;  %v589_v35 = vpop.f32.mrf.mxu3 }
  0xfe   : > { %v651_v40 = vpop.f32.mrf.mxu1  ;;  %624 = vst [vmem:[#allocation2 + $0x50] sm:$0x7f] %v620_v42 }
  0xff   : > { %v3501_v36 = vsel %vm923_vm4, %v919_v33, %v3454_v39  ;;  %v652_v43 = vadd.f32 %v651_v40, %v3487_v12 }
 0x100   : > { %v926_v41 = vsel %vm5275_vm2, %v3501_v36, -inf }
 0x101   : > { %v927_v44 = vrot.slane %v926_v41, 4  ;;  %656 = vst [vmem:[#allocation2 + $0x20] sm:$0x7f] %v652_v43 }
 0x103   : > { %v928_v45 = vmax.f32 %v926_v41, %v927_v44  ;;  %v621_v54 = vpop.f32.mrf.mxu0  ;;  %v962_v41 = vsel %vm5261_vm5, 1, %v5312_v1  ;;  %v925_v44 = vld [vmem:[#allocation2] sm:$0x7f] }
 0x104   : > { %v963_v42 = vperm.slane %v962_v41, 0 }
 0x105   : > { %v929_v46 = vrot.slane %v928_v45, 2  ;;  %v683_v47 = vpop.f32.mrf.mxu2  ;;  %v715_v48 = vpop.f32.mrf.mxu3 }
 0x106   : > { %v684_v39 = vadd.f32 %v683_v47, %v3487_v12  ;;  %v716_v53 = vadd.f32 %v715_v48, %v3487_v12  ;;  %v653_v55 = vpop.f32.mrf.mxu1  ;;  %vm964_vm6 = vcmp.eq.s32.totalorder %v963_v42, 1 }
 0x107   : > { %v930_v52 = vmax.f32 %v928_v45, %v929_v46 }
 0x108   : > { %688 = vst [vmem:[#allocation2 + $0x8] sm:$0x7f] %v684_v39 }
 0x109   : > { %v931_v59 = vrot.slane %v930_v52, 1  ;;  %720 = vst [vmem:[#allocation2 + $0x38] sm:$0x7f] %v716_v53 }
 0x10b   : > { %v932_v60 = vmax.f32 %v930_v52, %v931_v59  ;;  %v747_v2 = vpop.f32.mrf.mxu0 }
 0x10c   : > { %v748_v4 = vadd.f32 %v747_v2, %v3487_v12 }
 0x10d   : > { %v933_v61 = vsub.f32 %v3501_v36, %v932_v60  ;;  %v685_v62 = vpop.f32.mrf.mxu2  ;;  %v717_v63 = vpop.f32.mrf.mxu3  ;;  %v957_v45 = vadd.f32 %v932_v60, %v925_v44 }
 0x10e   : > { %v779_v3 = vpop.f32.mrf.mxu1  ;;  %752 = vst [vmem:[#allocation2 + $0x28] sm:$0x7f] %v748_v4 }
 0x10f   : > { %v934_v0 = vmul.f32 1.442695, %v933_v61  ;;  %v780_v5 = vadd.f32 %v779_v3, %v3487_v12 }
 0x111   : > { %2901 = vpow2.f32 %v934_v0  ;;  %784 = vst [vmem:[#allocation2 + $0x48] sm:$0x7f] %v780_v5 }
 0x113   : > { %v749_v13 = vpop.f32.mrf.mxu0 }
 0x115   : > { %v811_v6 = vpop.f32.mrf.mxu2  ;;  %v843_v7 = vpop.f32.mrf.mxu3 }
 0x116   : > { %v812_v9 = vadd.f32 %v811_v6, %v3487_v12  ;;  %v844_v11 = vadd.f32 %v843_v7, %v3487_v12  ;;  %v781_v14 = vpop.f32.mrf.mxu1 }
 0x117   : > { %v2902_v8 = vpop.eup %2901 }
 0x118   : > { %v936_v16 = vperm.slane %v2902_v8, 0  ;;  %v938_v17 = vperm.slane %v2902_v8, 1  ;;  %v941_v18 = vperm.slane %v2902_v8, 2  ;;  %816 = vst [vmem:[#allocation2 + $0x10] sm:$0x7f] %v812_v9  ;;  %v944_v21 = vperm.slane %v2902_v8, 3 }
 0x119   : > { %848 = vst [vmem:[#allocation2 + $0x40] sm:$0x7f] %v844_v11  ;;  %v947_v24 = vperm.slane %v2902_v8, 4  ;;  %v950_v12 = vperm.slane %v2902_v8, 5  ;;  %v953_v31 = vperm.slane %v2902_v8, 6 }
 0x11a   : > { %v937_v19 = vmul.f32 %v936_v16, %v3461_v50  ;;  %v939_v20 = vmul.f32 %v938_v17, %v3467_v57  ;;  %v942_v23 = vmul.f32 %v941_v18, %v3463_v51  ;;  %v945_v26 = vmul.f32 %v944_v21, %v3469_v58 }
 0x11b   : > { %v948_v30 = vmul.f32 %v947_v24, %v3459_v49  ;;  %v951_v33 = vmul.f32 %v950_v12, %v3465_v56  ;;  %v954_v35 = vmul.f32 %v953_v31, %v3479_v10  ;;  %v1003_v24 = vsel %vm5260_vm7, 1, %v5312_v1  ;;  %v966_v12 = vld [vmem:[#allocation2 + $0x58] sm:$0x7f] }
 0x11c   : > { %v940_v22 = vadd.f32 %v939_v20, %v937_v19 }
 0x11d   : > { %v813_v27 = vpop.f32.mrf.mxu2  ;;  %v845_v28 = vpop.f32.mrf.mxu3 }
 0x11e   : > { %v943_v25 = vadd.f32 %v942_v23, %v940_v22 }
 0x120   : > { %v946_v29 = vadd.f32 %v945_v26, %v943_v25  ;;  %v1004_v25 = vperm.slane %v1003_v24, 0 }
 0x122   : > { %v949_v32 = vadd.f32 %v948_v30, %v946_v29  ;;  %vm1005_vm8 = vcmp.eq.s32.totalorder %v1004_v25, 1 }
 0x124   : > { %v952_v34 = vadd.f32 %v951_v33, %v949_v32 }
 0x126   : > { %v955_v38 = vadd.f32 %v954_v35, %v952_v34 }
 0x128   : > { %v956_v40 = vmax.f32 %v955_v38, 1e-30 }
 0x12a   : > { %2903 = vlog2.f32 %v956_v40 }
 0x130   : > { %v2904_v43 = vpop.eup %2903 }
 0x131   : > { %v959_v46 = vmul.f32 0.6931472, %v2904_v43 }
 0x133   : > { %v960_v47 = vadd.f32 %v959_v46, %v957_v45 }
 0x135   : > { %v965_v48 = vsel %vm964_vm6, %v960_v47, %v3501_v36 }
 0x136   : > { %v967_v52 = vsel %vm5275_vm2, %v965_v48, -inf }
 0x137   : > { %v968_v39 = vrot.slane %v967_v52, 4 }
 0x139   : > { %v969_v53 = vmax.f32 %v967_v52, %v968_v39 }
 0x13b   : > { %v970_v54 = vrot.slane %v969_v53, 2 }
 0x13d   : > { %v971_v55 = vmax.f32 %v969_v53, %v970_v54 }
 0x13f   : > { %v972_v59 = vrot.slane %v971_v55, 1 }
 0x141   : > { %v973_v61 = vmax.f32 %v971_v55, %v972_v59 }
 0x143   : > { %v974_v62 = vsub.f32 %v965_v48, %v973_v61  ;;  %v998_v27 = vadd.f32 %v973_v61, %v966_v12 }
 0x145   : > { %v975_v63 = vmul.f32 1.442695, %v974_v62 }
 0x147   : > { %2905 = vpow2.f32 %v975_v63 }
 0x14d   : > { %v2906_v0 = vpop.eup %2905 }
 0x14e   : > { %v977_v2 = vperm.slane %v2906_v0, 0  ;;  %v979_v3 = vperm.slane %v2906_v0, 1  ;;  %v982_v60 = vperm.slane %v2906_v0, 2  ;;  %v985_v36 = vperm.slane %v2906_v0, 3 }
 0x14f   : > { %v988_v8 = vperm.slane %v2906_v0, 4  ;;  %v991_v13 = vperm.slane %v2906_v0, 5  ;;  %v994_v17 = vperm.slane %v2906_v0, 6 }
 0x150   : > { %v978_v4 = vmul.f32 %v977_v2, %v3461_v50  ;;  %v980_v5 = vmul.f32 %v979_v3, %v3467_v57  ;;  %v983_v7 = vmul.f32 %v982_v60, %v3463_v51  ;;  %v986_v11 = vmul.f32 %v985_v36, %v3469_v58 }
 0x151   : > { %v989_v16 = vmul.f32 %v988_v8, %v3459_v49  ;;  %v992_v19 = vmul.f32 %v991_v13, %v3465_v56  ;;  %v995_v21 = vmul.f32 %v994_v17, %v3479_v10 }
 0x152   : > { %v981_v6 = vadd.f32 %v980_v5, %v978_v4 }
 0x154   : > { %v984_v9 = vadd.f32 %v983_v7, %v981_v6  ;;  %v1044_v6 = vsel %vm5266_vm9, 1, %v5312_v1 }
 0x155   : > { %v1045_v7 = vperm.slane %v1044_v6, 0 }
 0x156   : > { %v987_v14 = vadd.f32 %v986_v11, %v984_v9  ;;  %v1007_v9 = vld [vmem:[#allocation2 + $0x18] sm:$0x7f] }
 0x157   : > { %vm1046_vm10 = vcmp.eq.s32.totalorder %v1045_v7, 1 }
 0x158   : > { %v990_v18 = vadd.f32 %v989_v16, %v987_v14 }
 0x15a   : > { %v993_v20 = vadd.f32 %v992_v19, %v990_v18 }
 0x15c   : > { %v996_v22 = vadd.f32 %v995_v21, %v993_v20 }
 0x15e   : > { %v997_v23 = vmax.f32 %v996_v22, 1e-30 }
 0x160   : > { %2907 = vlog2.f32 %v997_v23 }
 0x166   : > { %v2908_v26 = vpop.eup %2907 }
 0x167   : > { %v1000_v28 = vmul.f32 0.6931472, %v2908_v26 }
 0x169   : > { %v1001_v29 = vadd.f32 %v1000_v28, %v998_v27 }
 0x16b   : > { %v1006_v30 = vsel %vm1005_vm8, %v1001_v29, %v965_v48 }
 0x16c   : > { %v1008_v31 = vsel %vm5275_vm2, %v1006_v30, -inf }
 0x16d   : > { %v1009_v32 = vrot.slane %v1008_v31, 4 }
 0x16f   : > { %v1010_v33 = vmax.f32 %v1008_v31, %v1009_v32 }
 0x171   : > { %v1011_v34 = vrot.slane %v1010_v33, 2 }
 0x173   : > { %v1012_v35 = vmax.f32 %v1010_v33, %v1011_v34 }
 0x175   : > { %v1013_v38 = vrot.slane %v1012_v35, 1 }
 0x177   : > { %v1014_v40 = vmax.f32 %v1012_v35, %v1013_v38 }
 0x179   : > { %v1015_v41 = vsub.f32 %v1006_v30, %v1014_v40  ;;  %v1039_v11 = vadd.f32 %v1014_v40, %v1007_v9 }
 0x17b   : > { %v1016_v42 = vmul.f32 1.442695, %v1015_v41 }
 0x17d   : > { %2909 = vpow2.f32 %v1016_v42 }
 0x183   : > { %v2910_v43 = vpop.eup %2909 }
 0x184   : > { %v1018_v44 = vperm.slane %v2910_v43, 0  ;;  %v1020_v45 = vperm.slane %v2910_v43, 1  ;;  %v1023_v46 = vperm.slane %v2910_v43, 2  ;;  %v1026_v48 = vperm.slane %v2910_v43, 3 }
 0x185   : > { %v1029_v54 = vperm.slane %v2910_v43, 4  ;;  %v1032_v61 = vperm.slane %v2910_v43, 5  ;;  %v1035_v0 = vperm.slane %v2910_v43, 6 }
 0x186   : > { %v1019_v47 = vmul.f32 %v1018_v44, %v3461_v50  ;;  %v1021_v52 = vmul.f32 %v1020_v45, %v3467_v57  ;;  %v1024_v53 = vmul.f32 %v1023_v46, %v3463_v51  ;;  %v1027_v59 = vmul.f32 %v1026_v48, %v3469_v58 }
 0x187   : > { %v1030_v63 = vmul.f32 %v1029_v54, %v3459_v49  ;;  %v1033_v3 = vmul.f32 %v1032_v61, %v3465_v56  ;;  %v1036_v4 = vmul.f32 %v1035_v0, %v3479_v10 }
 0x188   : > { %v1022_v39 = vadd.f32 %v1021_v52, %v1019_v47 }
 0x18a   : > { %v1025_v55 = vadd.f32 %v1024_v53, %v1022_v39  ;;  %v1085_v39 = vsel %vm5268_vm11, 1, %v5312_v1 }
 0x18b   : > { %v1086_v53 = vperm.slane %v1085_v39, 0 }
 0x18c   : > { %v1028_v62 = vadd.f32 %v1027_v59, %v1025_v55  ;;  %v1048_v55 = vld [vmem:[#allocation2 + $0x50] sm:$0x7f] }
 0x18d   : > { %vm1087_vm12 = vcmp.eq.s32.totalorder %v1086_v53, 1 }
 0x18e   : > { %v1031_v2 = vadd.f32 %v1030_v63, %v1028_v62 }
 0x190   : > { %v1034_v60 = vadd.f32 %v1033_v3, %v1031_v2 }
 0x192   : > { %v1037_v5 = vadd.f32 %v1036_v4, %v1034_v60 }
 0x194   : > { %v1038_v36 = vmax.f32 %v1037_v5, 1e-30 }
 0x196   : > { %2911 = vlog2.f32 %v1038_v36 }
 0x19c   : > { %v2912_v8 = vpop.eup %2911 }
 0x19d   : > { %v1041_v13 = vmul.f32 0.6931472, %v2912_v8 }
 0x19f   : > { %v1042_v14 = vadd.f32 %v1041_v13, %v1039_v11 }
 0x1a1   : > { %v1047_v16 = vsel %vm1046_vm10, %v1042_v14, %v1006_v30 }
 0x1a2   : > { %v1049_v17 = vsel %vm5275_vm2, %v1047_v16, -inf }
 0x1a3   : > { %v1050_v18 = vrot.slane %v1049_v17, 4 }
 0x1a5   : > { %v1051_v19 = vmax.f32 %v1049_v17, %v1050_v18 }
 0x1a7   : > { %v1052_v20 = vrot.slane %v1051_v19, 2 }
 0x1a9   : > { %v1053_v21 = vmax.f32 %v1051_v19, %v1052_v20 }
 0x1ab   : > { %v1054_v22 = vrot.slane %v1053_v21, 1 }
 0x1ad   : > { %v1055_v23 = vmax.f32 %v1053_v21, %v1054_v22 }
 0x1af   : > { %v1056_v24 = vsub.f32 %v1047_v16, %v1055_v23  ;;  %v1080_v59 = vadd.f32 %v1055_v23, %v1048_v55 }
 0x1b1   : > { %v1057_v25 = vmul.f32 1.442695, %v1056_v24 }
 0x1b3   : > { %2913 = vpow2.f32 %v1057_v25 }
 0x1b9   : > { %v2914_v26 = vpop.eup %2913 }
 0x1ba   : > { %v1059_v12 = vperm.slane %v2914_v26, 0  ;;  %v1061_v27 = vperm.slane %v2914_v26, 1  ;;  %v1064_v28 = vperm.slane %v2914_v26, 2  ;;  %v1067_v30 = vperm.slane %v2914_v26, 3 }
 0x1bb   : > { %v1070_v34 = vperm.slane %v2914_v26, 4  ;;  %v1073_v40 = vperm.slane %v2914_v26, 5  ;;  %v1076_v43 = vperm.slane %v2914_v26, 6 }
 0x1bc   : > { %v1060_v29 = vmul.f32 %v1059_v12, %v3461_v50  ;;  %v1062_v31 = vmul.f32 %v1061_v27, %v3467_v57  ;;  %v1065_v33 = vmul.f32 %v1064_v28, %v3463_v51  ;;  %v1068_v38 = vmul.f32 %v1067_v30, %v3469_v58 }
 0x1bd   : > { %v1071_v42 = vmul.f32 %v1070_v34, %v3459_v49  ;;  %v1074_v45 = vmul.f32 %v1073_v40, %v3465_v56  ;;  %v1077_v47 = vmul.f32 %v1076_v43, %v3479_v10 }
 0x1be   : > { %v1063_v32 = vadd.f32 %v1062_v31, %v1060_v29 }
 0x1c0   : > { %v1066_v35 = vadd.f32 %v1065_v33, %v1063_v32  ;;  %v1126_v32 = vsel %vm5265_vm13, 1, %v5312_v1 }
 0x1c1   : > { %v1127_v33 = vperm.slane %v1126_v32, 0 }
 0x1c2   : > { %v1069_v41 = vadd.f32 %v1068_v38, %v1066_v35  ;;  %v1089_v35 = vld [vmem:[#allocation2 + $0x20] sm:$0x7f] }
 0x1c3   : > { %vm1128_vm14 = vcmp.eq.s32.totalorder %v1127_v33, 1 }
 0x1c4   : > { %v1072_v44 = vadd.f32 %v1071_v42, %v1069_v41 }
 0x1c6   : > { %v1075_v46 = vadd.f32 %v1074_v45, %v1072_v44 }
 0x1c8   : > { %v1078_v52 = vadd.f32 %v1077_v47, %v1075_v46 }
 0x1ca   : > { %v1079_v48 = vmax.f32 %v1078_v52, 1e-30 }
 0x1cc   : > { %2915 = vlog2.f32 %v1079_v48 }
 0x1d2   : > { %v2916_v54 = vpop.eup %2915 }
 0x1d3   : > { %v1082_v61 = vmul.f32 0.6931472, %v2916_v54 }
 0x1d5   : > { %v1083_v62 = vadd.f32 %v1082_v61, %v1080_v59 }
 0x1d7   : > { %v1088_v63 = vsel %vm1087_vm12, %v1083_v62, %v1047_v16 }
 0x1d8   : > { %v1090_v0 = vsel %vm5275_vm2, %v1088_v63, -inf }
 0x1d9   : > { %v1091_v2 = vrot.slane %v1090_v0, 4 }
 0x1db   : > { %v1092_v3 = vmax.f32 %v1090_v0, %v1091_v2 }
 0x1dd   : > { %v1093_v60 = vrot.slane %v1092_v3, 2 }
 0x1df   : > { %v1094_v4 = vmax.f32 %v1092_v3, %v1093_v60 }
 0x1e1   : > { %v1095_v5 = vrot.slane %v1094_v4, 1 }
 0x1e3   : > { %v1096_v36 = vmax.f32 %v1094_v4, %v1095_v5 }
 0x1e5   : > { %v1097_v6 = vsub.f32 %v1088_v63, %v1096_v36  ;;  %v1121_v38 = vadd.f32 %v1096_v36, %v1089_v35 }
 0x1e7   : > { %v1098_v7 = vmul.f32 1.442695, %v1097_v6 }
 0x1e9   : > { %2917 = vpow2.f32 %v1098_v7 }
 0x1ef   : > { %v2918_v8 = vpop.eup %2917 }
 0x1f0   : > { %v1100_v9 = vperm.slane %v2918_v8, 0  ;;  %v1102_v11 = vperm.slane %v2918_v8, 1  ;;  %v1105_v13 = vperm.slane %v2918_v8, 2  ;;  %v1108_v16 = vperm.slane %v2918_v8, 3 }
 0x1f1   : > { %v1111_v20 = vperm.slane %v2918_v8, 4  ;;  %v1114_v23 = vperm.slane %v2918_v8, 5  ;;  %v1117_v26 = vperm.slane %v2918_v8, 6 }
 0x1f2   : > { %v1101_v14 = vmul.f32 %v1100_v9, %v3461_v50  ;;  %v1103_v17 = vmul.f32 %v1102_v11, %v3467_v57  ;;  %v1106_v19 = vmul.f32 %v1105_v13, %v3463_v51  ;;  %v1109_v22 = vmul.f32 %v1108_v16, %v3469_v58 }
 0x1f3   : > { %v1112_v25 = vmul.f32 %v1111_v20, %v3459_v49  ;;  %v1115_v27 = vmul.f32 %v1114_v23, %v3465_v56  ;;  %v1118_v29 = vmul.f32 %v1117_v26, %v3479_v10 }
 0x1f4   : > { %v1104_v18 = vadd.f32 %v1103_v17, %v1101_v14 }
 0x1f6   : > { %v1107_v21 = vadd.f32 %v1106_v19, %v1104_v18  ;;  %v1167_v18 = vsel %vm5263_vm15, 1, %v5312_v1 }
 0x1f7   : > { %v1168_v19 = vperm.slane %v1167_v18, 0 }
 0x1f8   : > { %v1110_v24 = vadd.f32 %v1109_v22, %v1107_v21  ;;  %v1130_v21 = vld [vmem:[#allocation2 + $0x8] sm:$0x7f] }
 0x1f9   : > { %vm1169_vm0 = vcmp.eq.s32.totalorder %v1168_v19, 1 }
 0x1fa   : > { %v1113_v12 = vadd.f32 %v1112_v25, %v1110_v24 }
 0x1fc   : > { %v1116_v28 = vadd.f32 %v1115_v27, %v1113_v12 }
 0x1fe   : > { %v1119_v31 = vadd.f32 %v1118_v29, %v1116_v28 }
 0x200   : > { %v1120_v30 = vmax.f32 %v1119_v31, 1e-30 }
 0x202   : > { %2919 = vlog2.f32 %v1120_v30 }
 0x208   : > { %v2920_v34 = vpop.eup %2919 }
 0x209   : > { %v1123_v40 = vmul.f32 0.6931472, %v2920_v34 }
 0x20b   : > { %v1124_v41 = vadd.f32 %v1123_v40, %v1121_v38 }
 0x20d   : > { %v1129_v42 = vsel %vm1128_vm14, %v1124_v41, %v1088_v63 }
 0x20e   : > { %v1131_v43 = vsel %vm5275_vm2, %v1129_v42, -inf }
 0x20f   : > { %v1132_v44 = vrot.slane %v1131_v43, 4 }
 0x211   : > { %v1133_v45 = vmax.f32 %v1131_v43, %v1132_v44 }
 0x213   : > { %v1134_v46 = vrot.slane %v1133_v45, 2 }
 0x215   : > { %v1135_v47 = vmax.f32 %v1133_v45, %v1134_v46 }
 0x217   : > { %v1136_v52 = vrot.slane %v1135_v47, 1 }
 0x219   : > { %v1137_v48 = vmax.f32 %v1135_v47, %v1136_v52  ;;  %v2885_v47 = vld [vmem:[%s3375_s29] ss:$0 sm:$0xff] }
 0x21a   : > { %v1403_v52 = vld [vmem:[%s3375_s29] sm:$0x1]  ;;  %vm1453_vm1 = vcmp.eq.s32.totalorder %v3451_v37, %v2885_v47 }
 0x21b   : > { %v1138_v39 = vsub.f32 %v1129_v42, %v1137_v48  ;;  %v1162_v22 = vadd.f32 %v1137_v48, %v1130_v21  ;;  %v1404_v48 = vld [vmem:[%s3375_s29 + $0x1] sm:$0x1]  ;;  %v2889_v21 = vld [vmem:[%s3375_s29 + $0x4] ss:$0 sm:$0xff] }
 0x21d   : > { %v1139_v53 = vmul.f32 1.442695, %v1138_v39 }
 0x21f   : > { %2921 = vpow2.f32 %v1139_v53 }
 0x225   : > { %v2922_v54 = vpop.eup %2921 }
 0x226   : > { %v1141_v55 = vperm.slane %v2922_v54, 0  ;;  %v1143_v59 = vperm.slane %v2922_v54, 1  ;;  %v1146_v61 = vperm.slane %v2922_v54, 2  ;;  %v1149_v63 = vperm.slane %v2922_v54, 3 }
 0x227   : > { %v1152_v60 = vperm.slane %v2922_v54, 4  ;;  %v1155_v36 = vperm.slane %v2922_v54, 5  ;;  %v1158_v8 = vperm.slane %v2922_v54, 6 }
 0x228   : > { %v1142_v62 = vmul.f32 %v1141_v55, %v3461_v50  ;;  %v1144_v0 = vmul.f32 %v1143_v59, %v3467_v57  ;;  %v1147_v3 = vmul.f32 %v1146_v61, %v3463_v51  ;;  %v1150_v5 = vmul.f32 %v1149_v63, %v3469_v58  ;;  %v1405_v55 = vld [vmem:[%s3375_s29 + $0x2] sm:$0x1] }
 0x229   : > { %v1153_v7 = vmul.f32 %v1152_v60, %v3459_v49  ;;  %v1156_v11 = vmul.f32 %v1155_v36, %v3465_v56  ;;  %v1159_v14 = vmul.f32 %v1158_v8, %v3479_v10  ;;  %v3606_v63 = vsel %vm5262_vm3, %v1403_v52, 6 }
 0x22a   : > { %v1145_v2 = vadd.f32 %v1144_v0, %v1142_v62  ;;  %v2886_v0 = vld [vmem:[%s3375_s29 + $0x1] ss:$0 sm:$0xff]  ;;  %v3618_v36 = vsel %vm5260_vm7, %v1405_v55, 6  ;;  %vm1746_vm4 = vcmp.eq.s32.totalorder %v3606_v63, 1  ;;  %v5277_v8 = vmov 0.0  }
 0x22b   : > { %vm1454_vm8 = vcmp.eq.s32.totalorder %v3451_v37, %v2886_v0  ;;  %vm1663_vm10 = vcmp.eq.s32.totalorder %v3606_v63, 0  ;;  %vm1748_vm12 = vcmp.eq.s32.totalorder %v3618_v36, 1  ;;  %vm1830_vm15 = vcmp.eq.s32.totalorder %v3618_v36, 2 }
 0x22c   : > { %v1148_v4 = vadd.f32 %v1147_v3, %v1145_v2  ;;  %v3610_v2 = vsel %vm5261_vm5, %v1404_v48, 6  ;;  %v1761_v18 = vsel %vm1748_vm12, 1, %v5312_v1  ;;  %vm1994_vm13 = vcmp.eq.s32.totalorder %v3618_v36, 4 }
 0x22d   : > { %vm1747_vm6 = vcmp.eq.s32.totalorder %v3610_v2, 1  ;;  %vm1664_vm14 = vcmp.eq.s32.totalorder %v3610_v2, 0  ;;  %vm1829_vm3 = vcmp.eq.s32.totalorder %v3610_v2, 2 }
 0x22e   : > { %v1151_v6 = vadd.f32 %v1150_v5, %v1148_v4  ;;  %v2887_v4 = vld [vmem:[%s3375_s29 + $0x2] ss:$0 sm:$0xff]  ;;  %v2888_v5 = vld [vmem:[%s3375_s29 + $0x3] ss:$0 sm:$0xff]  ;;  %v1677_v19 = vsel %vm1664_vm14, 1, %v5312_v1 }
 0x22f   : > { %vm1455_vm7 = vcmp.eq.s32.totalorder %v3451_v37, %v2887_v4  ;;  %vm1456_vm5 = vcmp.eq.s32.totalorder %v3451_v37, %v2888_v5 }
 0x230   : > { %v1154_v9 = vadd.f32 %v1153_v7, %v1151_v6 }
 0x232   : > { %v1157_v13 = vadd.f32 %v1156_v11, %v1154_v9  ;;  %v3624_v9 = vsel %vm1453_vm1, 1.0, %v5277_v8  ;;  %vm1828_vm1 = vcmp.eq.s32.totalorder %v3606_v63, 2 }
 0x234   : > { %v1160_v17 = vadd.f32 %v1159_v14, %v1157_v13  ;;  %v1759_v13 = vsel %vm1746_vm4, 1, %v5312_v1  ;;  %v1760_v14 = vsel %vm1747_vm6, 1, %v5312_v1  ;;  %vm5264_vm4 = vcmp.gt.s32.totalorder %v3490_v15, 7 }
 0x235   : > { %vm1910_vm6 = vcmp.eq.s32.totalorder %v3606_v63, 3 }
 0x236   : > { %v1161_v16 = vmax.f32 %v1160_v17, 1e-30  ;;  %v1676_v17 = vsel %vm1663_vm10, 1, %v5312_v1  ;;  %vm1911_vm10 = vcmp.eq.s32.totalorder %v3610_v2, 3  ;;  %v1923_v55 = vsel %vm1910_vm6, 1, %v5312_v1 }
 0x238   : > { %2923 = vlog2.f32 %v1161_v16 }
 0x23e   : > { %v2924_v20 = vpop.eup %2923 }
 0x23f   : > { %v1164_v23 = vmul.f32 0.6931472, %v2924_v20 }
 0x241   : > { %v1165_v24 = vadd.f32 %v1164_v23, %v1162_v22  ;;  %v1772_v22 = vperm.slane %v1759_v13, 0  ;;  %v1773_v23 = vperm.slane %v1760_v14, 0  ;;  %v1936_v13 = vperm.slane %v1923_v55, 0 }
 0x243   : > { %v3586_v25 = vsel %vm1169_vm0, %v1165_v24, %v1129_v42  ;;  %vm1665_vm0 = vcmp.eq.s32.totalorder %v3618_v36, 0  ;;  %v1689_v24 = vperm.slane %v1676_v17, 0  ;;  %v1430_v17 = vld [vmem:[#allocation2] sm:$0x7f] }
 0x244   : > { %v1172_v26 = vsel %vm5275_vm2, %v3586_v25, -inf  ;;  %v1678_v20 = vsel %vm1665_vm0, 1, %v5312_v1  ;;  %vm1912_vm0 = vcmp.eq.s32.totalorder %v3618_v36, 3 }
 0x245   : > { %v1173_v12 = vrot.slane %v1172_v26, 4 }
 0x247   : > { %v1174_v27 = vmax.f32 %v1172_v26, %v1173_v12  ;;  %v1841_v26 = vsel %vm1828_vm1, 1, %v5312_v1  ;;  %v1842_v12 = vsel %vm1829_vm3, 1, %v5312_v1  ;;  %vm1457_vm3 = vcmp.eq.s32.totalorder %v3451_v37, %v2889_v21 }
 0x249   : > { %v1175_v28 = vrot.slane %v1174_v27, 2 }
 0x24b   : > { %v1176_v29 = vmax.f32 %v1174_v27, %v1175_v28  ;;  %v1208_v27 = vsel %vm5264_vm4, 1, %v5312_v1  ;;  %v1774_v28 = vperm.slane %v1761_v18, 0  ;;  %vm1993_vm4 = vcmp.eq.s32.totalorder %v3610_v2, 4 }
 0x24d   : > { %v1177_v31 = vrot.slane %v1176_v29, 1  ;;  %vm3678_vm12 = vcmp.eq.s32.totalorder %v1774_v28, 1 }
 0x24f   : > { %v3590_v30 = vmax.f32 %v1176_v29, %v1177_v31  ;;  %v1690_v29 = vperm.slane %v1677_v19, 0  ;;  %v1691_v31 = vperm.slane %v1678_v20, 0  ;;  %v1925_v20 = vsel %vm1912_vm0, 1, %v5312_v1 }
 0x250   : > { %vm2076_vm0 = vcmp.eq.s32.totalorder %v3618_v36, 5 }
 0x251   : > { %v1179_v32 = vsub.f32 %v3586_v25, %v3590_v30  ;;  %vm3686_vm14 = vcmp.eq.s32.totalorder %v1691_v31, 1  ;;  %v1938_v31 = vperm.slane %v1925_v20, 0  ;;  %v3793_v47 = vsel %vm2076_vm0, 1, %v5312_v1 }
 0x253   : > { %v1180_v33 = vmul.f32 1.442695, %v1179_v32  ;;  %v1843_v32 = vsel %vm1830_vm15, 1, %v5312_v1  ;;  %vm3666_vm15 = vcmp.eq.s32.totalorder %v1772_v22, 1 }
 0x255   : > { %2925 = vpow2.f32 %v1180_v33  ;;  %v2731_v33 = vsel %vm1454_vm8, 1.0, %v5277_v8  ;;  %vm3674_vm8 = vcmp.eq.s32.totalorder %v1773_v23, 1 }
 0x25b   : > { %v2926_v34 = vpop.eup %2925 }
 0x25c   : > { %v1182_v35 = vperm.slane %v2926_v34, 0  ;;  %v1184_v38 = vperm.slane %v2926_v34, 1  ;;  %v1187_v40 = vperm.slane %v2926_v34, 2  ;;  %v1190_v43 = vperm.slane %v2926_v34, 3 }
 0x25d   : > { %v1193_v46 = vperm.slane %v2926_v34, 4  ;;  %v1196_v54 = vperm.slane %v2926_v34, 5  ;;  %v1199_v62 = vperm.slane %v2926_v34, 6  ;;  %v3656_v34 = vsel %vm1455_vm7, 1.0, %v5277_v8 }
 0x25e   : > { %v1183_v41 = vmul.f32 %v1182_v35, %v3461_v50  ;;  %v1185_v42 = vmul.f32 %v1184_v38, %v3467_v57  ;;  %v1188_v45 = vmul.f32 %v1187_v40, %v3463_v51  ;;  %v1191_v53 = vmul.f32 %v1190_v43, %v3469_v58 }
 0x25f   : > { %v1194_v61 = vmul.f32 %v1193_v46, %v3459_v49  ;;  %v1197_v60 = vmul.f32 %v1196_v54, %v3465_v56  ;;  %v1200_v7 = vmul.f32 %v1199_v62, %v3479_v10  ;;  %v1854_v35 = vperm.slane %v1841_v26, 0  ;;  %v3694_v54 = vpop.permute.xlu0 %1717 }
 0x260   : > { %v1186_v44 = vadd.f32 %v1185_v42, %v1183_v41  ;;  %v1855_v38 = vperm.slane %v1842_v12, 0  ;;  %v1209_v40 = vperm.slane %v1208_v27, 0  ;;  %v3664_v41 = vsel %vm1456_vm5, 1.0, %v5277_v8 }
 0x261   : > { %vm3670_vm7 = vcmp.eq.s32.totalorder %v1689_v24, 1  ;;  %vm3682_vm5 = vcmp.eq.s32.totalorder %v1690_v29, 1  ;;  %vm3706_vm1 = vcmp.eq.s32.totalorder %v1854_v35, 1  ;;  %v1722_v18 = vsel %vm3686_vm14, %v3694_v54, 0.0 }
 0x262   : > { %v1189_v39 = vadd.f32 %v1188_v45, %v1186_v44  ;;  %v1856_v44 = vperm.slane %v1843_v32, 0  ;;  %v1720_v0 = vsel %vm3670_vm7, %v3694_v54, 0.0  ;;  %vm3714_vm6 = vcmp.eq.s32.totalorder %v1209_v40, 1 }
 0x263   : > { %vm1992_vm7 = vcmp.eq.s32.totalorder %v3606_v63, 4  ;;  %v2007_v27 = vsel %vm1994_vm13, 1, %v5312_v1  ;;  %v1490_v29 = vmul.f32 %v2731_v33, %v1430_v17  ;;  %vm2075_vm13 = vcmp.eq.s32.totalorder %v3610_v2, 5  ;;  %v1435_v17 = vld [vmem:[#allocation2 + $0x8] sm:$0x7f] }
 0x264   : > { %v1192_v59 = vadd.f32 %v1191_v53, %v1189_v39  ;;  %v3691_v39 = vsel %vm1457_vm3, 1.0, %v5277_v8  ;;  %v1171_v53 = vld [vmem:[#allocation2 + $0x38] sm:$0x7f]  ;;  %vm3710_vm3 = vcmp.eq.s32.totalorder %v1855_v38, 1  ;;  %v2005_v24 = vsel %vm1992_vm7, 1, %v5312_v1 }
 0x265   : > { %v2088_v46 = vsel %vm2075_vm13, 1, %v5312_v1 }
 0x266   : > { %v1195_v3 = vadd.f32 %v1194_v61, %v1192_v59  ;;  %v1924_v59 = vsel %vm1911_vm10, 1, %v5312_v1  ;;  %v1203_v61 = vadd.f32 %v3590_v30, %v1171_v53  ;;  %v1721_v30 = vsel %vm3682_vm5, %v3694_v54, 0.0 }
 0x267   : > { %vm3721_vm10 = vcmp.eq.s32.totalorder %v1856_v44, 1  ;;  %v1937_v14 = vperm.slane %v1924_v59, 0  ;;  %vm3760_vm5 = vcmp.eq.s32.totalorder %v1936_v13, 1  ;;  %v2020_v44 = vperm.slane %v2007_v27, 0 }
 0x268   : > { %v1198_v6 = vadd.f32 %v1197_v60, %v1195_v3  ;;  %v1508_v53 = vsel %vm5275_vm2, %v1490_v29, 0.0 }
 0x269   : > { %vm3764_vm14 = vcmp.eq.s32.totalorder %v1937_v14, 1  ;;  %v1434_v14 = vld [vmem:[#allocation2 + $0x20] sm:$0x7f] }
 0x26a   : > { %v1201_v11 = vadd.f32 %v1200_v7, %v1198_v6  ;;  %v1429_v7 = vld [vmem:[#allocation2 + $0x30] sm:$0x7f] }
 0x26b   : > { %v1489_v12 = vmul.f32 %v3624_v9, %v1429_v7  ;;  %v2018_v9 = vperm.slane %v2005_v24, 0  ;;  %v1509_v7 = vrot.slane %v1508_v53, 4 }
 0x26c   : > { %v1202_v16 = vmax.f32 %v1201_v11, 1e-30  ;;  %v3726_v11 = vpop.permute.xlu2 %1881 }
 0x26d   : > { %v1884_v19 = vsel %vm3706_vm1, %v3726_v11, 0.0  ;;  %v1885_v22 = vsel %vm3710_vm3, %v3726_v11, 0.0  ;;  %v1886_v23 = vsel %vm3721_vm10, %v3726_v11, 0.0  ;;  %v1501_v33 = vsel %vm5275_vm2, %v1489_v12, 0.0 }
 0x26e   : > { %2927 = vlog2.f32 %v1202_v16  ;;  %v3730_v16 = vpop.permute.xlu1 %1799  ;;  %vm3787_vm1 = vcmp.eq.s32.totalorder %v2018_v9, 1  ;;  %v1502_v4 = vrot.slane %v1501_v33, 4  ;;  %vm3803_vm3 = vcmp.eq.s32.totalorder %v2020_v44, 1 }
 0x26f   : > { %v1802_v38 = vsel %vm3666_vm15, %v3730_v16, 0.0  ;;  %v1803_v52 = vsel %vm3674_vm8, %v3730_v16, 0.0  ;;  %v1804_v42 = vsel %vm3678_vm12, %v3730_v16, 0.0  ;;  %vm3782_vm15 = vcmp.eq.s32.totalorder %v1938_v31, 1  ;;  %v3817_v31 = vpop.permute.xlu0 %2045 }
 0x270   : > { %v1815_v55 = vadd.f32 %v1802_v38, %v1720_v0  ;;  %v1816_v5 = vadd.f32 %v1803_v52, %v1721_v30  ;;  %vm2156_vm8 = vcmp.eq.s32.totalorder %v3606_v63, 6  ;;  %5368 = vst [vmem:[#allocation21_spill] sm:$0xff] %v3817_v31  ;;  %v2891_v38 = vld [vmem:[%s3375_s29 + $0x6] ss:$0 sm:$0xff]  ;;  %v1510_v9 = vadd.f32 %v1509_v7, %v1508_v53  ;;  %v3864_v7 = vld [vmem:[%s3375_s29 + $0x9] ss:$0 sm:$0xff] }
 0x271   : > { %vm2158_vm10 = vcmp.eq.s32.totalorder %v3618_v36, 6  ;;  %v2050_v59 = vsel %vm3803_vm3, %v3817_v31, 0.0 }
 0x272   : > { %v1511_v53 = vrot.slane %v1510_v9, 2 }
 0x274   : > { %v2928_v45 = vpop.eup %2927 }
 0x275   : > { %v1205_v62 = vmul.f32 0.6931472, %v2928_v45  ;;  %v1431_v45 = vld [vmem:[#allocation2 + $0x58] sm:$0x7f] }
 0x276   : > { %v1491_v0 = vmul.f32 %v3656_v34, %v1431_v45  ;;  %v3797_v13 = vpop.permute.xlu1 %1963  ;;  %v1897_v34 = vadd.f32 %v1884_v19, %v1815_v55 }
 0x277   : > { %v1206_v6 = vadd.f32 %v1205_v62, %v1203_v61  ;;  %v1432_v62 = vld [vmem:[#allocation2 + $0x18] sm:$0x7f]  ;;  %5363 = vst [vmem:[#allocation20_spill] sm:$0xff] %v3797_v13  ;;  %v1966_v12 = vsel %vm3760_vm5, %v3797_v13, 0.0  ;;  %v1967_v32 = vsel %vm3764_vm14, %v3797_v13, 0.0  ;;  %vm1459_vm5 = vcmp.eq.s32.totalorder %v3451_v37, %v2891_v38 }
 0x278   : > { %v1492_v24 = vmul.f32 %v3664_v41, %v1432_v62  ;;  %v1515_v29 = vsel %vm5275_vm2, %v1491_v0, 0.0  ;;  %v1898_v41 = vadd.f32 %v1885_v22, %v1816_v5  ;;  %v3844_v62 = vpop.permute.xlu2 %1379 }
 0x279   : > { %v3744_v21 = vsel %vm3714_vm6, %v1206_v6, %v3586_v25  ;;  %v2006_v25 = vsel %vm1993_vm4, 1, %v5312_v1  ;;  %vm2074_vm4 = vcmp.eq.s32.totalorder %v3606_v63, 5  ;;  %v1817_v6 = vadd.f32 %v1804_v42, %v1722_v18  ;;  %5369 = vst [vmem:[#allocation22_spill] sm:$0xff] %v3844_v62  ;;  %v1428_v62 = vld [vmem:[%s4029_s1 + $0xc] sm:$0x1] }
 0x27a   : > { %v1213_v26 = vsel %vm5275_vm2, %v3744_v21, -inf  ;;  %v2019_v43 = vperm.slane %v2006_v25, 0  ;;  %v2087_v61 = vsel %vm2074_vm4, 1, %v5312_v1  ;;  %v2101_v18 = vperm.slane %v2088_v46, 0  ;;  %v2892_v46 = vld [vmem:[%s3375_s29 + $0x7] ss:$0 sm:$0xff] }
 0x27b   : > { %v1214_v28 = vrot.slane %v1213_v26, 4  ;;  %v2100_v30 = vperm.slane %v2087_v61, 0  ;;  %v2102_v25 = vperm.slane %v3793_v47, 0  ;;  %vm2157_vm6 = vcmp.eq.s32.totalorder %v3610_v2, 6  ;;  %v1433_v61 = vld [vmem:[#allocation2 + $0x50] sm:$0x7f] }
 0x27c   : > { %vm3799_vm12 = vcmp.eq.s32.totalorder %v2019_v43, 1  ;;  %v1899_v19 = vadd.f32 %v1886_v23, %v1817_v6  ;;  %v3829_v44 = vsel %vm5275_vm2, %v1492_v24, 0.0  ;;  %v1516_v22 = vrot.slane %v1515_v29, 4  ;;  %v2893_v47 = vld [vmem:[%s3375_s29 + $0x8] ss:$0 sm:$0xff] }
 0x27d   : > { %v1215_v40 = vmax.f32 %v1213_v26, %v1214_v28  ;;  %v2890_v26 = vld [vmem:[%s3375_s29 + $0x5] ss:$0 sm:$0xff]  ;;  %v1503_v28 = vadd.f32 %v1502_v4, %v1501_v33  ;;  %v1979_v33 = vadd.f32 %v1966_v12, %v1897_v34  ;;  %v2048_v23 = vsel %vm3787_vm1, %v3817_v31, 0.0 }
 0x27e   : > { %vm1458_vm7 = vcmp.eq.s32.totalorder %v3451_v37, %v2890_v26  ;;  %v2049_v35 = vsel %vm3799_vm12, %v3817_v31, 0.0  ;;  %v1980_v42 = vadd.f32 %v1967_v32, %v1898_v41  ;;  %v1523_v55 = vrot.slane %v3829_v44, 4  ;;  %v3850_v4 = vpop.permute.xlu1 %2127 }
 0x27f   : > { %v1216_v48 = vrot.slane %v1215_v40, 2  ;;  %v1504_v52 = vrot.slane %v1503_v28, 2  ;;  %v2061_v3 = vadd.f32 %v2048_v23, %v1979_v33  ;;  %5370 = vst [vmem:[#allocation23_spill] sm:$0xff] %v3850_v4  ;;  %vm3852_vm14 = vcmp.eq.s32.totalorder %v2100_v30, 1 }
 0x280   : > { %vm3856_vm4 = vcmp.eq.s32.totalorder %v2101_v18, 1  ;;  %v2169_v6 = vsel %vm2156_vm8, 1, %v5312_v1  ;;  %v2735_v34 = vsel %vm1458_vm7, 1.0, %v5277_v8  ;;  %v2736_v30 = vsel %vm1459_vm5, 1.0, %v5277_v8 }
 0x281   : > { %v1217_v60 = vmax.f32 %v1215_v40, %v1216_v48  ;;  %v1968_v40 = vsel %vm3782_vm15, %v3797_v13, 0.0  ;;  %v1493_v18 = vmul.f32 %v3691_v39, %v1433_v61  ;;  %vm3873_vm13 = vcmp.eq.s32.totalorder %v2102_v25, 1 }
 0x282   : > { %v1981_v48 = vadd.f32 %v1968_v40, %v1899_v19  ;;  %v2170_v63 = vsel %vm2157_vm6, 1, %v5312_v1  ;;  %v2130_v26 = vsel %vm3852_vm14, %v3850_v4, 0.0  ;;  %v2182_v41 = vperm.slane %v2169_v6, 0 }
 0x283   : > { %v1218_v20 = vrot.slane %v1217_v60, 1  ;;  %vm1460_vm0 = vcmp.eq.s32.totalorder %v3451_v37, %v2892_v46  ;;  %vm1461_vm15 = vcmp.eq.s32.totalorder %v3451_v37, %v2893_v47  ;;  %v1494_v25 = vmul.f32 %v2735_v34, %v1434_v14 }
 0x284   : > { %v2063_v24 = vadd.f32 %v2050_v59, %v1981_v48  ;;  %v1495_v19 = vmul.f32 %v2736_v30, %v1435_v17  ;;  %v3888_v38 = vadd.f32 %v1504_v52, %v1503_v28  ;;  %v3890_v2 = vadd.f32 %v1511_v53, %v1510_v9  ;;  %v1436_v52 = vld [vmem:[#allocation2 + $0x38] sm:$0x7f] }
 0x285   : > { %v3814_v27 = vmax.f32 %v1217_v60, %v1218_v20  ;;  %v3848_v60 = vadd.f32 %v1516_v22, %v1515_v29  ;;  %v2062_v20 = vadd.f32 %v2049_v35, %v1980_v42  ;;  %v2171_v29 = vsel %vm2158_vm10, 1, %v5312_v1 }
 0x286   : > { %v2131_v36 = vsel %vm3856_vm4, %v3850_v4, 0.0  ;;  %vm1462_vm1 = vcmp.eq.s32.totalorder %v3451_v37, %v3864_v7  ;;  %v2132_v33 = vsel %vm3873_vm13, %v3850_v4, 0.0  ;;  %v2143_v22 = vadd.f32 %v2130_v26, %v2061_v3  ;;  %v3912_v3 = vpop.permute.xlu2 %2209  ;;  %v2895_v26 = vld [vmem:[%s3375_s29 + $0xa] ss:$0 sm:$0xff] }
 0x287   : > { %v1220_v43 = vsub.f32 %v3744_v21, %v3814_v27  ;;  %v2183_v23 = vperm.slane %v2170_v63, 0  ;;  %v1529_v28 = vsel %vm5275_vm2, %v1493_v18, 0.0  ;;  %v2737_v42 = vsel %vm1460_vm0, 1.0, %v5277_v8  ;;  %5379 = vst [vmem:[#allocation24_spill] sm:$0xff] %v3912_v3  ;;  %v1437_v63 = vld [vmem:[#allocation2 + $0x28] sm:$0x7f] }
 0x288   : > { %v2144_v48 = vadd.f32 %v2131_v36, %v2062_v20  ;;  %vm3906_vm8 = vcmp.eq.s32.totalorder %v2182_v41, 1  ;;  %v1536_v59 = vsel %vm5275_vm2, %v1494_v25, 0.0  ;;  %v1543_v61 = vsel %vm5275_vm2, %v1495_v19, 0.0 }
 0x289   : > { %v1221_v45 = vmul.f32 1.442695, %v1220_v43  ;;  %v1530_v14 = vrot.slane %v1529_v28, 4  ;;  %v2145_v17 = vadd.f32 %v2132_v33, %v2063_v24  ;;  %v2184_v46 = vperm.slane %v2171_v29, 0 }
 0x28a   : > { %vm3915_vm12 = vcmp.eq.s32.totalorder %v2183_v23, 1  ;;  %v1496_v34 = vmul.f32 %v2737_v42, %v1436_v52  ;;  %v2738_v41 = vsel %vm1461_vm15, 1.0, %v5277_v8  ;;  %v2212_v24 = vsel %vm3906_vm8, %v3912_v3, 0.0 }
 0x28b   : > { %2929 = vpow2.f32 %v1221_v45  ;;  %v1524_v29 = vadd.f32 %v1523_v55, %v3829_v44  ;;  %v1537_v25 = vrot.slane %v1536_v59, 4  ;;  %v1544_v19 = vrot.slane %v1543_v61, 4  ;;  %v2896_v55 = vld [vmem:[%s3375_s29 + $0xb] ss:$0 sm:$0xff] }
 0x28c   : > { %vm3931_vm3 = vcmp.eq.s32.totalorder %v2184_v46, 1  ;;  %v2213_v47 = vsel %vm3915_vm12, %v3912_v3, 0.0  ;;  %v1497_v23 = vmul.f32 %v2738_v41, %v1437_v63  ;;  %vm1463_vm6 = vcmp.eq.s32.totalorder %v3451_v37, %v2895_v26 }
 0x28d   : > { %v1538_v52 = vadd.f32 %v1537_v25, %v1536_v59  ;;  %v1545_v42 = vadd.f32 %v1544_v19, %v1543_v61  ;;  %v2214_v46 = vsel %vm3931_vm3, %v3912_v3, 0.0  ;;  %v3951_v20 = vadd.f32 %v2212_v24, %v2143_v22 }
 0x28e   : > { %v1557_v7 = vsel %vm5275_vm2, %v1497_v23, 0.0  ;;  %vm1464_vm10 = vcmp.eq.s32.totalorder %v3451_v37, %v2896_v55  ;;  %v2740_v59 = vsel %vm1463_vm6, 1.0, %v5277_v8  ;;  %vm5402_vm12 = vcmp.gt.s32.totalorder %v3490_v15, 5 }
 0x28f   : > { %5384 = vst [vmem:[#allocation25_spill] sm:$0xff] %v3951_v20  ;;  %v1539_v41 = vrot.slane %v1538_v52, 2  ;;  %v1546_v22 = vrot.slane %v1545_v42, 2  ;;  %v1558_v19 = vrot.slane %v1557_v7, 4  ;;  %v2741_v26 = vsel %vm1464_vm10, 1.0, %v5277_v8 }
 0x290   : > { %vm5403_vm10 = vcmp.gt.s32.totalorder %v3490_v15, 6 }
 0x291   : > { %v2930_v39 = vpop.eup %2929  ;;  %v3974_v23 = vadd.f32 %v1539_v41, %v1538_v52  ;;  %v3978_v55 = vadd.f32 %v1558_v19, %v1557_v7  ;;  %v1423_v7 = vld [vmem:[%s4029_s1 + $0x7] sm:$0x1] }
 0x292   : > { %v1223_v32 = vperm.slane %v2930_v39, 0  ;;  %v1225_v40 = vperm.slane %v2930_v39, 1  ;;  %v1228_v43 = vperm.slane %v2930_v39, 2  ;;  %v1231_v45 = vperm.slane %v2930_v39, 3 }
 0x293   : > { %v1234_v6 = vperm.slane %v2930_v39, 4  ;;  %v1237_v12 = vperm.slane %v2930_v39, 5  ;;  %5387 = vst [vmem:[#allocation28_spill] sm:$0xff] %v3974_v23 }
 0x294   : > { %v1224_v9 = vmul.f32 %v1223_v32, %v3461_v50  ;;  %v1226_v35 = vmul.f32 %v1225_v40, %v3467_v57  ;;  %v1229_v5 = vmul.f32 %v1228_v43, %v3463_v51  ;;  %v1232_v18 = vmul.f32 %v1231_v45, %v3469_v58  ;;  %5389 = vst [vmem:[#allocation30_spill] sm:$0xff] %v3978_v55 }
 0x295   : > { %v1235_v32 = vmul.f32 %v1234_v6, %v3459_v49  ;;  %v1240_v40 = vperm.slane %v2930_v39, 6  ;;  %v1531_v43 = vadd.f32 %v1530_v14, %v1529_v28  ;;  %v1238_v44 = vmul.f32 %v1237_v12, %v3465_v56 }
 0x296   : > { %v1227_v0 = vadd.f32 %v1226_v35, %v1224_v9  ;;  %v1550_v9 = vsel %vm5275_vm2, %v1496_v34, 0.0  ;;  %v1518_v39 = vrot.slane %v3848_v60, 2  ;;  %v2739_v28 = vsel %vm1462_vm1, 1.0, %v5277_v8 }
 0x297   : > { %v1525_v45 = vrot.slane %v1524_v29, 2  ;;  %v1532_v6 = vrot.slane %v1531_v43, 2  ;;  %v1551_v14 = vrot.slane %v1550_v9, 4  ;;  %v3953_v34 = vadd.f32 %v2213_v47, %v2144_v48 }
 0x298   : > { %v1230_v30 = vadd.f32 %v1229_v5, %v1227_v0  ;;  %v1241_v0 = vmul.f32 %v1240_v40, %v3479_v10  ;;  %v1438_v5 = vld [vmem:[#allocation2 + $0x48] sm:$0x7f]  ;;  %v1519_v61 = vadd.f32 %v1518_v39, %v3848_v60  ;;  %v1506_v40 = vrot.slane %v3888_v38, 1 }
 0x299   : > { %5385 = vst [vmem:[#allocation26_spill] sm:$0xff] %v3953_v34  ;;  %v1498_v12 = vmul.f32 %v2739_v28, %v1438_v5  ;;  %v1526_v63 = vadd.f32 %v1525_v45, %v1524_v29  ;;  %v1533_v48 = vadd.f32 %v1532_v6, %v1531_v43  ;;  %v1552_v25 = vadd.f32 %v1551_v14, %v1550_v9  ;;  %v1406_v5 = vld [vmem:[%s3375_s29 + $0x3] sm:$0x1]  ;;  %v1407_v6 = vld [vmem:[%s3375_s29 + $0x4] sm:$0x1] }
 0x29a   : > { %v1233_v36 = vadd.f32 %v1232_v18, %v1230_v30  ;;  %v1439_v18 = vld [vmem:[#allocation2 + $0x10] sm:$0x7f]  ;;  %v1513_v29 = vrot.slane %v3890_v2, 1  ;;  %v1520_v33 = vrot.slane %v1519_v61, 1  ;;  %v3976_v9 = vadd.f32 %v1546_v22, %v1545_v42 }
 0x29b   : > { %v1499_v60 = vmul.f32 %v2740_v59, %v1439_v18  ;;  %v1527_v47 = vrot.slane %v1526_v63, 1  ;;  %v3981_v39 = vsel %vm5275_vm2, %v1498_v12, 0.0  ;;  %v3986_v28 = vadd.f32 %v1506_v40, %v3888_v38  ;;  %v1408_v14 = vld [vmem:[%s3375_s29 + $0x5] sm:$0x1]  ;;  %v1411_v12 = vld [vmem:[%s3375_s29 + $0x8] sm:$0x1] }
 0x29c   : > { %v1236_v35 = vadd.f32 %v1235_v32, %v1233_v36  ;;  %v3961_v36 = vadd.f32 %v2214_v46, %v2145_v17  ;;  %v3964_v32 = vld [vmem:[%s3484_s6] sm:$0x1]  ;;  %5388 = vst [vmem:[#allocation29_spill] sm:$0xff] %v3976_v9  ;;  %v1212_v18 = vld [vmem:[#allocation2 + $0x28] sm:$0x7f] }
 0x29d   : > { %vm5267_vm7 = vcmp.gt.s32.totalorder %v3964_v32, 8  ;;  %vm5276_vm5 = vcmp.gt.s32.totalorder %v3964_v32, 9  ;;  %v1440_v17 = vld [vmem:[#allocation2 + $0x40] sm:$0x7f]  ;;  %5390 = vst [vmem:[#allocation31_spill] sm:$0xff] %v3981_v39  ;;  %vm5274_vm14 = vcmp.gt.s32.totalorder %v3964_v32, 10  ;;  %v4001_v46 = vadd.f32 %v1527_v47, %v1526_v63 }
 0x29e   : > { %v1239_v53 = vadd.f32 %v1238_v44, %v1236_v35  ;;  %5386 = vst [vmem:[#allocation27_spill] sm:$0xff] %v3961_v36  ;;  %v1249_v43 = vsel %vm5267_vm7, 1, %v5312_v1  ;;  %v1534_v35 = vrot.slane %v1533_v48, 1  ;;  %v1553_v44 = vrot.slane %v1552_v25, 2  ;;  %v1412_v40 = vld [vmem:[%s3375_s29 + $0x9] sm:$0x1] }
 0x29f   : > { %vm5273_vm4 = vcmp.gt.s32.totalorder %v3964_v32, 11  ;;  %5391 = vst [vmem:[#allocation32_spill] sm:$0xff] %v3986_v28  ;;  %v3989_v45 = vadd.s32 1, %v3964_v32  ;;  %v1250_v52 = vperm.slane %v1249_v43, 0  ;;  %v3991_v42 = vmul.f32 %v2741_v26, %v1440_v17  ;;  %v1418_v43 = vld [vmem:[%s4029_s1 + $0x2] sm:$0x1] }
 0x2a0   : > { %v1242_v30 = vadd.f32 %v1241_v0, %v1239_v53  ;;  %v3994_v53 = vadd.f32 %v1513_v29, %v3890_v2  ;;  %v3996_v0 = vadd.f32 %v1520_v33, %v1519_v61  ;;  %5396 = vst [vmem:[#allocation37_spill] sm:$0xff] %v4001_v46  ;;  %v1409_v2 = vld [vmem:[%s3375_s29 + $0x6] sm:$0x1]  ;;  %v1410_v61 = vld [vmem:[%s3375_s29 + $0x7] sm:$0x1]  ;;  %v4009_v41 = vadd.f32 %v1534_v35, %v1533_v48 }
 0x2a1   : > { %5392 = vst [vmem:[#allocation33_spill] sm:$0xff] %v3989_v45  ;;  %v4011_v22 = vadd.f32 %v1553_v44, %v1552_v25  ;;  %v1244_v19 = vadd.f32 %v3814_v27, %v1212_v18  ;;  %v1413_v29 = vld [vmem:[%s3375_s29 + $0xa] sm:$0x1]  ;;  %vm1635_vm0 = vcmp.gt.s32.totalorder %v3964_v32, 12  ;;  %vm4022_vm15 = vcmp.eq.s32.totalorder %v1250_v52, 1 }
 0x2a2   : > { %v1243_v24 = vmax.f32 %v1242_v30, 1e-30  ;;  %5393 = vst [vmem:[#allocation34_spill] sm:$0xff] %v3991_v42  ;;  %v1414_v25 = vld [vmem:[%s3375_s29 + $0xb] sm:$0x1]  ;;  %vm5272_vm1 = vcmp.gt.s32.totalorder %v3989_v45, 1 }
 0x2a3   : > { %5394 = vst [vmem:[#allocation35_spill] sm:$0xff] %v3994_v53  ;;  %v1416_v27 = vld [vmem:[%s4029_s1] sm:$0x1]  ;;  %vm5270_vm8 = vcmp.gt.s32.totalorder %v3989_v45, 2  ;;  %v1419_v17 = vld [vmem:[%s4029_s1 + $0x3] sm:$0x1] }
 0x2a4   : > { %2931 = vlog2.f32 %v1243_v24  ;;  %5395 = vst [vmem:[#allocation36_spill] sm:$0xff] %v3996_v0  ;;  %v4015_v24 = vsel %vm5275_vm2, %v1499_v60, 0.0  ;;  %v1417_v60 = vld [vmem:[%s4029_s1 + $0x1] sm:$0x1]  ;;  %v1420_v47 = vld [vmem:[%s4029_s1 + $0x4] sm:$0x1] }
 0x2a5   : > { %5397 = vst [vmem:[#allocation38_spill] sm:$0xff] %v4009_v41  ;;  %vm5269_vm3 = vcmp.gt.s32.totalorder %v3989_v45, 4  ;;  %vm5271_vm6 = vcmp.gt.s32.totalorder %v3989_v45, 5  ;;  %v1415_v35 = vld [vmem:[%s3375_s29 + $0xc] sm:$0x1]  ;;  %v4046_v44 = vsel %vm5266_vm9, %v1406_v5, 6 }
 0x2a6   : > { %5398 = vst [vmem:[#allocation39_spill] sm:$0xff] %v4011_v22  ;;  %v4050_v52 = vsel %vm5268_vm11, %v1407_v6, 6  ;;  %vm5295_vm13 = vcmp.gt.s32.totalorder %v3989_v45, 8  ;;  %v4065_v5 = vsel %vm5403_vm10, %v1409_v2, 6  ;;  %vm5404_vm9 = vcmp.gt.s32.totalorder %v3490_v15, 7  ;;  %s450_s29 = scalar_lea.vmem [#allocation10], %s3359_s11 }
 0x2a7   : > { %5399 = vst [vmem:[#allocation40_spill] sm:$0xff] %v4015_v24  ;;  %v4069_v6 = vsel %vm5404_vm9, %v1410_v61, 6  ;;  %v4080_v48 = vsel %vm5276_vm5, %v1412_v40, 6  ;;  %v4084_v2 = vsel %vm5274_vm14, %v1413_v29, 6  ;;  %v4088_v61 = vsel %vm5273_vm4, %v1414_v25, 6  ;;  %s2446_s0 = sshll.u32 %s450_s29, 4  ;;  %s2447_s0 = int_to_ptr.vmem [resolvable:$true] %s2446_s0 }
 0x2a8   : > { %vm5294_vm9 = vcmp.gt.s32.totalorder %v3989_v45, 9  ;;  %v4102_v29 = vsel %vm5272_vm1, %v1417_v60, 6  ;;  %vm5292_vm10 = vcmp.gt.s32.totalorder %v3989_v45, 11  ;;  %v4107_v25 = vsel %vm5270_vm8, %v1418_v43, 6  ;;  %v1425_v22 = vld [vmem:[%s4029_s1 + $0x9] sm:$0x1] }
 0x2a9   : > { %5407 = vst [vmem:[#allocation42_spill] sm:$0xff] %v4102_v29  ;;  %vm1667_vm11 = vcmp.eq.s32.totalorder %v4050_v52, 0  ;;  %vm1669_vm8 = vcmp.eq.s32.totalorder %v4065_v5, 0  ;;  %vm1672_vm4 = vcmp.eq.s32.totalorder %v4080_v48, 0  ;;  %vm1674_vm14 = vcmp.eq.s32.totalorder %v4088_v61, 0 }
 0x2aa   : > { %v2932_v59 = vpop.eup %2931  ;;  %5408 = vst [vmem:[#allocation43_spill] sm:$0xff] %v4107_v25  ;;  %v1682_v30 = vsel %vm1669_vm8, 1, %v5312_v1  ;;  %v1685_v41 = vsel %vm1672_vm4, 1, %v5312_v1  ;;  %v1687_v55 = vsel %vm1674_vm14, 1, %v5312_v1  ;;  %v1426_v24 = vld [vmem:[%s4029_s1 + $0xa] sm:$0x1] }
 0x2ab   : > { %v1246_v26 = vmul.f32 0.6931472, %v2932_v59  ;;  %v4054_v59 = vsel %vm5402_vm12, %v1408_v14, 6  ;;  %v4073_v14 = vsel %vm5267_vm7, %v1411_v12, 6  ;;  %v4094_v12 = vsel %vm1635_vm0, %v1415_v35, 6 }
 0x2ac   : > { %vm5405_vm12 = vcmp.gt.s32.totalorder %v3989_v45, 0  ;;  %vm5409_vm7 = vcmp.gt.s32.totalorder %v3989_v45, 3  ;;  %v4115_v35 = vsel %vm5269_vm3, %v1420_v47, 6  ;;  %vm5291_vm0 = vcmp.gt.s32.totalorder %v3989_v45, 12  ;;  %v1427_v0 = vld [vmem:[%s4029_s1 + $0xb] sm:$0x1] }
 0x2ad   : > { %v1247_v33 = vadd.f32 %v1246_v26, %v1244_v19  ;;  %v1421_v19 = vld [vmem:[%s4029_s1 + $0x5] sm:$0x1]  ;;  %v4098_v40 = vsel %vm5405_vm12, %v1416_v27, 6  ;;  %v4111_v63 = vsel %vm5409_vm7, %v1419_v17, 6  ;;  %5411 = vst [vmem:[#allocation45_spill] sm:$0xff] %v4115_v35  ;;  %vm5413_vm12 = vcmp.gt.s32.totalorder %v3989_v45, 6 }
 0x2ae   : > { %5406 = vst [vmem:[#allocation41_spill] sm:$0xff] %v4098_v40  ;;  %v4119_v27 = vsel %vm5271_vm6, %v1421_v19, 6  ;;  %vm1666_vm7 = vcmp.eq.s32.totalorder %v4046_v44, 0  ;;  %vm1668_vm3 = vcmp.eq.s32.totalorder %v4054_v59, 0  ;;  %vm1670_vm6 = vcmp.eq.s32.totalorder %v4069_v6, 0 }
 0x2af   : > { %v4059_v18 = vsel %vm4022_vm15, %v1247_v33, %v3744_v21  ;;  %v1422_v21 = vld [vmem:[%s4029_s1 + $0x6] sm:$0x1]  ;;  %vm5293_vm15 = vcmp.gt.s32.totalorder %v3989_v45, 10  ;;  %5410 = vst [vmem:[#allocation44_spill] sm:$0xff] %v4111_v63  ;;  %vm1671_vm1 = vcmp.eq.s32.totalorder %v4073_v14, 0  ;;  %vm1675_vm5 = vcmp.eq.s32.totalorder %v4094_v12, 0 }
 0x2b0   : > { %v1254_v26 = vsel %vm5275_vm2, %v4059_v18, -inf  ;;  %5412 = vst [vmem:[#allocation46_spill] sm:$0xff] %v4119_v27  ;;  %v4125_v43 = vsel %vm5413_vm12, %v1422_v21, 6  ;;  %vm1673_vm12 = vcmp.eq.s32.totalorder %v4084_v2, 0  ;;  %vm5415_vm2 = vcmp.gt.s32.totalorder %v3989_v45, 7 }
 0x2b1   : > { %v1255_v33 = vrot.slane %v1254_v26, 4  ;;  %5414 = vst [vmem:[#allocation47_spill] sm:$0xff] %v4125_v43  ;;  %v4138_v47 = vsel %vm5415_vm2, %v1423_v7, 6  ;;  %v1679_v19 = vsel %vm1666_vm7, 1, %v5312_v1  ;;  %v1681_v38 = vsel %vm1668_vm3, 1, %v5312_v1 }
 0x2b2   : > { %5416 = vst [vmem:[#allocation48_spill] sm:$0xff] %v4138_v47  ;;  %v1683_v8 = vsel %vm1670_vm6, 1, %v5312_v1  ;;  %v1684_v7 = vsel %vm1671_vm1, 1, %v5312_v1  ;;  %v1686_v46 = vsel %vm1673_vm12, 1, %v5312_v1  ;;  %v1694_v53 = vperm.slane %v1681_v38, 0 }
 0x2b3   : > { %v1256_v60 = vmax.f32 %v1254_v26, %v1255_v33  ;;  %v1680_v26 = vsel %vm1667_vm11, 1, %v5312_v1  ;;  %v1424_v33 = vld [vmem:[%s4029_s1 + $0x8] sm:$0x1]  ;;  %v1695_v15 = vperm.slane %v1682_v30, 0  ;;  %v1696_v28 = vperm.slane %v1683_v8, 0 }
 0x2b4   : > { %v1693_v9 = vperm.slane %v1680_v26, 0  ;;  %v4157_v23 = vsel %vm5295_vm13, %v1424_v33, 6  ;;  %v1697_v47 = vperm.slane %v1684_v7, 0  ;;  %v1698_v43 = vperm.slane %v1685_v41, 0 }
 0x2b5   : > { %v1257_v17 = vrot.slane %v1256_v60, 2  ;;  %5417 = vst [vmem:[#allocation49_spill] sm:$0xff] %v4157_v23  ;;  %v1699_v36 = vperm.slane %v1686_v46, 0  ;;  %v4164_v27 = vsel %vm5294_vm9, %v1425_v22, 6  ;;  %v1700_v26 = vperm.slane %v1687_v55, 0 }
 0x2b6   : > { %5418 = vst [vmem:[#allocation50_spill] sm:$0xff] %v4164_v27  ;;  %v4174_v8 = vsel %vm5292_vm10, %v1427_v0, 6  ;;  %vm4180_vm11 = vcmp.eq.s32.totalorder %v1693_v9, 1  ;;  %v4186_v30 = vsel %vm5291_vm0, %v1428_v62, 6  ;;  %vm4192_vm14 = vcmp.eq.s32.totalorder %v1695_v15, 1 }
 0x2b7   : > { %v1258_v21 = vmax.f32 %v1256_v60, %v1257_v17  ;;  %v1688_v60 = vsel %vm1675_vm5, 1, %v5312_v1  ;;  %v1692_v17 = vperm.slane %v1679_v19, 0  ;;  %v4168_v19 = vsel %vm5293_vm15, %v1426_v24, 6  ;;  %5420 = vst [vmem:[#allocation52_spill] sm:$0xff] %v4174_v8 }
 0x2b8   : > { %5419 = vst [vmem:[#allocation51_spill] sm:$0xff] %v4168_v19  ;;  %v1701_v33 = vperm.slane %v1688_v60, 0  ;;  %vm4188_vm5 = vcmp.eq.s32.totalorder %v1694_v53, 1  ;;  %vm4196_vm4 = vcmp.eq.s32.totalorder %v1696_v28, 1  ;;  %v5430_v0 = vmov 0 }
 0x2b9   : > { %v1259_v42 = vrot.slane %v1258_v21, 1  ;;  %vm4176_vm2 = vcmp.eq.s32.totalorder %v1692_v17, 1  ;;  %5425 = vst [vmem:[#allocation53_spill] sm:$0xff] %v4186_v30  ;;  %v5431_v0 = vsel %vm4196_vm4, 4294967295, %v5430_v0  ;;  %vm4200_vm1 = vcmp.eq.s32.totalorder %v1697_v47, 1 }
 0x2ba   : > { %v5432_v22 = vmov 0  ;;  %vm4204_vm8 = vcmp.eq.s32.totalorder %v1698_v43, 1  ;;  %v5434_v62 = vmov 0  ;;  %vm4208_vm3 = vcmp.eq.s32.totalorder %v1699_v36, 1 }
 0x2bb   : > { %v4159_v39 = vmax.f32 %v1258_v21, %v1259_v42  ;;  %v5433_v22 = vsel %vm4200_vm1, 4294967295, %v5432_v22  ;;  %v5435_v62 = vsel %vm4204_vm8, 4294967295, %v5434_v62  ;;  %v5436_v53 = vmov 0 }
 0x2bc   : > { %v5437_v53 = vsel %vm4208_vm3, 4294967295, %v5436_v53  ;;  %vm4212_vm6 = vcmp.eq.s32.totalorder %v1700_v26, 1  ;;  %vm4216_vm7 = vcmp.eq.s32.totalorder %v1701_v33, 1  ;;  %vm1749_vm12 = vcmp.eq.s32.totalorder %v4046_v44, 1 }
 0x2bd   : > { %v1261_v38 = vsub.f32 %v4059_v18, %v4159_v39  ;;  %vm1750_vm0 = vcmp.eq.s32.totalorder %v4050_v52, 1  ;;  %vm1751_vm10 = vcmp.eq.s32.totalorder %v4054_v59, 1  ;;  %vm1752_vm15 = vcmp.eq.s32.totalorder %v4065_v5, 1 }
 0x2be   : > { %vm1753_vm9 = vcmp.eq.s32.totalorder %v4069_v6, 1  ;;  %vm1754_vm13 = vcmp.eq.s32.totalorder %v4073_v14, 1  ;;  %vm1755_vm1 = vcmp.eq.s32.totalorder %v4080_v48, 1  ;;  %vm1756_vm8 = vcmp.eq.s32.totalorder %v4084_v2, 1 }
 0x2bf   : > { %v1262_v9 = vmul.f32 1.442695, %v1261_v38  ;;  %vm1757_vm4 = vcmp.eq.s32.totalorder %v4088_v61, 1  ;;  %vm1758_vm3 = vcmp.eq.s32.totalorder %v4094_v12, 1  ;;  %v1762_v38 = vsel %vm1749_vm12, 1, %v5312_v1 }
 0x2c0   : > { %v1764_v17 = vsel %vm1751_vm10, 1, %v5312_v1  ;;  %v1765_v60 = vsel %vm1752_vm15, 1, %v5312_v1  ;;  %v1766_v7 = vsel %vm1753_vm9, 1, %v5312_v1  ;;  %v1767_v47 = vsel %vm1754_vm13, 1, %v5312_v1 }
 0x2c1   : > { %2933 = vpow2.f32 %v1262_v9  ;;  %v1763_v9 = vsel %vm1750_vm0, 1, %v5312_v1  ;;  %v1768_v26 = vsel %vm1755_vm1, 1, %v5312_v1  ;;  %v1769_v36 = vsel %vm1756_vm8, 1, %v5312_v1 }
 0x2c2   : > { %v1770_v33 = vsel %vm1757_vm4, 1, %v5312_v1  ;;  %v1771_v30 = vsel %vm1758_vm3, 1, %v5312_v1  ;;  %v1775_v8 = vperm.slane %v1762_v38, 0  ;;  %v1776_v19 = vperm.slane %v1763_v9, 0 }
 0x2c3   : > { %v1777_v27 = vperm.slane %v1764_v17, 0  ;;  %v1778_v23 = vperm.slane %v1765_v60, 0  ;;  %v1779_v35 = vperm.slane %v1766_v7, 0  ;;  %v1780_v63 = vperm.slane %v1767_v47, 0 }
 0x2c4   : > { %v1781_v37 = vperm.slane %v1768_v26, 0  ;;  %v1782_v25 = vperm.slane %v1769_v36, 0  ;;  %v1783_v29 = vperm.slane %v1770_v33, 0  ;;  %v1784_v13 = vperm.slane %v1771_v30, 0 }
 0x2c5   : > { %vm4273_vm13 = vcmp.eq.s32.totalorder %v1775_v8, 1  ;;  %vm4277_vm9 = vcmp.eq.s32.totalorder %v1776_v19, 1  ;;  %vm4281_vm15 = vcmp.eq.s32.totalorder %v1777_v27, 1  ;;  %vm4285_vm10 = vcmp.eq.s32.totalorder %v1778_v23, 1 }
 0x2c6   : > { %vm4290_vm0 = vcmp.eq.s32.totalorder %v1779_v35, 1  ;;  %vm4294_vm4 = vcmp.eq.s32.totalorder %v1780_v63, 1  ;;  %vm4298_vm1 = vcmp.eq.s32.totalorder %v1781_v37, 1  ;;  %vm4302_vm8 = vcmp.eq.s32.totalorder %v1782_v25, 1 }
 0x2c7   : > { %v2934_v21 = vpop.eup %2933  ;;  %vm4306_vm3 = vcmp.eq.s32.totalorder %v1783_v29, 1  ;;  %vm4311_vm12 = vcmp.eq.s32.totalorder %v1784_v13, 1  ;;  %v1805_v37 = vsel %vm4273_vm13, %v3730_v16, 0.0  ;;  %v1806_v25 = vsel %vm4277_vm9, %v3730_v16, 0.0 }
 0x2c8   : > { %v1264_v43 = vperm.slane %v2934_v21, 0  ;;  %v1266_v24 = vperm.slane %v2934_v21, 1  ;;  %v1269_v45 = vperm.slane %v2934_v21, 2  ;;  %v1272_v3 = vperm.slane %v2934_v21, 3 }
 0x2c9   : > { %v1275_v31 = vperm.slane %v2934_v21, 4  ;;  %v1281_v35 = vperm.slane %v2934_v21, 6  ;;  %v1807_v29 = vsel %vm4281_vm15, %v3730_v16, 0.0  ;;  %v1809_v36 = vsel %vm4290_vm0, %v3730_v16, 0.0 }
 0x2ca   : > { %v1265_v34 = vmul.f32 %v1264_v43, %v3461_v50  ;;  %v1267_v20 = vmul.f32 %v1266_v24, %v3467_v57  ;;  %v1270_v4 = vmul.f32 %v1269_v45, %v3463_v51  ;;  %v1278_v45 = vperm.slane %v2934_v21, 5 }
 0x2cb   : > { %v1810_v47 = vsel %vm4294_vm4, %v3730_v16, 0.0  ;;  %v1811_v21 = vsel %vm4298_vm1, %v3730_v16, 0.0  ;;  %v1812_v7 = vsel %vm4302_vm8, %v3730_v16, 0.0  ;;  %v1813_v17 = vsel %vm4306_vm3, %v3730_v16, 0.0 }
 0x2cc   : > { %v1268_v40 = vadd.f32 %v1267_v20, %v1265_v34  ;;  %v1273_v34 = vmul.f32 %v1272_v3, %v3469_v58  ;;  %v1279_v30 = vmul.f32 %v1278_v45, %v3465_v56  ;;  %v1814_v26 = vsel %vm4311_vm12, %v3730_v16, 0.0 }
 0x2cd   : > { %v1282_v9 = vmul.f32 %v1281_v35, %v3479_v10  ;;  %v5462_v38 = vsel %vm4176_vm2, %v3694_v54, 0.0  ;;  %v5463_v24 = vsel %vm4180_vm11, %v3694_v54, 0.0  ;;  %v5465_v42 = vsel %vm4192_vm14, %v3694_v54, 0.0 }
 0x2ce   : > { %v1271_v20 = vadd.f32 %v1270_v4, %v1268_v40  ;;  %v1276_v40 = vmul.f32 %v1275_v31, %v3459_v49  ;;  %v1808_v31 = vsel %vm4285_vm10, %v3730_v16, 0.0  ;;  %v4351_v60 = vadd.f32 %v1805_v37, %v5462_v38 }
 0x2cf   : > { %v4357_v43 = vadd.f32 %v1806_v25, %v5463_v24  ;;  %vm1831_vm2 = vcmp.eq.s32.totalorder %v4046_v44, 2  ;;  %vm1832_vm13 = vcmp.eq.s32.totalorder %v4050_v52, 2  ;;  %vm1833_vm11 = vcmp.eq.s32.totalorder %v4054_v59, 2 }
 0x2d0   : > { %v1274_v3 = vadd.f32 %v1273_v34, %v1271_v20  ;;  %v5464_v20 = vsel %vm4188_vm5, %v3694_v54, 0.0  ;;  %v4369_v34 = vadd.f32 %v1808_v31, %v5465_v42  ;;  %vm1834_vm9 = vcmp.eq.s32.totalorder %v4065_v5, 2 }
 0x2d1   : > { %v4363_v16 = vadd.f32 %v1807_v29, %v5464_v20  ;;  %vm1835_vm15 = vcmp.eq.s32.totalorder %v4069_v6, 2  ;;  %vm5466_vm5 = vnez %v5431_v0  ;;  %vm1836_vm14 = vcmp.eq.s32.totalorder %v4073_v14, 2 }
 0x2d2   : > { %v1277_v13 = vadd.f32 %v1276_v40, %v1274_v3  ;;  %v5467_v55 = vsel %vm5466_vm5, %v3694_v54, 0.0  ;;  %vm1837_vm10 = vcmp.eq.s32.totalorder %v4080_v48, 2  ;;  %vm1838_vm0 = vcmp.eq.s32.totalorder %v4084_v2, 2 }
 0x2d3   : > { %v4380_v41 = vadd.f32 %v1809_v36, %v5467_v55  ;;  %vm1839_vm4 = vcmp.eq.s32.totalorder %v4088_v61, 2  ;;  %vm1840_vm1 = vcmp.eq.s32.totalorder %v4094_v12, 2  ;;  %v1844_v8 = vsel %vm1831_vm2, 1, %v5312_v1 }
 0x2d4   : > { %v1280_v33 = vadd.f32 %v1279_v30, %v1277_v13  ;;  %v1845_v19 = vsel %vm1832_vm13, 1, %v5312_v1  ;;  %v1846_v0 = vsel %vm1833_vm11, 1, %v5312_v1  ;;  %v1847_v27 = vsel %vm1834_vm9, 1, %v5312_v1 }
 0x2d5   : > { %v1848_v23 = vsel %vm1835_vm15, 1, %v5312_v1  ;;  %v1849_v4 = vsel %vm1836_vm14, 1, %v5312_v1  ;;  %v1850_v3 = vsel %vm1837_vm10, 1, %v5312_v1  ;;  %v1851_v40 = vsel %vm1838_vm0, 1, %v5312_v1 }
 0x2d6   : > { %v1283_v46 = vadd.f32 %v1282_v9, %v1280_v33  ;;  %vm5468_vm8 = vcmp.gt.s32.totalorder %v3964_v32, 9  ;;  %v1852_v63 = vsel %vm1839_vm4, 1, %v5312_v1  ;;  %v1853_v37 = vsel %vm1840_vm1, 1, %v5312_v1 }
 0x2d7   : > { %v1290_v35 = vsel %vm5468_vm8, 1, %v5312_v1  ;;  %v1857_v25 = vperm.slane %v1844_v8, 0  ;;  %v1858_v29 = vperm.slane %v1845_v19, 0  ;;  %v1859_v31 = vperm.slane %v1846_v0, 0 }
 0x2d8   : > { %v1284_v45 = vmax.f32 %v1283_v46, 1e-30  ;;  %v1860_v13 = vperm.slane %v1847_v27, 0  ;;  %v1861_v30 = vperm.slane %v1848_v23, 0  ;;  %vm5469_vm3 = vnez %v5433_v22  ;;  %v1253_v27 = vld [vmem:[#allocation2 + $0x48] sm:$0x7f] }
 0x2d9   : > { %v5470_v36 = vsel %vm5469_vm3, %v3694_v54, 0.0  ;;  %vm5471_vm12 = vnez %v5435_v62  ;;  %v1862_v24 = vperm.slane %v1849_v4, 0  ;;  %v1863_v20 = vperm.slane %v1850_v3, 0 }
 0x2da   : > { %2935 = vlog2.f32 %v1284_v45  ;;  %v4404_v33 = vadd.f32 %v1810_v47, %v5470_v36  ;;  %v5472_v9 = vsel %vm5471_vm12, %v3694_v54, 0.0  ;;  %v1291_v42 = vperm.slane %v1290_v35, 0 }
 0x2db   : > { %v4410_v38 = vadd.f32 %v1811_v21, %v5472_v9  ;;  %v1864_v46 = vperm.slane %v1851_v40, 0  ;;  %v1865_v55 = vperm.slane %v1852_v63, 0  ;;  %v1866_v45 = vperm.slane %v1853_v37, 0 }
 0x2dc   : > { %vm5473_vm2 = vnez %v5437_v53  ;;  %v5475_v62 = vsel %vm4212_vm6, %v3694_v54, 0.0  ;;  %v5476_v21 = vsel %vm4216_vm7, %v3694_v54, 0.0  ;;  %vm4430_vm13 = vcmp.eq.s32.totalorder %v1857_v25, 1 }
 0x2dd   : > { %v5474_v22 = vsel %vm5473_vm2, %v3694_v54, 0.0  ;;  %v4422_v47 = vadd.f32 %v1813_v17, %v5475_v62  ;;  %v4428_v19 = vadd.f32 %v1814_v26, %v5476_v21  ;;  %vm4434_vm11 = vcmp.eq.s32.totalorder %v1858_v29, 1 }
 0x2de   : > { %v4416_v8 = vadd.f32 %v1812_v7, %v5474_v22  ;;  %vm4438_vm9 = vcmp.eq.s32.totalorder %v1859_v31, 1  ;;  %vm4442_vm6 = vcmp.eq.s32.totalorder %v1860_v13, 1  ;;  %vm4446_vm7 = vcmp.eq.s32.totalorder %v1861_v30, 1 }
 0x2df   : > { %v1285_v17 = vadd.f32 %v4159_v39, %v1253_v27  ;;  %vm4451_vm15 = vcmp.eq.s32.totalorder %v1862_v24, 1  ;;  %vm4455_vm5 = vcmp.eq.s32.totalorder %v1863_v20, 1  ;;  %vm1292_vm14 = vcmp.eq.s32.totalorder %v1291_v42, 1 }
 0x2e0   : > { %v2936_v53 = vpop.eup %2935  ;;  %vm4459_vm10 = vcmp.eq.s32.totalorder %v1864_v46, 1  ;;  %vm4463_vm0 = vcmp.eq.s32.totalorder %v1865_v55, 1  ;;  %vm4467_vm4 = vcmp.eq.s32.totalorder %v1866_v45, 1  ;;  %v1887_v63 = vsel %vm4430_vm13, %v3726_v11, 0.0 }
 0x2e1   : > { %v1287_v26 = vmul.f32 0.6931472, %v2936_v53  ;;  %v1888_v37 = vsel %vm4434_vm11, %v3726_v11, 0.0  ;;  %v1889_v25 = vsel %vm4438_vm9, %v3726_v11, 0.0  ;;  %v1890_v29 = vsel %vm4442_vm6, %v3726_v11, 0.0 }
 0x2e2   : > { %v1891_v31 = vsel %vm4446_vm7, %v3726_v11, 0.0  ;;  %v1892_v13 = vsel %vm4451_vm15, %v3726_v11, 0.0  ;;  %v1893_v30 = vsel %vm4455_vm5, %v3726_v11, 0.0  ;;  %v1894_v9 = vsel %vm4459_vm10, %v3726_v11, 0.0 }
 0x2e3   : > { %v1288_v35 = vadd.f32 %v1287_v26, %v1285_v17  ;;  %v1895_v24 = vsel %vm4463_vm0, %v3726_v11, 0.0  ;;  %vm5497_vm1 = vcmask 1046528   ;;  %v4507_v46 = vadd.f32 %v1887_v63, %v4351_v60 }
 0x2e4   : > { %v4513_v55 = vadd.f32 %v1889_v25, %v4363_v16  ;;  %vm1913_vm8 = vcmp.eq.s32.totalorder %v4046_v44, 3  ;;  %vm1914_vm3 = vcmp.eq.s32.totalorder %v4050_v52, 3  ;;  %vm1915_vm12 = vcmp.eq.s32.totalorder %v4054_v59, 3 }
 0x2e5   : > { %v4493_v36 = vsel %vm1292_vm14, %v1288_v35, %v4059_v18  ;;  %v4510_v18 = vadd.f32 %v1888_v37, %v4357_v43  ;;  %vm1916_vm2 = vcmp.eq.s32.totalorder %v4065_v5, 3  ;;  %vm1917_vm13 = vcmp.eq.s32.totalorder %v4069_v6, 3 }
 0x2e6   : > { %v1295_v42 = vsel %vm5497_vm1, %v4493_v36, -inf  ;;  %vm1918_vm11 = vcmp.eq.s32.totalorder %v4073_v14, 3  ;;  %vm1919_vm9 = vcmp.eq.s32.totalorder %v4080_v48, 3  ;;  %vm1920_vm6 = vcmp.eq.s32.totalorder %v4084_v2, 3 }
 0x2e7   : > { %v1296_v45 = vrot.slane %v1295_v42, 4  ;;  %vm1921_vm7 = vcmp.eq.s32.totalorder %v4088_v61, 3  ;;  %vm1922_vm15 = vcmp.eq.s32.totalorder %v4094_v12, 3  ;;  %v1903_v43 = vadd.f32 %v1890_v29, %v4369_v34 }
 0x2e8   : > { %v1926_v16 = vsel %vm1913_vm8, 1, %v5312_v1  ;;  %v1927_v22 = vsel %vm1914_vm3, 1, %v5312_v1  ;;  %v1928_v62 = vsel %vm1915_vm12, 1, %v5312_v1  ;;  %v1929_v0 = vsel %vm1916_vm2, 1, %v5312_v1 }
 0x2e9   : > { %v1297_v60 = vmax.f32 %v1295_v42, %v1296_v45  ;;  %v1930_v53 = vsel %vm1917_vm13, 1, %v5312_v1  ;;  %v1931_v27 = vsel %vm1918_vm11, 1, %v5312_v1  ;;  %v1932_v7 = vsel %vm1919_vm9, 1, %v5312_v1 }
 0x2ea   : > { %v1933_v15 = vsel %vm1920_vm6, 1, %v5312_v1  ;;  %v1934_v28 = vsel %vm1921_vm7, 1, %v5312_v1  ;;  %v1935_v34 = vsel %vm1922_vm15, 1, %v5312_v1  ;;  %v1939_v17 = vperm.slane %v1926_v16, 0 }
 0x2eb   : > { %v1298_v21 = vrot.slane %v1297_v60, 2  ;;  %v1940_v26 = vperm.slane %v1927_v22, 0  ;;  %v1941_v23 = vperm.slane %v1928_v62, 0  ;;  %v1904_v4 = vadd.f32 %v1891_v31, %v4380_v41  ;;  %v5518_v62 = vld [vmem:[#allocation20_spill] sm:$0xff] }
 0x2ec   : > { %v1942_v3 = vperm.slane %v1929_v0, 0  ;;  %v1943_v40 = vperm.slane %v1930_v53, 0  ;;  %v1944_v35 = vperm.slane %v1931_v27, 0  ;;  %v1945_v37 = vperm.slane %v1932_v7, 0 }
 0x2ed   : > { %v1299_v54 = vmax.f32 %v1297_v60, %v1298_v21  ;;  %v1946_v25 = vperm.slane %v1933_v15, 0  ;;  %v1947_v29 = vperm.slane %v1934_v28, 0  ;;  %v1905_v42 = vadd.f32 %v1892_v13, %v4404_v33 }
 0x2ee   : > { %v1906_v45 = vadd.f32 %v1893_v30, %v4410_v38  ;;  %v1907_v20 = vadd.f32 %v1894_v9, %v4416_v8  ;;  %v1948_v1 = vperm.slane %v1935_v34, 0  ;;  %vm4542_vm5 = vcmp.eq.s32.totalorder %v1939_v17, 1 }
 0x2ef   : > { %v1300_v63 = vrot.slane %v1299_v54, 1  ;;  %vm4546_vm14 = vcmp.eq.s32.totalorder %v1940_v26, 1  ;;  %vm4550_vm10 = vcmp.eq.s32.totalorder %v1941_v23, 1  ;;  %v1908_v33 = vadd.f32 %v1895_v24, %v4422_v47 }
 0x2f0   : > { %vm4555_vm0 = vcmp.eq.s32.totalorder %v1942_v3, 1  ;;  %vm4559_vm1 = vcmp.eq.s32.totalorder %v1943_v40, 1  ;;  %vm4563_vm8 = vcmp.eq.s32.totalorder %v1944_v35, 1  ;;  %vm4569_vm3 = vcmp.eq.s32.totalorder %v1945_v37, 1 }
 0x2f1   : > { %v4540_v60 = vmax.f32 %v1299_v54, %v1300_v63  ;;  %vm4573_vm12 = vcmp.eq.s32.totalorder %v1946_v25, 1  ;;  %vm4577_vm2 = vcmp.eq.s32.totalorder %v1947_v29, 1  ;;  %vm4581_vm13 = vcmp.eq.s32.totalorder %v1948_v1, 1 }
 0x2f2   : > { %v1969_v21 = vsel %vm4542_vm5, %v5518_v62, 0.0  ;;  %v1970_v0 = vsel %vm4546_vm14, %v5518_v62, 0.0  ;;  %v1971_v53 = vsel %vm4550_vm10, %v5518_v62, 0.0  ;;  %v1972_v1 = vsel %vm4555_vm0, %v5518_v62, 0.0 }
 0x2f3   : > { %v1302_v30 = vsub.f32 %v4493_v36, %v4540_v60  ;;  %v1973_v7 = vsel %vm4559_vm1, %v5518_v62, 0.0  ;;  %v1974_v15 = vsel %vm4563_vm8, %v5518_v62, 0.0  ;;  %v5519_v28 = vsel %vm4467_vm4, %v3726_v11, 0.0 }
 0x2f4   : > { %v1909_v34 = vadd.f32 %v5519_v28, %v4428_v19  ;;  %v1975_v54 = vsel %vm4569_vm3, %v5518_v62, 0.0  ;;  %v1976_v17 = vsel %vm4573_vm12, %v5518_v62, 0.0  ;;  %v1977_v26 = vsel %vm4577_vm2, %v5518_v62, 0.0 }
 0x2f5   : > { %v1303_v27 = vmul.f32 1.442695, %v1302_v30  ;;  %v1978_v39 = vsel %vm4581_vm13, %v5518_v62, 0.0  ;;  %v4621_v11 = vadd.f32 %v1969_v21, %v4507_v46  ;;  %v4624_v19 = vadd.f32 %v1970_v0, %v4510_v18 }
 0x2f6   : > { %v4627_v23 = vadd.f32 %v1971_v53, %v4513_v55  ;;  %v4629_v3 = vadd.f32 %v1972_v1, %v1903_v43  ;;  %v4631_v40 = vadd.f32 %v1973_v7, %v1904_v4  ;;  %v4633_v35 = vadd.f32 %v1974_v15, %v1905_v42 }
 0x2f7   : > { %2937 = vpow2.f32 %v1303_v27  ;;  %v4635_v63 = vadd.f32 %v1975_v54, %v1906_v45  ;;  %v4637_v37 = vadd.f32 %v1976_v17, %v1907_v20  ;;  %vm1995_vm4 = vcmp.eq.s32.totalorder %v4046_v44, 4 }
 0x2f8   : > { %vm1996_vm11 = vcmp.eq.s32.totalorder %v4050_v52, 4  ;;  %vm1997_vm9 = vcmp.eq.s32.totalorder %v4054_v59, 4  ;;  %vm1998_vm6 = vcmp.eq.s32.totalorder %v4065_v5, 4  ;;  %vm1999_vm7 = vcmp.eq.s32.totalorder %v4069_v6, 4 }
 0x2f9   : > { %vm2000_vm15 = vcmp.eq.s32.totalorder %v4073_v14, 4  ;;  %v4645_v46 = vadd.f32 %v1977_v26, %v1908_v33  ;;  %v4647_v18 = vadd.f32 %v1978_v39, %v1909_v34  ;;  %vm2001_vm5 = vcmp.eq.s32.totalorder %v4080_v48, 4 }
 0x2fa   : > { %vm2002_vm14 = vcmp.eq.s32.totalorder %v4084_v2, 4  ;;  %vm2003_vm10 = vcmp.eq.s32.totalorder %v4088_v61, 4  ;;  %vm2004_vm0 = vcmp.eq.s32.totalorder %v4094_v12, 4  ;;  %v5520_v20 = vmov 0  }
 0x2fb   : > { %v2008_v55 = vsel %vm1995_vm4, 1, %v5520_v20  ;;  %v2009_v43 = vsel %vm1996_vm11, 1, %v5520_v20  ;;  %v2010_v25 = vsel %vm1997_vm9, 1, %v5520_v20  ;;  %v2011_v29 = vsel %vm1998_vm6, 1, %v5520_v20 }
 0x2fc   : > { %v2012_v42 = vsel %vm1999_vm7, 1, %v5520_v20  ;;  %v2013_v45 = vsel %vm2000_vm15, 1, %v5520_v20  ;;  %v2014_v33 = vsel %vm2001_vm5, 1, %v5520_v20  ;;  %v2015_v38 = vsel %vm2002_vm14, 1, %v5520_v20 }
 0x2fd   : > { %v2938_v4 = vpop.eup %2937  ;;  %v2016_v8 = vsel %vm2003_vm10, 1, %v5520_v20  ;;  %v2017_v13 = vsel %vm2004_vm0, 1, %v5520_v20  ;;  %v2021_v30 = vperm.slane %v2008_v55, 0  ;;  %v2022_v22 = vperm.slane %v2009_v43, 0 }
 0x2fe   : > { %v1305_v16 = vperm.slane %v2938_v4, 0  ;;  %v1307_v41 = vperm.slane %v2938_v4, 1  ;;  %v1310_v31 = vperm.slane %v2938_v4, 2  ;;  %v1313_v24 = vperm.slane %v2938_v4, 3 }
 0x2ff   : > { %v2023_v62 = vperm.slane %v2010_v25, 0  ;;  %v2024_v21 = vperm.slane %v2011_v29, 0  ;;  %v2025_v0 = vperm.slane %v2012_v42, 0  ;;  %v2026_v53 = vperm.slane %v2013_v45, 0 }
 0x300   : > { %v1306_v9 = vmul.f32 %v1305_v16, %v3461_v50  ;;  %v1308_v47 = vmul.f32 %v1307_v41, %v3467_v57  ;;  %v1311_v1 = vmul.f32 %v1310_v31, %v3463_v51  ;;  %v1316_v7 = vperm.slane %v2938_v4, 4 }
 0x301   : > { %v2027_v15 = vperm.slane %v2014_v33, 0  ;;  %v2028_v28 = vperm.slane %v2015_v38, 0  ;;  %v2029_v34 = vperm.slane %v2016_v8, 0  ;;  %v2030_v54 = vperm.slane %v2017_v13, 0 }
 0x302   : > { %v1309_v27 = vadd.f32 %v1308_v47, %v1306_v9  ;;  %vm4666_vm1 = vcmp.eq.s32.totalorder %v2021_v30, 1  ;;  %v1314_v39 = vmul.f32 %v1313_v24, %v3469_v58  ;;  %v1319_v55 = vperm.slane %v2938_v4, 5  ;;  %v5541_v30 = vld [vmem:[#allocation21_spill] sm:$0xff] }
 0x303   : > { %vm4671_vm8 = vcmp.eq.s32.totalorder %v2022_v22, 1  ;;  %vm4675_vm3 = vcmp.eq.s32.totalorder %v2023_v62, 1  ;;  %vm4679_vm12 = vcmp.eq.s32.totalorder %v2024_v21, 1  ;;  %vm4683_vm2 = vcmp.eq.s32.totalorder %v2025_v0, 1 }
 0x304   : > { %v1312_v26 = vadd.f32 %v1311_v1, %v1309_v27  ;;  %vm4687_vm13 = vcmp.eq.s32.totalorder %v2026_v53, 1  ;;  %v1317_v41 = vmul.f32 %v1316_v7, %v3459_v49  ;;  %v1322_v31 = vperm.slane %v2938_v4, 6 }
 0x305   : > { %vm4692_vm4 = vcmp.eq.s32.totalorder %v2027_v15, 1  ;;  %vm4696_vm11 = vcmp.eq.s32.totalorder %v2028_v28, 1  ;;  %vm4700_vm9 = vcmp.eq.s32.totalorder %v2029_v34, 1  ;;  %vm4704_vm6 = vcmp.eq.s32.totalorder %v2030_v54, 1 }
 0x306   : > { %v1315_v16 = vadd.f32 %v1314_v39, %v1312_v26  ;;  %v2051_v4 = vsel %vm4666_vm1, %v5541_v30, 0.0  ;;  %v1320_v47 = vmul.f32 %v1319_v55, %v3465_v56  ;;  %v2052_v24 = vsel %vm4671_vm8, %v5541_v30, 0.0 }
 0x307   : > { %v2053_v22 = vsel %vm4675_vm3, %v5541_v30, 0.0  ;;  %v2054_v62 = vsel %vm4679_vm12, %v5541_v30, 0.0  ;;  %v2055_v21 = vsel %vm4683_vm2, %v5541_v30, 0.0  ;;  %v2056_v0 = vsel %vm4687_vm13, %v5541_v30, 0.0 }
 0x308   : > { %v1318_v9 = vadd.f32 %v1317_v41, %v1315_v16  ;;  %v2057_v53 = vsel %vm4692_vm4, %v5541_v30, 0.0  ;;  %v1323_v1 = vmul.f32 %v1322_v31, %v3479_v10  ;;  %v2058_v7 = vsel %vm4696_vm11, %v5541_v30, 0.0 }
 0x309   : > { %v2059_v15 = vsel %vm4700_vm9, %v5541_v30, 0.0  ;;  %v2060_v28 = vsel %vm4704_vm6, %v5541_v30, 0.0  ;;  %v4741_v34 = vadd.f32 %v2051_v4, %v4621_v11  ;;  %v4744_v54 = vadd.f32 %v2052_v24, %v4624_v19 }
 0x30a   : > { %v1321_v27 = vadd.f32 %v1320_v47, %v1318_v9  ;;  %v4747_v17 = vadd.f32 %v2053_v22, %v4627_v23  ;;  %v4750_v39 = vadd.f32 %v2054_v62, %v4629_v3  ;;  %vm2077_vm7 = vcmp.eq.s32.totalorder %v4046_v44, 5 }
 0x30b   : > { %vm2078_vm15 = vcmp.eq.s32.totalorder %v4050_v52, 5  ;;  %v4755_v55 = vadd.f32 %v2055_v21, %v4631_v40  ;;  %vm2079_vm5 = vcmp.eq.s32.totalorder %v4054_v59, 5  ;;  %vm2080_vm14 = vcmp.eq.s32.totalorder %v4065_v5, 5 }
 0x30c   : > { %v1324_v26 = vadd.f32 %v1323_v1, %v1321_v27  ;;  %vm2081_vm10 = vcmp.eq.s32.totalorder %v4069_v6, 5  ;;  %vm2082_vm0 = vcmp.eq.s32.totalorder %v4073_v14, 5  ;;  %vm2083_vm1 = vcmp.eq.s32.totalorder %v4080_v48, 5 }
 0x30d   : > { %vm2084_vm8 = vcmp.eq.s32.totalorder %v4084_v2, 5  ;;  %vm2085_vm3 = vcmp.eq.s32.totalorder %v4088_v61, 5  ;;  %vm2086_vm12 = vcmp.eq.s32.totalorder %v4094_v12, 5  ;;  %v2090_v19 = vsel %vm2077_vm7, 1, %v5520_v20 }
 0x30e   : > { %v1325_v11 = vmax.f32 %v1324_v26, 1e-30  ;;  %v2091_v23 = vsel %vm2078_vm15, 1, %v5520_v20  ;;  %v2092_v3 = vsel %vm2079_vm5, 1, %v5520_v20  ;;  %v2093_v40 = vsel %vm2080_vm14, 1, %v5520_v20 }
 0x30f   : > { %v2094_v43 = vsel %vm2081_vm10, 1, %v5520_v20  ;;  %vm5542_vm2 = vcmp.gt.s32.totalorder %v3964_v32, 10  ;;  %v2095_v29 = vsel %vm2082_vm0, 1, %v5520_v20  ;;  %v2096_v42 = vsel %vm2083_vm1, 1, %v5520_v20  ;;  %v1294_v26 = vld [vmem:[#allocation2 + $0x10] sm:$0x7f] }
 0x310   : > { %2939 = vlog2.f32 %v1325_v11  ;;  %v1331_v25 = vsel %vm5542_vm2, 1, %v5520_v20  ;;  %v2097_v45 = vsel %vm2084_vm8, 1, %v5520_v20  ;;  %v2098_v16 = vsel %vm2085_vm3, 1, %v5520_v20 }
 0x311   : > { %v2099_v41 = vsel %vm2086_vm12, 1, %v5520_v20  ;;  %v2103_v31 = vperm.slane %v2090_v19, 0  ;;  %v2104_v33 = vperm.slane %v2091_v23, 0  ;;  %v2069_v38 = vadd.f32 %v2056_v0, %v4633_v35 }
 0x312   : > { %v2070_v8 = vadd.f32 %v2057_v53, %v4635_v63  ;;  %v2105_v13 = vperm.slane %v2092_v3, 0  ;;  %v2106_v30 = vperm.slane %v2093_v40, 0  ;;  %v1332_v4 = vperm.slane %v1331_v25, 0  ;;  %v5563_v40 = vld [vmem:[#allocation23_spill] sm:$0xff]  ;;  %v5571_v3 = vld [vmem:[#allocation44_spill] sm:$0xff] }
 0x313   : > { %v2107_v9 = vperm.slane %v2094_v43, 0  ;;  %v2108_v47 = vperm.slane %v2095_v29, 0  ;;  %v2109_v24 = vperm.slane %v2096_v42, 0  ;;  %v2071_v22 = vadd.f32 %v2058_v7, %v4637_v37  ;;  %v5567_v63 = vld [vmem:[#allocation43_spill] sm:$0xff] }
 0x314   : > { %v2110_v62 = vperm.slane %v2097_v45, 0  ;;  %v2111_v21 = vperm.slane %v2098_v16, 0  ;;  %v2112_v27 = vperm.slane %v2099_v41, 0  ;;  %v2072_v11 = vadd.f32 %v2059_v15, %v4645_v46 }
 0x315   : > { %v2073_v19 = vadd.f32 %v2060_v28, %v4647_v18  ;;  %vm4783_vm13 = vcmp.eq.s32.totalorder %v2103_v31, 1  ;;  %vm4787_vm4 = vcmp.eq.s32.totalorder %v2104_v33, 1  ;;  %v1326_v0 = vadd.f32 %v4540_v60, %v1294_v26 }
 0x316   : > { %v2940_v1 = vpop.eup %2939  ;;  %vm4792_vm11 = vcmp.eq.s32.totalorder %v2105_v13, 1  ;;  %vm4796_vm9 = vcmp.eq.s32.totalorder %v2106_v30, 1  ;;  %vm1333_vm6 = vcmp.eq.s32.totalorder %v1332_v4, 1  ;;  %vm4800_vm7 = vcmp.eq.s32.totalorder %v2107_v9, 1 }
 0x317   : > { %v1328_v37 = vmul.f32 0.6931472, %v2940_v1  ;;  %vm4804_vm15 = vcmp.eq.s32.totalorder %v2108_v47, 1  ;;  %vm4808_vm5 = vcmp.eq.s32.totalorder %v2109_v24, 1  ;;  %vm4812_vm14 = vcmp.eq.s32.totalorder %v2110_v62, 1 }
 0x318   : > { %vm4816_vm10 = vcmp.eq.s32.totalorder %v2111_v21, 1  ;;  %vm4820_vm0 = vcmp.eq.s32.totalorder %v2112_v27, 1  ;;  %v2133_v43 = vsel %vm4783_vm13, %v5563_v40, 0.0  ;;  %v2134_v25 = vsel %vm4787_vm4, %v5563_v40, 0.0 }
 0x319   : > { %v1329_v15 = vadd.f32 %v1328_v37, %v1326_v0  ;;  %v2135_v29 = vsel %vm4792_vm11, %v5563_v40, 0.0  ;;  %v2136_v42 = vsel %vm4796_vm9, %v5563_v40, 0.0  ;;  %v2137_v16 = vsel %vm4800_vm7, %v5563_v40, 0.0  ;;  %v5568_v0 = vld [vmem:[#allocation18_spill] sm:$0xff] }
 0x31a   : > { %v2138_v41 = vsel %vm4804_vm15, %v5563_v40, 0.0  ;;  %v2139_v31 = vsel %vm4808_vm5, %v5563_v40, 0.0  ;;  %vm5564_vm1 = vcmask 1046528   ;;  %v2141_v13 = vsel %vm4816_vm10, %v5563_v40, 0.0 }
 0x31b   : > { %v4837_v45 = vsel %vm1333_vm6, %v1329_v15, %v4493_v36  ;;  %v2140_v36 = vsel %vm4812_vm14, %v5563_v40, 0.0  ;;  %v2142_v30 = vsel %vm4820_vm0, %v5563_v40, 0.0  ;;  %v4860_v9 = vadd.f32 %v2133_v43, %v4741_v34 }
 0x31c   : > { %v1336_v33 = vsel %vm5564_vm1, %v4837_v45, -inf  ;;  %v4863_v47 = vadd.f32 %v2134_v25, %v4744_v54  ;;  %v4866_v24 = vadd.f32 %v2135_v29, %v4747_v17  ;;  %v4869_v62 = vadd.f32 %v2136_v42, %v4750_v39  ;;  %v5565_v39 = vld [vmem:[#allocation41_spill] sm:$0xff] }
 0x31d   : > { %v1337_v4 = vrot.slane %v1336_v33, 4  ;;  %v4872_v21 = vadd.f32 %v2137_v16, %v4755_v55  ;;  %v4874_v27 = vadd.f32 %v2138_v41, %v2069_v38  ;;  %vm2159_vm8 = vcmp.eq.s32.totalorder %v4046_v44, 6  ;;  %v5566_v38 = vld [vmem:[#allocation42_spill] sm:$0xff] }
 0x31e   : > { %v4877_v26 = vadd.f32 %v2139_v31, %v2070_v8  ;;  %v4879_v34 = vadd.f32 %v2140_v36, %v2071_v22  ;;  %v4881_v54 = vadd.f32 %v2141_v13, %v2072_v11  ;;  %v4883_v35 = vadd.f32 %v2142_v30, %v2073_v19  ;;  %v5575_v13 = vld [vmem:[#allocation45_spill] sm:$0xff] }
 0x31f   : > { %v1338_v1 = vmax.f32 %v1336_v33, %v1337_v4  ;;  %vm2160_vm3 = vcmp.eq.s32.totalorder %v4050_v52, 6  ;;  %vm2161_vm12 = vcmp.eq.s32.totalorder %v4054_v59, 6  ;;  %vm2162_vm2 = vcmp.eq.s32.totalorder %v4065_v5, 6 }
 0x320   : > { %vm2163_vm13 = vcmp.eq.s32.totalorder %v4069_v6, 6  ;;  %vm2164_vm4 = vcmp.eq.s32.totalorder %v4073_v14, 6  ;;  %v2172_v44 = vsel %vm2159_vm8, 1, %v5520_v20  ;;  %vm2165_vm11 = vcmp.eq.s32.totalorder %v4080_v48, 6 }
 0x321   : > { %v1339_v17 = vrot.slane %v1338_v1, 2  ;;  %vm2166_vm9 = vcmp.eq.s32.totalorder %v4084_v2, 6  ;;  %v2238_v55 = vperm.slane %v5565_v39, 0  ;;  %v2239_v8 = vperm.slane %v5566_v38, 0 }
 0x322   : > { %vm2167_vm6 = vcmp.eq.s32.totalorder %v4088_v61, 6  ;;  %vm2168_vm7 = vcmp.eq.s32.totalorder %v4094_v12, 6  ;;  %v2173_v59 = vsel %vm2160_vm3, 1, %v5520_v20  ;;  %v2174_v5 = vsel %vm2161_vm12, 1, %v5520_v20 }
 0x323   : > { %v1340_v52 = vmax.f32 %v1338_v1, %v1339_v17  ;;  %v2175_v6 = vsel %vm2162_vm2, 1, %v5520_v20  ;;  %v2176_v14 = vsel %vm2163_vm13, 1, %v5520_v20  ;;  %v2185_v48 = vperm.slane %v2172_v44, 0  ;;  %v5578_v1 = vld [vmem:[#allocation24_spill] sm:$0xff]  ;;  %v5579_v44 = vld [vmem:[#allocation25_spill] sm:$0xff] }
 0x324   : > { %v2177_v2 = vsel %vm2164_vm4, 1, %v5520_v20  ;;  %v2178_v11 = vsel %vm2165_vm11, 1, %v5520_v20  ;;  %v2179_v19 = vsel %vm2166_vm9, 1, %v5520_v20  ;;  %v2180_v61 = vsel %vm2167_vm6, 1, %v5520_v20 }
 0x325   : > { %v1341_v22 = vrot.slane %v1340_v52, 1  ;;  %v2240_v12 = vperm.slane %v5567_v63, 0  ;;  %vm2251_vm15 = vcmp.eq.s32.totalorder %v5568_v0, %v2238_v55  ;;  %vm2252_vm5 = vcmp.eq.s32.totalorder %v5568_v0, %v2239_v8  ;;  %v5580_v55 = vld [vmem:[#allocation26_spill] sm:$0xff] }
 0x326   : > { %v2181_v53 = vsel %vm2168_vm7, 1, %v5520_v20  ;;  %v2186_v7 = vperm.slane %v2173_v59, 0  ;;  %v2187_v46 = vperm.slane %v2174_v5, 0  ;;  %v2188_v18 = vperm.slane %v2175_v6, 0 }
 0x327   : > { %v4908_v37 = vmax.f32 %v1340_v52, %v1341_v22  ;;  %v2189_v60 = vperm.slane %v2176_v14, 0  ;;  %v2190_v15 = vperm.slane %v2177_v2, 0  ;;  %vm4911_vm14 = vcmp.eq.s32.totalorder %v2185_v48, 1  ;;  %v5589_v14 = vld [vmem:[#allocation46_spill] sm:$0xff]  ;;  %v5606_v22 = vld [vmem:[#allocation48_spill] sm:$0xff] }
 0x328   : > { %v2241_v40 = vperm.slane %v5571_v3, 0  ;;  %v5572_v43 = vmov 0.0   ;;  %v2191_v42 = vperm.slane %v2178_v11, 0  ;;  %v2192_v16 = vperm.slane %v2179_v19, 0 }
 0x329   : > { %v1343_v23 = vsub.f32 %v4837_v45, %v4908_v37  ;;  %v2742_v25 = vsel %vm2251_vm15, 1.0, %v5572_v43  ;;  %v2743_v29 = vsel %vm2252_vm5, 1.0, %v5572_v43  ;;  %v2193_v41 = vperm.slane %v2180_v61, 0  ;;  %v5592_v61 = vld [vmem:[#allocation27_spill] sm:$0xff] }
 0x32a   : > { %vm2253_vm10 = vcmp.eq.s32.totalorder %v5568_v0, %v2240_v12  ;;  %v2194_v33 = vperm.slane %v2181_v53, 0  ;;  %vm4921_vm0 = vcmp.eq.s32.totalorder %v2186_v7, 1  ;;  %v2242_v30 = vperm.slane %v5575_v13, 0 }
 0x32b   : > { %v1344_v31 = vmul.f32 1.442695, %v1343_v23  ;;  %vm4926_vm1 = vcmp.eq.s32.totalorder %v2187_v46, 1  ;;  %v2215_v17 = vsel %vm4911_vm14, %v5578_v1, 0.0  ;;  %v2290_v39 = vmul.f32 %v2742_v25, %v5579_v44 }
 0x32c   : > { %v2291_v38 = vmul.f32 %v2743_v29, %v5580_v55  ;;  %vm4935_vm8 = vcmp.eq.s32.totalorder %v2188_v18, 1  ;;  %vm2254_vm3 = vcmp.eq.s32.totalorder %v5568_v0, %v2241_v40  ;;  %v2744_v52 = vsel %vm2253_vm10, 1.0, %v5572_v43  ;;  %v5597_v18 = vld [vmem:[#allocation47_spill] sm:$0xff] }
 0x32d   : > { %2941 = vpow2.f32 %v1344_v31  ;;  %vm4941_vm12 = vcmp.eq.s32.totalorder %v2189_v60, 1  ;;  %vm4945_vm2 = vcmp.eq.s32.totalorder %v2190_v15, 1  ;;  %vm4949_vm13 = vcmp.eq.s32.totalorder %v2191_v42, 1 }
 0x32e   : > { %v2243_v48 = vperm.slane %v5589_v14, 0  ;;  %vm4954_vm4 = vcmp.eq.s32.totalorder %v2192_v16, 1  ;;  %v2216_v2 = vsel %vm4921_vm0, %v5578_v1, 0.0  ;;  %v2228_v11 = vadd.f32 %v2215_v17, %v4860_v9 }
 0x32f   : > { %vm2255_vm11 = vcmp.eq.s32.totalorder %v5568_v0, %v2242_v30  ;;  %v2745_v19 = vsel %vm2254_vm3, 1.0, %v5572_v43  ;;  %v2292_v63 = vmul.f32 %v2744_v52, %v5592_v61  ;;  %vm5593_vm9 = vcmask 1046528  }
 0x330   : > { %v2303_v12 = vsel %vm5593_vm9, %v2290_v39, 0.0  ;;  %vm5594_vm6 = vmmov %vm5593_vm9  ;;  %vm4967_vm7 = vcmp.eq.s32.totalorder %v2193_v41, 1  ;;  %v2217_v46 = vsel %vm4926_vm1, %v5578_v1, 0.0  ;;  %v2218_v9 = vsel %vm4935_vm8, %v5578_v1, 0.0 }
 0x331   : > { %v2310_v53 = vsel %vm5594_vm6, %v2291_v38, 0.0  ;;  %v2244_v60 = vperm.slane %v5597_v18, 0  ;;  %vm4978_vm15 = vcmp.eq.s32.totalorder %v2194_v33, 1  ;;  %v2219_v28 = vsel %vm4941_vm12, %v5578_v1, 0.0  ;;  %vm5602_vm14 = vmmov %vm5594_vm6 }
 0x332   : > { %v2220_v23 = vsel %vm4945_vm2, %v5578_v1, 0.0  ;;  %v2229_v3 = vadd.f32 %v2216_v2, %v4863_v47  ;;  %vm4990_vm5 = vcmp.eq.s32.totalorder %v5568_v0, %v2243_v48  ;;  %v2746_v29 = vsel %vm2255_vm11, 1.0, %v5572_v43  ;;  %vm5605_vm0 = vmmov %vm5594_vm6 }
 0x333   : > { %v2942_v25 = vpop.eup %2941  ;;  %v2293_v42 = vmul.f32 %v2745_v19, %v2228_v11  ;;  %v2304_v16 = vrot.slane %v2303_v12, 4  ;;  %v2311_v41 = vrot.slane %v2310_v53, 4  ;;  %v2317_v13 = vsel %vm5602_vm14, %v2292_v63, 0.0  ;;  %vm5607_vm1 = vmmov %vm5605_vm0 }
 0x334   : > { %v1346_v31 = vperm.slane %v2942_v25, 0  ;;  %v1348_v33 = vperm.slane %v2942_v25, 1  ;;  %v1351_v36 = vperm.slane %v2942_v25, 2  ;;  %v2221_v47 = vsel %vm4949_vm13, %v5578_v1, 0.0  ;;  %vm5609_vm3 = vmmov %vm5605_vm0 }
 0x335   : > { %v2222_v30 = vsel %vm4954_vm4, %v5578_v1, 0.0  ;;  %v2230_v4 = vadd.f32 %v2217_v46, %v4866_v24  ;;  %vm5004_vm10 = vcmp.eq.s32.totalorder %v5568_v0, %v2244_v60  ;;  %v1354_v55 = vperm.slane %v2942_v25, 3  ;;  %vm5613_vm2 = vmmov %vm5605_vm0 }
 0x336   : > { %v1347_v44 = vmul.f32 %v1346_v31, %v3461_v50  ;;  %v1349_v39 = vmul.f32 %v1348_v33, %v3467_v57  ;;  %v2747_v38 = vsel %vm4990_vm5, 1.0, %v5572_v43  ;;  %v2294_v8 = vmul.f32 %v2746_v29, %v2229_v3  ;;  %vm5618_vm5 = vmmov %vm5605_vm0 }
 0x337   : > { %v2305_v52 = vadd.f32 %v2304_v16, %v2303_v12  ;;  %v2318_v59 = vrot.slane %v2317_v13, 4  ;;  %v2324_v5 = vsel %vm5605_vm0, %v2293_v42, 0.0  ;;  %v1352_v6 = vmul.f32 %v1351_v36, %v3463_v51  ;;  %v5608_v42 = vld [vmem:[#allocation49_spill] sm:$0xff] }
 0x338   : > { %v1350_v24 = vadd.f32 %v1349_v39, %v1347_v44  ;;  %v1357_v14 = vperm.slane %v2942_v25, 4  ;;  %v2312_v48 = vadd.f32 %v2311_v41, %v2310_v53  ;;  %v2223_v50 = vsel %vm4967_vm7, %v5578_v1, 0.0  ;;  %v5611_v39 = vld [vmem:[#allocation51_spill] sm:$0xff] }
 0x339   : > { %v2231_v57 = vadd.f32 %v2218_v9, %v4869_v62  ;;  %v2245_v2 = vperm.slane %v5606_v22, 0  ;;  %v2748_v11 = vsel %vm5004_vm10, 1.0, %v5572_v43  ;;  %v1355_v61 = vmul.f32 %v1354_v55, %v3469_v58 }
 0x33a   : > { %v1353_v19 = vadd.f32 %v1352_v6, %v1350_v24  ;;  %v1360_v63 = vperm.slane %v2942_v25, 5  ;;  %v2295_v12 = vmul.f32 %v2747_v38, %v2230_v4  ;;  %v2306_v51 = vrot.slane %v2305_v52, 2  ;;  %v5612_v24 = vld [vmem:[#allocation52_spill] sm:$0xff] }
 0x33b   : > { %v2319_v46 = vadd.f32 %v2318_v59, %v2317_v13  ;;  %v2325_v53 = vrot.slane %v2324_v5, 4  ;;  %v2331_v18 = vsel %vm5607_vm1, %v2294_v8, 0.0  ;;  %v1358_v3 = vmul.f32 %v1357_v14, %v3459_v49 }
 0x33c   : > { %v1356_v60 = vadd.f32 %v1355_v61, %v1353_v19  ;;  %v1363_v62 = vperm.slane %v2942_v25, 6  ;;  %v2313_v9 = vrot.slane %v2312_v48, 2  ;;  %v2224_v40 = vsel %vm4978_vm15, %v5578_v1, 0.0  ;;  %v5617_v61 = vld [vmem:[#allocation53_spill] sm:$0xff]  ;;  %vm5630_vm15 = vmmov %vm5605_vm0 }
 0x33d   : > { %v2232_v29 = vadd.f32 %v2219_v28, %v4872_v21  ;;  %v2233_v58 = vadd.f32 %v2220_v23, %v4874_v27  ;;  %v2246_v16 = vperm.slane %v5608_v42, 0  ;;  %v1361_v31 = vmul.f32 %v1360_v63, %v3465_v56  ;;  %v5610_v28 = vld [vmem:[#allocation50_spill] sm:$0xff] }
 0x33e   : > { %v1359_v41 = vadd.f32 %v1358_v3, %v1356_v60  ;;  %vm2258_vm8 = vcmp.eq.s32.totalorder %v5568_v0, %v2245_v2  ;;  %v2332_v33 = vrot.slane %v2331_v18, 4  ;;  %v2296_v36 = vmul.f32 %v2748_v11, %v2231_v57 }
 0x33f   : > { %v2320_v49 = vrot.slane %v2319_v46, 2  ;;  %v2326_v25 = vadd.f32 %v2325_v53, %v2324_v5  ;;  %v2338_v13 = vsel %vm5609_vm3, %v2295_v12, 0.0  ;;  %v1364_v17 = vmul.f32 %v1363_v62, %v3479_v10 }
 0x340   : > { %v1362_v4 = vadd.f32 %v1361_v31, %v1359_v41  ;;  %v2307_v44 = vadd.f32 %v2306_v51, %v2305_v52  ;;  %v2314_v21 = vadd.f32 %v2313_v9, %v2312_v48  ;;  %v2234_v27 = vadd.f32 %v2221_v47, %v4877_v26 }
 0x341   : > { %v2247_v23 = vperm.slane %v5610_v28, 0  ;;  %v2248_v55 = vperm.slane %v5611_v39, 0  ;;  %vm2259_vm12 = vcmp.eq.s32.totalorder %v5568_v0, %v2246_v16  ;;  %v2749_v38 = vsel %vm2258_vm8, 1.0, %v5572_v43  ;;  %vm5626_vm8 = vmmov %vm5605_vm0 }
 0x342   : > { %v1365_v56 = vadd.f32 %v1364_v17, %v1362_v4  ;;  %v2333_v8 = vadd.f32 %v2332_v33, %v2331_v18  ;;  %v2339_v59 = vrot.slane %v2338_v13, 4  ;;  %v2235_v5 = vadd.f32 %v2222_v30, %v4879_v34  ;;  %v1335_v33 = vld [vmem:[#allocation2 + $0x40] sm:$0x7f] }
 0x343   : > { %v2249_v6 = vperm.slane %v5612_v24, 0  ;;  %v2327_v10 = vrot.slane %v2326_v25, 2  ;;  %v2345_v52 = vsel %vm5613_vm2, %v2296_v36, 0.0  ;;  %v2308_v26 = vrot.slane %v2307_v44, 1 }
 0x344   : > { %v1366_v14 = vmax.f32 %v1365_v56, 1e-30  ;;  %v2315_v47 = vrot.slane %v2314_v21, 1  ;;  %v2321_v48 = vadd.f32 %v2320_v49, %v2319_v46  ;;  %vm2260_vm13 = vcmp.eq.s32.totalorder %v5568_v0, %v2247_v23 }
 0x345   : > { %vm5046_vm4 = vcmp.eq.s32.totalorder %v5568_v0, %v2248_v55  ;;  %v2750_v22 = vsel %vm2259_vm12, 1.0, %v5572_v43  ;;  %v2297_v2 = vmul.f32 %v2749_v38, %v2232_v29  ;;  %vm1597_vm11 = vcmask 1040384   ;;  %vm5629_vm12 = vmmov %vm5605_vm0 }
 0x346   : > { %2943 = vlog2.f32 %v1366_v14  ;;  %v2334_v34 = vrot.slane %v2333_v8, 2  ;;  %v2340_v30 = vadd.f32 %v2339_v59, %v2338_v13  ;;  %v2346_v11 = vrot.slane %v2345_v52, 4  ;;  %v5628_v14 = vld [vmem:[#allocation22_spill] sm:$0xff] }
 0x347   : > { %vm5616_vm9 = vcmp.gt.s32.totalorder %v3964_v32, 11  ;;  %v2250_v63 = vperm.slane %v5617_v61, 0  ;;  %vm2262_vm6 = vcmp.eq.s32.totalorder %v5568_v0, %v2249_v6  ;;  %v2328_v12 = vadd.f32 %v2327_v10, %v2326_v25  ;;  %v5634_v61 = vld [vmem:[#allocation32_spill] sm:$0xff] }
 0x348   : > { %v1372_v19 = vsel %vm5616_vm9, 1, %v5520_v20  ;;  %v2751_v51 = vsel %vm2260_vm13, 1.0, %v5572_v43  ;;  %v2309_v46 = vadd.f32 %v2308_v26, %v2307_v44  ;;  %v2316_v53 = vadd.f32 %v2315_v47, %v2314_v21  ;;  %vm5639_vm9 = vmmov %vm5605_vm0 }
 0x349   : > { %v2322_v18 = vrot.slane %v2321_v48, 1  ;;  %v2236_v60 = vadd.f32 %v2223_v50, %v4881_v54  ;;  %v2752_v20 = vsel %vm5046_vm4, 1.0, %v5572_v43  ;;  %v2298_v3 = vmul.f32 %v2750_v22, %v2233_v58  ;;  %v5621_v58 = vld [vmem:[#allocation33_spill] sm:$0xff] }
 0x34a   : > { %v2352_v62 = vsel %vm5618_vm5, %v2297_v2, 0.0  ;;  %v1373_v9 = vperm.slane %v1372_v19, 0  ;;  %v2335_v29 = vadd.f32 %v2334_v34, %v2333_v8  ;;  %v2341_v42 = vrot.slane %v2340_v30, 2 }
 0x34b   : > { %v2347_v16 = vadd.f32 %v2346_v11, %v2345_v52  ;;  %vm5067_vm14 = vcmp.eq.s32.totalorder %v5568_v0, %v2250_v63  ;;  %v2753_v7 = vsel %vm2262_vm6, 1.0, %v5572_v43  ;;  %v2299_v31 = vmul.f32 %v2751_v51, %v2234_v27  ;;  %v5635_v63 = vld [vmem:[#allocation19_spill] sm:$0xff] }
 0x34c   : > { %v2329_v54 = vrot.slane %v2328_v12, 1  ;;  %v2944_v50 = vpop.eup %2943  ;;  %v2323_v36 = vadd.f32 %v2322_v18, %v2321_v48  ;;  %v2353_v49 = vrot.slane %v2352_v62, 4  ;;  %vm5622_vm7 = vcmp.gt.s32.totalorder %v5621_v58, 0  ;;  %v5637_v51 = vld [vmem:[#allocation35_spill] sm:$0xff] }
 0x34d   : > { %v2394_v25 = vsel %vm5622_vm7, %v2309_v46, 0.0  ;;  %vm5623_vm10 = vcmp.gt.s32.totalorder %v5621_v58, 1  ;;  %v1367_v4 = vadd.f32 %v4908_v37, %v1335_v33  ;;  %v1369_v0 = vmul.f32 0.6931472, %v2944_v50 }
 0x34e   : > { %v2395_v13 = vsel %vm5623_vm10, %v2316_v53, 0.0  ;;  %v2300_v17 = vmul.f32 %v2752_v20, %v2235_v5  ;;  %v2359_v44 = vsel %vm5605_vm0, %v2298_v3, 0.0  ;;  %vm5078_vm1 = vcmp.eq.s32.totalorder %v1373_v9, 1  ;;  %vm5651_vm10 = vmmov %vm5605_vm0 }
 0x34f   : > { %v2336_v27 = vrot.slane %v2335_v29, 1  ;;  %v2342_v28 = vadd.f32 %v2341_v42, %v2340_v30  ;;  %v2348_v23 = vrot.slane %v2347_v16, 2  ;;  %v1370_v39 = vadd.f32 %v1369_v0, %v1367_v4  ;;  %v5632_v30 = vld [vmem:[#allocation31_spill] sm:$0xff] }
 0x350   : > { %v2330_v55 = vadd.f32 %v2329_v54, %v2328_v12  ;;  %v2407_v56 = vsel %vm1597_vm11, %v2394_v25, 0.0  ;;  %v2408_v38 = vsel %vm1597_vm11, %v2395_v13, 0.0  ;;  %v2354_v8 = vadd.f32 %v2353_v49, %v2352_v62  ;;  %v5641_v54 = vld [vmem:[#allocation28_spill] sm:$0xff] }
 0x351   : > { %v2360_v59 = vrot.slane %v2359_v44, 4  ;;  %v2366_v37 = vsel %vm5626_vm8, %v2299_v31, 0.0  ;;  %vm5627_vm3 = vcmp.gt.s32.totalorder %v5621_v58, 2  ;;  %v1375_v24 = vsel %vm5078_vm1, %v1370_v39, %v4837_v45 }
 0x352   : > { %v2396_v5 = vsel %vm5627_vm3, %v2323_v36, 0.0  ;;  %v2237_v6 = vadd.f32 %v2224_v40, %v4883_v35  ;;  %v2754_v10 = vsel %vm5067_vm14, 1.0, %v5572_v43  ;;  %v2301_v52 = vmul.f32 %v2753_v7, %v2236_v60  ;;  %v5643_v36 = vld [vmem:[#allocation36_spill] sm:$0xff]  ;;  %vm5645_vm14 = vmmov %vm5605_vm0 }
 0x353   : > { %v5099_v26 = vadd.f32 %v5628_v14, %v1375_v24  ;;  %v2337_v47 = vadd.f32 %v2336_v27, %v2335_v29  ;;  %v2343_v48 = vrot.slane %v2342_v28, 1  ;;  %v2409_v57 = vadd.f32 %v2408_v38, %v2407_v56 }
 0x354   : > { %v2349_v22 = vadd.f32 %v2348_v23, %v2347_v16  ;;  %v2367_v2 = vrot.slane %v2366_v37, 4  ;;  %v2373_v45 = vsel %vm5629_vm12, %v2300_v17, 0.0  ;;  %v2410_v15 = vsel %vm1597_vm11, %v2396_v5, 0.0  ;;  %v5649_v5 = vld [vmem:[#allocation40_spill] sm:$0xff] }
 0x355   : > { %v1383_v35 = vsel %vm5630_vm15, %v5099_v26, -inf  ;;  %v2355_v1 = vrot.slane %v2354_v8, 2  ;;  %v2361_v40 = vadd.f32 %v2360_v59, %v2359_v44  ;;  %vm5631_vm2 = vcmp.gt.s32.totalorder %v5621_v58, 3 }
 0x356   : > { %v2397_v43 = vsel %vm5631_vm2, %v2330_v55, 0.0  ;;  %v1384_v34 = vrot.slane %v1383_v35, 4  ;;  %v5633_v11 = vrot.slane %v5632_v30, 4  ;;  %vm5636_vm13 = vcmp.gt.s32.totalorder %v5635_v63, 0 }
 0x357   : > { %v1585_v12 = vsel %vm5636_vm13, %v5634_v61, 0.0  ;;  %vm5638_vm4 = vcmp.gt.s32.totalorder %v5635_v63, 1  ;;  %v2302_v53 = vmul.f32 %v2754_v10, %v2237_v6  ;;  %v2344_v18 = vadd.f32 %v2343_v48, %v2342_v28  ;;  %v5650_v6 = vld [vmem:[#allocation34_spill] sm:$0xff]  ;;  %vm5664_vm13 = vmmov %vm5639_vm9 }
 0x358   : > { %v5110_v19 = vadd.f32 %v5633_v11, %v5632_v30  ;;  %v1586_v46 = vsel %vm5638_vm4, %v5637_v51, 0.0  ;;  %v2374_v60 = vrot.slane %v2373_v45, 4  ;;  %v2411_v20 = vadd.f32 %v2410_v15, %v2409_v57  ;;  %v5655_v51 = vld [vmem:[#allocation37_spill] sm:$0xff] }
 0x359   : > { %v1385_v3 = vmax.f32 %v1383_v35, %v1384_v34  ;;  %v2350_v62 = vrot.slane %v2349_v22, 1  ;;  %v2380_v9 = vsel %vm5639_vm9, %v2301_v52, 0.0  ;;  %v2412_v29 = vsel %vm1597_vm11, %v2397_v43, 0.0  ;;  %v5653_v34 = vld [vmem:[#allocation30_spill] sm:$0xff] }
 0x35a   : > { %v2356_v42 = vadd.f32 %v2355_v1, %v2354_v8  ;;  %v2362_v16 = vrot.slane %v2361_v40, 2  ;;  %v2368_v41 = vadd.f32 %v2367_v2, %v2366_v37  ;;  %vm5640_vm6 = vcmp.gt.s32.totalorder %v5621_v58, 4  ;;  %v5647_v8 = vld [vmem:[#allocation29_spill] sm:$0xff] }
 0x35b   : > { %v2398_v7 = vsel %vm5640_vm6, %v2337_v47, 0.0  ;;  %v1386_v31 = vrot.slane %v1385_v3, 2  ;;  %v5642_v50 = vrot.slane %v5641_v54, 1  ;;  %vm5644_vm5 = vcmp.gt.s32.totalorder %v5635_v63, 2 }
 0x35c   : > { %v1587_v49 = vsel %vm5644_vm5, %v5643_v36, 0.0  ;;  %v1598_v25 = vsel %vm1597_vm11, %v1585_v12, 0.0  ;;  %v1599_v13 = vsel %vm1597_vm11, %v1586_v46, 0.0  ;;  %v2375_v4 = vadd.f32 %v2374_v60, %v2373_v45 }
 0x35d   : > { %v5125_v33 = vadd.f32 %v5642_v50, %v5641_v54  ;;  %v2387_v0 = vsel %vm5645_vm14, %v2302_v53, 0.0  ;;  %v2413_v17 = vadd.f32 %v2412_v29, %v2411_v20  ;;  %v1387_v44 = vmax.f32 %v1385_v3, %v1386_v31  ;;  %v5657_v53 = vld [vmem:[#allocation38_spill] sm:$0xff] }
 0x35e   : > { %v2351_v21 = vadd.f32 %v2350_v62, %v2349_v22  ;;  %v2381_v27 = vrot.slane %v2380_v9, 4  ;;  %v2414_v28 = vsel %vm1597_vm11, %v2398_v7, 0.0  ;;  %v2357_v23 = vrot.slane %v2356_v42, 1  ;;  %v5660_v7 = vld [vmem:[#allocation39_spill] sm:$0xff] }
 0x35f   : > { %v2363_v39 = vadd.f32 %v2362_v16, %v2361_v40  ;;  %v2369_v55 = vrot.slane %v2368_v41, 2  ;;  %vm5646_vm7 = vcmp.gt.s32.totalorder %v5621_v58, 5  ;;  %v1388_v38 = vrot.slane %v1387_v44, 1 }
 0x360   : > { %v2399_v56 = vsel %vm5646_vm7, %v2344_v18, 0.0  ;;  %v5648_v59 = vrot.slane %v5647_v8, 1  ;;  %v1572_v24 = vrot.slane %v5649_v5, 4  ;;  %v1578_v10 = vsel %vm5651_vm10, %v5650_v6, 0.0 }
 0x361   : > { %v1600_v52 = vadd.f32 %v1599_v13, %v1598_v25  ;;  %v1601_v14 = vsel %vm1597_vm11, %v1587_v49, 0.0  ;;  %v2376_v47 = vrot.slane %v2375_v4, 2  ;;  %v2415_v48 = vadd.f32 %v2414_v28, %v2413_v17 }
 0x362   : > { %v1549_v37 = vadd.f32 %v5648_v59, %v5647_v8  ;;  %v5143_v57 = vmax.f32 %v1387_v44, %v1388_v38  ;;  %v2382_v22 = vadd.f32 %v2381_v27, %v2380_v9  ;;  %v2388_v2 = vrot.slane %v2387_v0, 4 }
 0x363   : > { %v2416_v45 = vsel %vm1597_vm11, %v2399_v56, 0.0  ;;  %v2358_v15 = vadd.f32 %v2357_v23, %v2356_v42  ;;  %v2364_v35 = vrot.slane %v2363_v39, 1  ;;  %v2370_v1 = vadd.f32 %v2369_v55, %v2368_v41 }
 0x364   : > { %vm5652_vm0 = vcmp.gt.s32.totalorder %v5621_v58, 6  ;;  %v1390_v43 = vsub.f32 %v5099_v26, %v5143_v57  ;;  %v5654_v30 = vrot.slane %v5653_v34, 2  ;;  %v1573_v61 = vadd.f32 %v1572_v24, %v5649_v5 }
 0x365   : > { %v2400_v40 = vsel %vm5652_vm0, %v2351_v21, 0.0  ;;  %v1579_v12 = vrot.slane %v1578_v10, 4  ;;  %vm5656_vm1 = vcmp.gt.s32.totalorder %v5635_v63, 3  ;;  %vm5658_vm8 = vcmp.gt.s32.totalorder %v5635_v63, 4 }
 0x366   : > { %v1561_v11 = vadd.f32 %v5654_v30, %v5653_v34  ;;  %v1588_v46 = vsel %vm5656_vm1, %v5655_v51, 0.0  ;;  %v1589_v18 = vsel %vm5658_vm8, %v5657_v53, 0.0  ;;  %v1602_v60 = vadd.f32 %v1601_v14, %v1600_v52 }
 0x367   : > { %v2417_v20 = vadd.f32 %v2416_v45, %v2415_v48  ;;  %v1391_v3 = vmul.f32 1.442695, %v1390_v43  ;;  %v2377_v62 = vadd.f32 %v2376_v47, %v2375_v4  ;;  %v2389_v26 = vadd.f32 %v2388_v2, %v2387_v0 }
 0x368   : > { %v2418_v9 = vsel %vm1597_vm11, %v2400_v40, 0.0  ;;  %v2365_v29 = vadd.f32 %v2364_v35, %v2363_v39  ;;  %v2371_v42 = vrot.slane %v2370_v1, 1  ;;  %v2383_v16 = vrot.slane %v2382_v22, 2 }
 0x369   : > { %vm5659_vm3 = vcmp.gt.s32.totalorder %v5621_v58, 7  ;;  %2945 = vpow2.f32 %v1391_v3  ;;  %v1555_v31 = vrot.slane %v5660_v7, 1  ;;  %v1562_v54 = vrot.slane %v1561_v11, 1 }
 0x36a   : > { %v2401_v41 = vsel %vm5659_vm3, %v2358_v15, 0.0  ;;  %v1567_v50 = vrot.slane %v5110_v19, 2  ;;  %v1574_v36 = vrot.slane %v1573_v61, 2  ;;  %v1580_v49 = vadd.f32 %v1579_v12, %v1578_v10 }
 0x36b   : > { %v1603_v25 = vsel %vm1597_vm11, %v1588_v46, 0.0  ;;  %v2419_v13 = vadd.f32 %v2418_v9, %v2417_v20  ;;  %v1605_v0 = vsel %vm1597_vm11, %v1589_v18, 0.0  ;;  %v2378_v17 = vrot.slane %v2377_v62, 1 }
 0x36c   : > { %v1604_v4 = vadd.f32 %v1603_v25, %v1602_v60  ;;  %v2420_v44 = vsel %vm1597_vm11, %v2401_v41, 0.0  ;;  %v2372_v21 = vadd.f32 %v2371_v42, %v2370_v1  ;;  %v2384_v27 = vadd.f32 %v2383_v16, %v2382_v22 }
 0x36d   : > { %v2390_v28 = vrot.slane %v2389_v26, 2  ;;  %vm5661_vm12 = vcmp.gt.s32.totalorder %v5621_v58, 8  ;;  %v1556_v39 = vadd.f32 %v1555_v31, %v5660_v7  ;;  %v1568_v55 = vadd.f32 %v1567_v50, %v5110_v19 }
 0x36e   : > { %v2402_v23 = vsel %vm5661_vm12, %v2365_v29, 0.0  ;;  %vm5662_vm15 = vcmp.gt.s32.totalorder %v5635_v63, 5  ;;  %v1575_v38 = vadd.f32 %v1574_v36, %v1573_v61  ;;  %vm5663_vm2 = vcmp.gt.s32.totalorder %v5635_v63, 6 }
 0x36f   : > { %v1590_v56 = vsel %vm5662_vm15, %v5125_v33, 0.0  ;;  %v1591_v8 = vsel %vm5663_vm2, %v1549_v37, 0.0  ;;  %v1606_v59 = vadd.f32 %v1605_v0, %v1604_v4  ;;  %v2421_v5 = vadd.f32 %v2420_v44, %v2419_v13  ;;  %v2946_v24 = vpop.eup %2945 }
 0x370   : > { %v1563_v6 = vadd.f32 %v1562_v54, %v1561_v11  ;;  %v1581_v10 = vrot.slane %v1580_v49, 2  ;;  %v2379_v52 = vadd.f32 %v2378_v17, %v2377_v62  ;;  %v2422_v14 = vsel %vm1597_vm11, %v2402_v23, 0.0 }
 0x371   : > { %v1393_v47 = vsel %vm5664_vm13, %v2946_v24, 0.0  ;;  %v2385_v48 = vrot.slane %v2384_v27, 1  ;;  %v2391_v19 = vadd.f32 %v2390_v28, %v2389_v26  ;;  %vm5665_vm4 = vcmp.gt.s32.totalorder %v5621_v58, 9 }
 0x372   : > { %v2403_v22 = vsel %vm5665_vm4, %v2372_v21, 0.0  ;;  %v1394_v33 = vrot.slane %v1393_v47, 4  ;;  %v1569_v2 = vrot.slane %v1568_v55, 1  ;;  %v1607_v45 = vsel %vm1597_vm11, %v1590_v56, 0.0 }
 0x373   : > { %v1609_v37 = vsel %vm1597_vm11, %v1591_v8, 0.0  ;;  %v1576_v15 = vrot.slane %v1575_v38, 1  ;;  %vm5666_vm9 = vcmp.gt.s32.totalorder %v5635_v63, 7  ;;  %v1608_v1 = vadd.f32 %v1607_v45, %v1606_v59 }
 0x374   : > { %v1592_v35 = vsel %vm5666_vm9, %v1556_v39, 0.0  ;;  %v2423_v40 = vadd.f32 %v2422_v14, %v2421_v5  ;;  %v1395_v43 = vadd.f32 %v1394_v33, %v1393_v47  ;;  %v1582_v34 = vadd.f32 %v1581_v10, %v1580_v49 }
 0x375   : > { %vm5667_vm6 = vcmp.gt.s32.totalorder %v3964_v32, 8  ;;  %v2424_v11 = vsel %vm1597_vm11, %v2403_v22, 0.0  ;;  %v1610_v61 = vadd.f32 %v1609_v37, %v1608_v1  ;;  %v2386_v12 = vadd.f32 %v2385_v48, %v2384_v27 }
 0x376   : > { %v1593_v30 = vsel %vm5667_vm6, %v1563_v6, 0.0  ;;  %v2392_v51 = vrot.slane %v2391_v19, 1  ;;  %vm5668_vm5 = vcmp.gt.s32.totalorder %v5621_v58, 10  ;;  %v1396_v53 = vrot.slane %v1395_v43, 2 }
 0x377   : > { %v2404_v46 = vsel %vm5668_vm5, %v2379_v52, 0.0  ;;  %v1570_v18 = vadd.f32 %v1569_v2, %v1568_v55  ;;  %v1577_v60 = vadd.f32 %v1576_v15, %v1575_v38  ;;  %v2425_v63 = vadd.f32 %v2424_v11, %v2423_v40 }
 0x378   : > { %v1397_v20 = vadd.f32 %v1396_v53, %v1395_v43  ;;  %v1611_v3 = vsel %vm1597_vm11, %v1592_v35, 0.0  ;;  %v1613_v62 = vsel %vm1597_vm11, %v1593_v30, 0.0  ;;  %v2426_v26 = vsel %vm1597_vm11, %v2404_v46, 0.0 }
 0x379   : > { %v1583_v9 = vrot.slane %v1582_v34, 1  ;;  %v1612_v29 = vadd.f32 %v1611_v3, %v1610_v61  ;;  %v2393_v42 = vadd.f32 %v2392_v51, %v2391_v19  ;;  %vm5669_vm14 = vcmp.gt.s32.totalorder %v5621_v58, 11 }
 0x37a   : > { %v2405_v16 = vsel %vm5669_vm14, %v2386_v12, 0.0  ;;  %v1398_v41 = vrot.slane %v1397_v20, 1  ;;  %vm5670_vm7 = vcmp.gt.s32.totalorder %v3964_v32, 9  ;;  %vm5671_vm10 = vcmp.gt.s32.totalorder %v3964_v32, 10 }
 0x37b   : > { %v1594_v7 = vsel %vm5670_vm7, %v1570_v18, 0.0  ;;  %v1595_v31 = vsel %vm5671_vm10, %v1577_v60, 0.0  ;;  %v1614_v54 = vadd.f32 %v1613_v62, %v1612_v29  ;;  %v2427_v50 = vadd.f32 %v2426_v26, %v2425_v63 }
 0x37c   : > { %v1399_v36 = vadd.f32 %v1398_v41, %v1397_v20  ;;  %v2428_v49 = vsel %vm1597_vm11, %v2405_v16, 0.0  ;;  %v1584_v25 = vadd.f32 %v1583_v9, %v1582_v34  ;;  %vm5672_vm0 = vcmp.gt.s32.totalorder %v5621_v58, 12 }
 0x37d   : > { %v2406_v13 = vsel %vm5672_vm0, %v2393_v42, 0.0  ;;  %v1615_v4 = vsel %vm1597_vm11, %v1594_v7, 0.0  ;;  %v1617_v0 = vsel %vm1597_vm11, %v1595_v31, 0.0  ;;  %v2429_v44 = vadd.f32 %v2428_v49, %v2427_v50 }
 0x37e   : > { %2947 = vlog2.f32 %v1399_v36  ;;  %v1616_v17 = vadd.f32 %v1615_v4, %v1614_v54  ;;  %v2430_v21 = vsel %vm1597_vm11, %v2406_v13, 0.0  ;;  %vm5673_vm1 = vcmp.gt.s32.totalorder %v3964_v32, 11 }
 0x37f   : > { %v1596_v27 = vsel %vm5673_vm1, %v1584_v25, 0.0  ;;  %v2431_v23 = vadd.f32 %v2430_v21, %v2429_v44 }
 0x380   : > { %v1618_v28 = vadd.f32 %v1617_v0, %v1616_v17  ;;  %v1619_v39 = vsel %vm1597_vm11, %v1596_v27, 0.0 }
 0x382   : > { %v1620_v56 = vadd.f32 %v1619_v39, %v1618_v28 }
 0x384   : > { %v2948_v58 = vpop.eup %2947  ;;  %v2432_v32 = vadd.f32 %v2431_v23, %v1620_v56 }
 0x385   : > { %v1401_v55 = vmul.f32 0.6931472, %v2948_v58 }
 0x387   : > { %v1402_v38 = vadd.f32 %v1401_v55, %v5143_v57 }
 0x389   : > { %v2433_v8 = vsub.f32 %v1402_v38, %v2432_v32 }
 0x38b   : > { %2434 = vst [vmem:[%s450_s29] sm:$0x1] %v2433_v8 }
 0x38c   : > { %3097 = shalt.err (!%p3094_p4)
}
 0x38d   : > { %2796 = dma.vmem_to_hbm [thread:$0]  (%p3315_p7), %s2447_s0, 16, %s2449_s20, %s2436_s23  }
 0x38e PF: > { %s2460_s11 = sand.u32 1, %s3132_s30   ;;  %p5674_p10 = scmp.ge.s32.totalorder %s3144_s12, 2 }
 0x38f   : > { %s2461_s16 = scalar_lea.sflag [#allocation5], %s2460_s11 }
 0x390   : > { %p2813_p0 = pnand %p5674_p10, %p3319_p9 }
 0x392   : > { %p2814_p3 = pneg %p2813_p0 }
 0x394   : > { %3127 = dma.done.wait (%p2814_p3), %s2461_s16, 16  }
 0x395   : > { %3129 = vsyncadd (%p2814_p3), %s2461_s16, 4294967280  ;;  %s5675_s12 = sld [smem:[#allocation16_spill]]  ;;  %s5678_s30 = smov %s3136_s10 }
 0x396   : > { %s5676_s19 = sld [smem:[#allocation15_spill]] }
 0x397   : > { %s5677_s11 = sld [smem:[#allocation17_spill]] }
 0x39b   : > { %p23_p6 = scmp.ge.s32.totalorder %s5675_s12, 4  }
 0x39c   : > { %s5679_s10 = smov %s5676_s19 }
 0x39d   :  { %25 = sbr.rel (!%p23_p6) target bundleno = 10 (0xa), region = 152 }
 0x3a2   :  { %2466 = vsyncpa [#allocation4], 1 }
 0x3a3   :  { %2468 = vsyncpa [#allocation4 + $0x1], 1 }
 0x3a4   :  { %2469 = vsyncpa [#allocation7], 1 }
 0x3a5   :  { %2470 = vsyncpa [#allocation5], 1 }
 0x3a6   :  { %2472 = vsyncpa [#allocation5 + $0x1], 1 }

</bundles_post_ra>
